<compile_context>
chip_gen: v5e
topology: v5e:2x2
jax: 0.10.0
libtpu: 0.0.40
codegen_flags: <defaults>
</compile_context>

<pallas_src>
import functools
import math

import jax
import jax.numpy as jnp
from jax.experimental import pallas as pl
from jax.experimental.pallas import tpu as pltpu

BN_EPS = 1e-5
_ACC_BUDGET_BYTES = 128 * 1024          # f32 accumulator budget per tile


def _round_up(x, m):
    return ((x + m - 1) // m) * m


def _largest_divisor_leq(n, k):
    k = max(1, min(n, k))
    for cand in range(k, 0, -1):
        if n % cand == 0:
            return cand
    return 1


def _vmem_limit_bytes():
    # Generation-aware budget (v7x: 64 MiB physical; v5e/v6e: 128 MiB).
    try:
        cap = int(pltpu.get_tpu_info().vmem_capacity_bytes)
        return max(32 * 1024 * 1024, min(int(0.75 * cap), 100 * 1024 * 1024))
    except Exception:
        return 48 * 1024 * 1024


_VMEM_LIMIT_BYTES = _vmem_limit_bytes()


# ---------------------------- Pallas kernels ----------------------------

def _gemm_bn_kernel(x_ref, w_ref, s_ref, b_ref, o_ref, *, relu):
    """1x1-conv-as-GEMM (bf16 operands, resident weights) + folded BN."""
    acc = jnp.dot(x_ref[...], w_ref[...], preferred_element_type=jnp.float32)
    y = acc * s_ref[...] + b_ref[...]
    if relu:
        y = jnp.maximum(y, 0.0)
    o_ref[...] = y.astype(o_ref.dtype)


def _conv3x3_bn_kernel(x_ref, w_ref, s_ref, b_ref, *rest,
                       taps, tms, pad, rt, wpitch, wo, relu, has_res):
    """Implicit-im2col 3x3 conv over stride-parity sub-images.

    x_ref : (1, s*s, L, Cin) bf16  -- flattened parity sub-images, resident/n
    w_ref : (9, Cin, Cout)   bf16  -- per-tap weights, fully resident
    s_ref, b_ref : (1, Cout) f32   -- folded BN scale / bias
    rest  : [(1, RT, Wo, Cout) residual,] (1, RT, Wo, Cout) output

    `taps` groups the nine taps by their (static) column offset `cj`; the row
    offset is a multiple of the 16-aligned row pitch so every bf16 window
    load is sublane-aligned.  The small column offset is applied to the f32
    dot result (<= 3 shifted adds per tile).
    """
    if has_res:
        r_ref, o_ref = rest
    else:
        (o_ref,) = rest

    m = pl.program_id(1)
    base = pl.multiple_of(m * tms, 16)

    acc = None
    for cj, group in taps:
        part = None
        for par, roff, t in group:
            start = pl.multiple_of(base + roff, 16)
            xw = x_ref[0, par, pl.ds(start, tms + pad), :]         # bf16
            dt = jnp.dot(xw, w_ref[t], preferred_element_type=jnp.float32)
            part = dt if part is None else part + dt
        shifted = part[cj:cj + tms, :]                             # f32 shift
        acc = shifted if acc is None else acc + shifted

    scale = s_ref[...]
    bias = b_ref[...]
    for r in range(rt):                      # compact (row-by-row) writeback
        y = acc[r * wpitch:r * wpitch + wo, :] * scale + bias
        if has_res:
            y = y + r_ref[0, r].astype(jnp.float32)
        if relu:
            y = jnp.maximum(y, 0.0)
        o_ref[0, r] = y.astype(o_ref.dtype)


# ---------------------------- conv wrappers ----------------------------

def _fold_bn(p):
    scale = (p['gamma'] / jnp.sqrt(p['rvar'] + BN_EPS)).astype(jnp.float32)
    # NOTE: the spec module's nn.Conv2d uses bias=True, so the conv bias is
    # folded into the BN affine here.
    bias = (p['beta'] - p['rmean'] * scale + scale * p['b']).astype(jnp.float32)
    return scale, bias


def conv1x1_bn(x, p, *, stride, relu, out_dtype=jnp.bfloat16):
    """1x1 Conv2d(+bias) + folded BatchNorm (+ReLU) on NHWC; tiled GEMM."""
    if stride == 2:
        x = x[:, ::2, ::2, :]                 # 1x1 stride-2 == subsample + 1x1
    N, Ho, Wo, Cin = x.shape
    Cout = p['w'].shape[0]
    M = N * Ho * Wo
    x2d = x.reshape(M, Cin).astype(jnp.bfloat16)
    w2d = p['w'].reshape(Cout, Cin).T.astype(jnp.bfloat16)
    scale, bias = _fold_bn(p)

    TM = min(1024, _round_up(M, 8))
    grid = (pl.cdiv(M, TM),)
    out_bytes = 2 if out_dtype == jnp.bfloat16 else 4
    out = pl.pallas_call(
        functools.partial(_gemm_bn_kernel, relu=relu),
        out_shape=jax.ShapeDtypeStruct((M, Cout), out_dtype),
        grid=grid,
        in_specs=[pl.BlockSpec((TM, Cin), lambda i: (i, 0)),
                  pl.BlockSpec((Cin, Cout), lambda i: (0, 0)),   # resident
                  pl.BlockSpec((1, Cout), lambda i: (0, 0)),
                  pl.BlockSpec((1, Cout), lambda i: (0, 0))],
        out_specs=pl.BlockSpec((TM, Cout), lambda i: (i, 0)),
        compiler_params=pltpu.CompilerParams(
            dimension_semantics=("parallel",),
            vmem_limit_bytes=_VMEM_LIMIT_BYTES),
        cost_estimate=pl.CostEstimate(
            flops=2 * M * Cin * Cout,
            transcendentals=0,
            bytes_accessed=M * Cin * 2 + Cin * Cout * 2 + M * Cout * out_bytes),
    )(x2d, w2d, scale.reshape(1, Cout), bias.reshape(1, Cout))
    return out.reshape(N, Ho, Wo, Cout)


def conv3x3_bn(x, p, *, stride, dilation, relu, residual=None,
               out_dtype=jnp.bfloat16):
    """3x3 Conv2d(+bias) + folded BatchNorm (+residual) (+ReLU) on NHWC.

    Output (ho, wo), tap (i, j) reads padded pixel (s*ho + i*d, s*wo + j*d).
    After splitting the padded image into s*s stride-parity sub-images, that
    pixel sits at flat index (ho*Wpitch + wo) + ((i*d)//s)*Wpitch + (j*d)//s
    of parity ((i*d)%s, (j*d)%s), so every tap is a shifted flat window of a
    resident bf16 sub-image -> exact stride-2, compact NHWC output.
    """
    N, H, W, Cin = x.shape
    Cout = p['w'].shape[0]
    s, d = stride, dilation
    Ho = (H - 1) // s + 1
    Wo = (W - 1) // s + 1
    off_max = (2 * d) // s                    # max sub-image tap offset
    Hs, Ws = Ho + off_max, Wo + off_max
    Wpitch = _round_up(Ws, 16)                # 16-aligned row pitch (bf16)
    PAD = max(8, _round_up(off_max, 8))
    L = Hs * Wpitch + PAD
    Hpad, Wpad = s * Hs, s * Ws

    # Single spatial zero-pad (content at offset d), then parity split.
    xp = jnp.pad(x.astype(jnp.bfloat16),
                 ((0, 0), (d, Hpad - H - d), (d, Wpad - W - d), (0, 0)))
    parts = []
    for a in range(s):
        for b in range(s):
            sub = xp[:, a::s, b::s, :]                       # (N, Hs, Ws, Cin)
            sub = jnp.pad(sub, ((0, 0), (0, 0), (0, Wpitch - Ws), (0, 0)))
            sub = sub.reshape(N, Hs * Wpitch, Cin)
            sub = jnp.pad(sub, ((0, 0), (0, PAD), (0, 0)))
            parts.append(sub)
    x_par = jnp.stack(parts, axis=1)                         # (N, s*s, L, Cin)

    w_taps = jnp.transpose(p['w'], (2, 3, 1, 0)).reshape(9, Cin, Cout)
    w_taps = w_taps.astype(jnp.bfloat16)
    scale, bias = _fold_bn(p)

    # Taps grouped by their static column offset (<= 3 groups).
    groups = {}
    for i in range(3):
        for j in range(3):
            par = ((i * d) % s) * s + (j * d) % s
            roff = ((i * d) // s) * Wpitch
            cj = (j * d) // s
            groups.setdefault(cj, []).append((par, roff, i * 3 + j))
    taps = tuple(sorted((cj, tuple(g)) for cj, g in groups.items()))

    # Row-tile size: whole output rows, f32 accumulator capped ~128 KiB.
    budget_rows = max(Wpitch, _ACC_BUDGET_BYTES // (Cout * 4))
    RT = _largest_divisor_leq(Ho, max(1, budget_rows // Wpitch))
    TMS = RT * Wpitch
    grid = (N, Ho // RT)

    has_res = residual is not None
    ob_spec = pl.BlockSpec((1, RT, Wo, Cout), lambda n, m: (n, m, 0, 0))
    in_specs = [
        pl.BlockSpec((1, s * s, L, Cin), lambda n, m: (n, 0, 0, 0)),  # per-n
        pl.BlockSpec((9, Cin, Cout), lambda n, m: (0, 0, 0)),         # resident
        pl.BlockSpec((1, Cout), lambda n, m: (0, 0)),
        pl.BlockSpec((1, Cout), lambda n, m: (0, 0)),
    ]
    args = [x_par, w_taps, scale.reshape(1, Cout), bias.reshape(1, Cout)]
    if has_res:
        in_specs.append(ob_spec)
        args.append(residual.astype(jnp.bfloat16))

    kern = functools.partial(
        _conv3x3_bn_kernel, taps=taps, tms=TMS, pad=PAD, rt=RT,
        wpitch=Wpitch, wo=Wo, relu=relu, has_res=has_res)

    out_bytes = 2 if out_dtype == jnp.bfloat16 else 4
    flops = 2 * 9 * N * (Ho // RT) * (TMS + PAD) * Cin * Cout
    bytes_accessed = (x_par.size * 2 + w_taps.size * 2
                      + N * Ho * Wo * Cout * out_bytes
                      + (N * Ho * Wo * Cout * 2 if has_res else 0))

    # Batch axis parallel (megacore splits images; the per-image resident
    # DMA is not duplicated); row-tile axis arbitrary.  Swap when N == 1.
    dims = ("parallel", "arbitrary") if N > 1 else ("arbitrary", "parallel")

    out = pl.pallas_call(
        kern,
        out_shape=jax.ShapeDtypeStruct((N, Ho, Wo, Cout), out_dtype),
        grid=grid,
        in_specs=in_specs,
        out_specs=ob_spec,
        compiler_params=pltpu.CompilerParams(
            dimension_semantics=dims,
            vmem_limit_bytes=_VMEM_LIMIT_BYTES),
        cost_estimate=pl.CostEstimate(
            flops=flops, transcendentals=0, bytes_accessed=bytes_accessed),
    )(*args)
    return out


# ---------------------------- parameters ----------------------------

def init_conv_bn(key, cin, cout, k):
    ks = jax.random.split(key, 6)
    std = 1.0 / math.sqrt(cin * k * k)
    return dict(
        w=std * jax.random.normal(ks[0], (cout, cin, k, k), jnp.float32),
        b=std * jax.random.normal(ks[1], (cout,), jnp.float32),
        gamma=1.0 + 0.1 * jax.random.normal(ks[2], (cout,), jnp.float32),
        beta=0.1 * jax.random.normal(ks[3], (cout,), jnp.float32),
        rmean=0.1 * jax.random.normal(ks[4], (cout,), jnp.float32),
        rvar=jax.random.uniform(ks[5], (cout,), jnp.float32, 0.5, 1.5),
    )


def init_basic_block(key, cin, cout, downsample):
    with_proj = (cin != cout) or downsample
    k1, k2, k3 = jax.random.split(key, 3)
    p = {'l1': init_conv_bn(k1, cin, cout, 3),
         'l2': init_conv_bn(k2, cout, cout, 3)}
    if with_proj:
        p['shortcut'] = init_conv_bn(k3, cin, cout, 1)
    return p


# ---------------------------- forward pass ----------------------------

def basic_block_forward(x_nchw, params, *, downsample, dilation=1):
    """BasicBlock forward (eval-mode BN), NCHW in / NCHW out (f32)."""
    x = jnp.transpose(x_nchw, (0, 2, 3, 1))                    # -> NHWC
    stride = 2 if downsample else 1
    if 'shortcut' in params:
        identity = conv1x1_bn(x, params['shortcut'], stride=stride,
                              relu=False, out_dtype=jnp.bfloat16)
    else:
        identity = x.astype(jnp.bfloat16)
    y = conv3x3_bn(x, params['l1'], stride=stride, dilation=dilation,
                   relu=True, out_dtype=jnp.bfloat16)
    y = conv3x3_bn(y, params['l2'], stride=1, dilation=dilation, relu=True,
                   residual=identity, out_dtype=jnp.float32)   # +id, ReLU
    return jnp.transpose(y, (0, 3, 1, 2))                       # -> NCHW


# ---------------------------- pure-JAX reference ----------------------------

def _conv_bn_ref(x, p, stride, padding, dilation, relu, residual=None):
    y = jax.lax.conv_general_dilated(
        x.astype(jnp.bfloat16), p['w'].astype(jnp.bfloat16),
        (stride, stride), [(padding, padding), (padding, padding)],
        rhs_dilation=(dilation, dilation),
        dimension_numbers=('NHWC', 'OIHW', 'NHWC'),
        preferred_element_type=jnp.float32)
    scale = p['gamma'] / jnp.sqrt(p['rvar'] + BN_EPS)
    bias = p['beta'] - p['rmean'] * scale + scale * p['b']
    y = y * scale + bias
    if residual is not None:
        y = y + residual.astype(jnp.float32)
    if relu:
        y = jnp.maximum(y, 0.0)
    return y


def basic_block_ref(x_nchw, params, *, downsample, dilation=1):
    x = jnp.transpose(x_nchw, (0, 2, 3, 1))
    stride = 2 if downsample else 1
    if 'shortcut' in params:
        identity = _conv_bn_ref(x, params['shortcut'], stride, 0, 1,
                                relu=False).astype(jnp.bfloat16)
    else:
        identity = x.astype(jnp.bfloat16)
    y = _conv_bn_ref(x, params['l1'], stride, dilation, dilation,
                     relu=True).astype(jnp.bfloat16)
    y = _conv_bn_ref(y, params['l2'], 1, dilation, dilation, relu=True,
                     residual=identity)
    return jnp.transpose(y, (0, 3, 1, 2))


# ---------------------------- demo ----------------------------

if __name__ == "__main__":
    key = jax.random.PRNGKey(0)
    kx, kp1, kp2 = jax.random.split(key, 3)

    # Block 1: projection shortcut + stride-2 downsample (8 -> 16, 16 -> 8).
    x = jax.random.normal(kx, (2, 8, 16, 16), jnp.float32)      # NCHW
    p1 = init_basic_block(kp1, 8, 16, downsample=True)
    fwd1 = jax.jit(functools.partial(basic_block_forward, downsample=True))
    out1 = jax.block_until_ready(fwd1(x, p1))
    assert out1.shape == (2, 16, 8, 8), out1.shape

    # Block 2: identity shortcut, stride 1 (8 -> 8, 16x16).
    p2 = init_basic_block(kp2, 8, 8, downsample=False)
    fwd2 = jax.jit(functools.partial(basic_block_forward, downsample=False))
    out2 = jax.block_until_ready(fwd2(x, p2))
    assert out2.shape == (2, 8, 16, 16), out2.shape

    # Cross-check against a pure-JAX reference using the same bf16 operand /
    # hand-off rounding and f32 accumulation.
    ref1 = basic_block_ref(x, p1, downsample=True)
    ref2 = basic_block_ref(x, p2, downsample=False)
    err = max(float(jnp.max(jnp.abs(out1 - ref1))),
              float(jnp.max(jnp.abs(out2 - ref2))))
    assert err < 2e-2, f"max abs error {err}"
    assert bool(jnp.all(jnp.isfinite(out1))) and bool(jnp.all(jnp.isfinite(out2)))
    print("KERNEL_OK")
</pallas_src>

<mosaic_0001>
module attributes {stable_mosaic.version = 11 : i64} {
  func.func @_conv3x3_bn_kernel(%arg0: i32, %arg1: i32, %arg2: memref<1x4x152x8xbf16, #tpu.memory_space<vmem>>, %arg3: memref<9x8x16xbf16, #tpu.memory_space<vmem>>, %arg4: memref<1x16xf32, #tpu.memory_space<vmem>>, %arg5: memref<1x16xf32, #tpu.memory_space<vmem>>, %arg6: memref<1x8x8x16xbf16, #tpu.memory_space<vmem>>) attributes {dimension_semantics = [#tpu.dimension_semantics<parallel>, #tpu.dimension_semantics<arbitrary>], iteration_bounds = array<i64: 2, 1>, scalar_prefetch = 0 : i64, scratch_operands = 0 : i64, tpu.core_type = #tpu.core_type<tc>, window_params = [{transform_indices = @transform_0, window_bounds = array<i64: 1, 4, 152, 8>}, {pipeline_mode = #tpu.pipeline_mode<synchronous>, transform_indices = @transform_1, window_bounds = array<i64: 9, 8, 16>}, {pipeline_mode = #tpu.pipeline_mode<synchronous>, transform_indices = @transform_2, window_bounds = array<i64: 1, 16>}, {pipeline_mode = #tpu.pipeline_mode<synchronous>, transform_indices = @transform_3, window_bounds = array<i64: 1, 16>}, {transform_indices = @transform_4, window_bounds = array<i64: 1, 8, 8, 16>}]} {
    %c128_i32 = arith.constant 128 : i32
    %0 = arith.muli %arg1, %c128_i32 : i32
    %1 = tpu.assume_multiple %0, 16 : i32
    %c0_i32 = arith.constant 0 : i32
    %2 = arith.addi %1, %c0_i32 : i32
    %3 = tpu.assume_multiple %2, 16 : i32
    %c0 = arith.constant 0 : index
    %c0_0 = arith.constant 0 : index
    %4 = arith.index_cast %3 : i32 to index
    %c0_1 = arith.constant 0 : index
    %5 = vector.load %arg2[%c0, %c0_0, %4, %c0_1] : memref<1x4x152x8xbf16, #tpu.memory_space<vmem>>, vector<1x1x136x8xbf16>
    %6 = vector.shape_cast %5 : vector<1x1x136x8xbf16> to vector<136x8xbf16>
    %c0_2 = arith.constant 0 : index
    %c0_3 = arith.constant 0 : index
    %c0_4 = arith.constant 0 : index
    %7 = vector.load %arg3[%c0_2, %c0_3, %c0_4] : memref<9x8x16xbf16, #tpu.memory_space<vmem>>, vector<1x8x16xbf16>
    %8 = vector.shape_cast %7 : vector<1x8x16xbf16> to vector<8x16xbf16>
    %cst = arith.constant dense<0.000000e+00> : vector<136x16xf32>
    %9 = tpu.matmul %6, %8, %cst {dimension_numbers = #tpu.dot_dimension_numbers<[1], [0], [0], [1], [0, 0, 1, 1], [], []>} : vector<136x8xbf16>, vector<8x16xbf16>, vector<136x16xf32> -> vector<136x16xf32>
    %c0_i32_5 = arith.constant 0 : i32
    %10 = arith.addi %1, %c0_i32_5 : i32
    %11 = tpu.assume_multiple %10, 16 : i32
    %c0_6 = arith.constant 0 : index
    %c1 = arith.constant 1 : index
    %12 = arith.index_cast %11 : i32 to index
    %c0_7 = arith.constant 0 : index
    %13 = vector.load %arg2[%c0_6, %c1, %12, %c0_7] : memref<1x4x152x8xbf16, #tpu.memory_space<vmem>>, vector<1x1x136x8xbf16>
    %14 = vector.shape_cast %13 : vector<1x1x136x8xbf16> to vector<136x8xbf16>
    %c1_8 = arith.constant 1 : index
    %c0_9 = arith.constant 0 : index
    %c0_10 = arith.constant 0 : index
    %15 = vector.load %arg3[%c1_8, %c0_9, %c0_10] : memref<9x8x16xbf16, #tpu.memory_space<vmem>>, vector<1x8x16xbf16>
    %16 = vector.shape_cast %15 : vector<1x8x16xbf16> to vector<8x16xbf16>
    %cst_11 = arith.constant dense<0.000000e+00> : vector<136x16xf32>
    %17 = tpu.matmul %14, %16, %cst_11 {dimension_numbers = #tpu.dot_dimension_numbers<[1], [0], [0], [1], [0, 0, 1, 1], [], []>} : vector<136x8xbf16>, vector<8x16xbf16>, vector<136x16xf32> -> vector<136x16xf32>
    %18 = arith.addf %9, %17 : vector<136x16xf32>
    %c0_i32_12 = arith.constant 0 : i32
    %19 = arith.addi %1, %c0_i32_12 : i32
    %20 = tpu.assume_multiple %19, 16 : i32
    %c0_13 = arith.constant 0 : index
    %c2 = arith.constant 2 : index
    %21 = arith.index_cast %20 : i32 to index
    %c0_14 = arith.constant 0 : index
    %22 = vector.load %arg2[%c0_13, %c2, %21, %c0_14] : memref<1x4x152x8xbf16, #tpu.memory_space<vmem>>, vector<1x1x136x8xbf16>
    %23 = vector.shape_cast %22 : vector<1x1x136x8xbf16> to vector<136x8xbf16>
    %c3 = arith.constant 3 : index
    %c0_15 = arith.constant 0 : index
    %c0_16 = arith.constant 0 : index
    %24 = vector.load %arg3[%c3, %c0_15, %c0_16] : memref<9x8x16xbf16, #tpu.memory_space<vmem>>, vector<1x8x16xbf16>
    %25 = vector.shape_cast %24 : vector<1x8x16xbf16> to vector<8x16xbf16>
    %cst_17 = arith.constant dense<0.000000e+00> : vector<136x16xf32>
    %26 = tpu.matmul %23, %25, %cst_17 {dimension_numbers = #tpu.dot_dimension_numbers<[1], [0], [0], [1], [0, 0, 1, 1], [], []>} : vector<136x8xbf16>, vector<8x16xbf16>, vector<136x16xf32> -> vector<136x16xf32>
    %27 = arith.addf %18, %26 : vector<136x16xf32>
    %c0_i32_18 = arith.constant 0 : i32
    %28 = arith.addi %1, %c0_i32_18 : i32
    %29 = tpu.assume_multiple %28, 16 : i32
    %c0_19 = arith.constant 0 : index
    %c3_20 = arith.constant 3 : index
    %30 = arith.index_cast %29 : i32 to index
    %c0_21 = arith.constant 0 : index
    %31 = vector.load %arg2[%c0_19, %c3_20, %30, %c0_21] : memref<1x4x152x8xbf16, #tpu.memory_space<vmem>>, vector<1x1x136x8xbf16>
    %32 = vector.shape_cast %31 : vector<1x1x136x8xbf16> to vector<136x8xbf16>
    %c4 = arith.constant 4 : index
    %c0_22 = arith.constant 0 : index
    %c0_23 = arith.constant 0 : index
    %33 = vector.load %arg3[%c4, %c0_22, %c0_23] : memref<9x8x16xbf16, #tpu.memory_space<vmem>>, vector<1x8x16xbf16>
    %34 = vector.shape_cast %33 : vector<1x8x16xbf16> to vector<8x16xbf16>
    %cst_24 = arith.constant dense<0.000000e+00> : vector<136x16xf32>
    %35 = tpu.matmul %32, %34, %cst_24 {dimension_numbers = #tpu.dot_dimension_numbers<[1], [0], [0], [1], [0, 0, 1, 1], [], []>} : vector<136x8xbf16>, vector<8x16xbf16>, vector<136x16xf32> -> vector<136x16xf32>
    %36 = arith.addf %27, %35 : vector<136x16xf32>
    %c16_i32 = arith.constant 16 : i32
    %37 = arith.addi %1, %c16_i32 : i32
    %38 = tpu.assume_multiple %37, 16 : i32
    %c0_25 = arith.constant 0 : index
    %c0_26 = arith.constant 0 : index
    %39 = arith.index_cast %38 : i32 to index
    %c0_27 = arith.constant 0 : index
    %40 = vector.load %arg2[%c0_25, %c0_26, %39, %c0_27] : memref<1x4x152x8xbf16, #tpu.memory_space<vmem>>, vector<1x1x136x8xbf16>
    %41 = vector.shape_cast %40 : vector<1x1x136x8xbf16> to vector<136x8xbf16>
    %c6 = arith.constant 6 : index
    %c0_28 = arith.constant 0 : index
    %c0_29 = arith.constant 0 : index
    %42 = vector.load %arg3[%c6, %c0_28, %c0_29] : memref<9x8x16xbf16, #tpu.memory_space<vmem>>, vector<1x8x16xbf16>
    %43 = vector.shape_cast %42 : vector<1x8x16xbf16> to vector<8x16xbf16>
    %cst_30 = arith.constant dense<0.000000e+00> : vector<136x16xf32>
    %44 = tpu.matmul %41, %43, %cst_30 {dimension_numbers = #tpu.dot_dimension_numbers<[1], [0], [0], [1], [0, 0, 1, 1], [], []>} : vector<136x8xbf16>, vector<8x16xbf16>, vector<136x16xf32> -> vector<136x16xf32>
    %45 = arith.addf %36, %44 : vector<136x16xf32>
    %c16_i32_31 = arith.constant 16 : i32
    %46 = arith.addi %1, %c16_i32_31 : i32
    %47 = tpu.assume_multiple %46, 16 : i32
    %c0_32 = arith.constant 0 : index
    %c1_33 = arith.constant 1 : index
    %48 = arith.index_cast %47 : i32 to index
    %c0_34 = arith.constant 0 : index
    %49 = vector.load %arg2[%c0_32, %c1_33, %48, %c0_34] : memref<1x4x152x8xbf16, #tpu.memory_space<vmem>>, vector<1x1x136x8xbf16>
    %50 = vector.shape_cast %49 : vector<1x1x136x8xbf16> to vector<136x8xbf16>
    %c7 = arith.constant 7 : index
    %c0_35 = arith.constant 0 : index
    %c0_36 = arith.constant 0 : index
    %51 = vector.load %arg3[%c7, %c0_35, %c0_36] : memref<9x8x16xbf16, #tpu.memory_space<vmem>>, vector<1x8x16xbf16>
    %52 = vector.shape_cast %51 : vector<1x8x16xbf16> to vector<8x16xbf16>
    %cst_37 = arith.constant dense<0.000000e+00> : vector<136x16xf32>
    %53 = tpu.matmul %50, %52, %cst_37 {dimension_numbers = #tpu.dot_dimension_numbers<[1], [0], [0], [1], [0, 0, 1, 1], [], []>} : vector<136x8xbf16>, vector<8x16xbf16>, vector<136x16xf32> -> vector<136x16xf32>
    %54 = arith.addf %45, %53 : vector<136x16xf32>
    %55 = vector.extract_strided_slice %54 {offsets = [0, 0], sizes = [128, 16], strides = [1, 1]} : vector<136x16xf32> to vector<128x16xf32>
    %c0_i32_38 = arith.constant 0 : i32
    %56 = arith.addi %1, %c0_i32_38 : i32
    %57 = tpu.assume_multiple %56, 16 : i32
    %c0_39 = arith.constant 0 : index
    %c0_40 = arith.constant 0 : index
    %58 = arith.index_cast %57 : i32 to index
    %c0_41 = arith.constant 0 : index
    %59 = vector.load %arg2[%c0_39, %c0_40, %58, %c0_41] : memref<1x4x152x8xbf16, #tpu.memory_space<vmem>>, vector<1x1x136x8xbf16>
    %60 = vector.shape_cast %59 : vector<1x1x136x8xbf16> to vector<136x8xbf16>
    %c2_42 = arith.constant 2 : index
    %c0_43 = arith.constant 0 : index
    %c0_44 = arith.constant 0 : index
    %61 = vector.load %arg3[%c2_42, %c0_43, %c0_44] : memref<9x8x16xbf16, #tpu.memory_space<vmem>>, vector<1x8x16xbf16>
    %62 = vector.shape_cast %61 : vector<1x8x16xbf16> to vector<8x16xbf16>
    %cst_45 = arith.constant dense<0.000000e+00> : vector<136x16xf32>
    %63 = tpu.matmul %60, %62, %cst_45 {dimension_numbers = #tpu.dot_dimension_numbers<[1], [0], [0], [1], [0, 0, 1, 1], [], []>} : vector<136x8xbf16>, vector<8x16xbf16>, vector<136x16xf32> -> vector<136x16xf32>
    %c0_i32_46 = arith.constant 0 : i32
    %64 = arith.addi %1, %c0_i32_46 : i32
    %65 = tpu.assume_multiple %64, 16 : i32
    %c0_47 = arith.constant 0 : index
    %c2_48 = arith.constant 2 : index
    %66 = arith.index_cast %65 : i32 to index
    %c0_49 = arith.constant 0 : index
    %67 = vector.load %arg2[%c0_47, %c2_48, %66, %c0_49] : memref<1x4x152x8xbf16, #tpu.memory_space<vmem>>, vector<1x1x136x8xbf16>
    %68 = vector.shape_cast %67 : vector<1x1x136x8xbf16> to vector<136x8xbf16>
    %c5 = arith.constant 5 : index
    %c0_50 = arith.constant 0 : index
    %c0_51 = arith.constant 0 : index
    %69 = vector.load %arg3[%c5, %c0_50, %c0_51] : memref<9x8x16xbf16, #tpu.memory_space<vmem>>, vector<1x8x16xbf16>
    %70 = vector.shape_cast %69 : vector<1x8x16xbf16> to vector<8x16xbf16>
    %cst_52 = arith.constant dense<0.000000e+00> : vector<136x16xf32>
    %71 = tpu.matmul %68, %70, %cst_52 {dimension_numbers = #tpu.dot_dimension_numbers<[1], [0], [0], [1], [0, 0, 1, 1], [], []>} : vector<136x8xbf16>, vector<8x16xbf16>, vector<136x16xf32> -> vector<136x16xf32>
    %72 = arith.addf %63, %71 : vector<136x16xf32>
    %c16_i32_53 = arith.constant 16 : i32
    %73 = arith.addi %1, %c16_i32_53 : i32
    %74 = tpu.assume_multiple %73, 16 : i32
    %c0_54 = arith.constant 0 : index
    %c0_55 = arith.constant 0 : index
    %75 = arith.index_cast %74 : i32 to index
    %c0_56 = arith.constant 0 : index
    %76 = vector.load %arg2[%c0_54, %c0_55, %75, %c0_56] : memref<1x4x152x8xbf16, #tpu.memory_space<vmem>>, vector<1x1x136x8xbf16>
    %77 = vector.shape_cast %76 : vector<1x1x136x8xbf16> to vector<136x8xbf16>
    %c8 = arith.constant 8 : index
    %c0_57 = arith.constant 0 : index
    %c0_58 = arith.constant 0 : index
    %78 = vector.load %arg3[%c8, %c0_57, %c0_58] : memref<9x8x16xbf16, #tpu.memory_space<vmem>>, vector<1x8x16xbf16>
    %79 = vector.shape_cast %78 : vector<1x8x16xbf16> to vector<8x16xbf16>
    %cst_59 = arith.constant dense<0.000000e+00> : vector<136x16xf32>
    %80 = tpu.matmul %77, %79, %cst_59 {dimension_numbers = #tpu.dot_dimension_numbers<[1], [0], [0], [1], [0, 0, 1, 1], [], []>} : vector<136x8xbf16>, vector<8x16xbf16>, vector<136x16xf32> -> vector<136x16xf32>
    %81 = arith.addf %72, %80 : vector<136x16xf32>
    %82 = vector.extract_strided_slice %81 {offsets = [1, 0], sizes = [128, 16], strides = [1, 1]} : vector<136x16xf32> to vector<128x16xf32>
    %83 = arith.addf %55, %82 : vector<128x16xf32>
    %c0_60 = arith.constant 0 : index
    %c0_61 = arith.constant 0 : index
    %84 = vector.load %arg4[%c0_60, %c0_61] : memref<1x16xf32, #tpu.memory_space<vmem>>, vector<1x16xf32>
    %c0_62 = arith.constant 0 : index
    %c0_63 = arith.constant 0 : index
    %85 = vector.load %arg5[%c0_62, %c0_63] : memref<1x16xf32, #tpu.memory_space<vmem>>, vector<1x16xf32>
    %86 = vector.extract_strided_slice %83 {offsets = [0, 0], sizes = [8, 16], strides = [1, 1]} : vector<128x16xf32> to vector<8x16xf32>
    %87 = vector.broadcast %84 : vector<1x16xf32> to vector<8x16xf32>
    %88 = arith.mulf %86, %87 : vector<8x16xf32>
    %89 = vector.broadcast %85 : vector<1x16xf32> to vector<8x16xf32>
    %90 = arith.addf %88, %89 : vector<8x16xf32>
    %cst_64 = arith.constant 0.000000e+00 : f32
    %91 = vector.broadcast %cst_64 : f32 to vector<8x16xf32>
    %92 = arith.maximumf %90, %91 : vector<8x16xf32>
    %93 = arith.truncf %92 : vector<8x16xf32> to vector<8x16xbf16>
    %c0_65 = arith.constant 0 : index
    %c0_66 = arith.constant 0 : index
    %c0_67 = arith.constant 0 : index
    %c0_68 = arith.constant 0 : index
    %94 = vector.load %arg6[%c0_65, %c0_66, %c0_67, %c0_68] : memref<1x8x8x16xbf16, #tpu.memory_space<vmem>>, vector<1x1x8x16xbf16>
    %95 = vector.shape_cast %94 : vector<1x1x8x16xbf16> to vector<8x16xbf16>
    %96 = vector.shape_cast %93 : vector<8x16xbf16> to vector<1x1x8x16xbf16>
    tpu.vector_store %arg6[%c0_65, %c0_66, %c0_67, %c0_68], %96 {strides = array<i32>} : memref<1x8x8x16xbf16, #tpu.memory_space<vmem>>, vector<1x1x8x16xbf16>,
    %97 = vector.extract_strided_slice %83 {offsets = [16, 0], sizes = [8, 16], strides = [1, 1]} : vector<128x16xf32> to vector<8x16xf32>
    %98 = vector.broadcast %84 : vector<1x16xf32> to vector<8x16xf32>
    %99 = arith.mulf %97, %98 : vector<8x16xf32>
    %100 = vector.broadcast %85 : vector<1x16xf32> to vector<8x16xf32>
    %101 = arith.addf %99, %100 : vector<8x16xf32>
    %cst_69 = arith.constant 0.000000e+00 : f32
    %102 = vector.broadcast %cst_69 : f32 to vector<8x16xf32>
    %103 = arith.maximumf %101, %102 : vector<8x16xf32>
    %104 = arith.truncf %103 : vector<8x16xf32> to vector<8x16xbf16>
    %c0_70 = arith.constant 0 : index
    %c1_71 = arith.constant 1 : index
    %c0_72 = arith.constant 0 : index
    %c0_73 = arith.constant 0 : index
    %105 = vector.load %arg6[%c0_70, %c1_71, %c0_72, %c0_73] : memref<1x8x8x16xbf16, #tpu.memory_space<vmem>>, vector<1x1x8x16xbf16>
    %106 = vector.shape_cast %105 : vector<1x1x8x16xbf16> to vector<8x16xbf16>
    %107 = vector.shape_cast %104 : vector<8x16xbf16> to vector<1x1x8x16xbf16>
    tpu.vector_store %arg6[%c0_70, %c1_71, %c0_72, %c0_73], %107 {strides = array<i32>} : memref<1x8x8x16xbf16, #tpu.memory_space<vmem>>, vector<1x1x8x16xbf16>,
    %108 = vector.extract_strided_slice %83 {offsets = [32, 0], sizes = [8, 16], strides = [1, 1]} : vector<128x16xf32> to vector<8x16xf32>
    %109 = vector.broadcast %84 : vector<1x16xf32> to vector<8x16xf32>
    %110 = arith.mulf %108, %109 : vector<8x16xf32>
    %111 = vector.broadcast %85 : vector<1x16xf32> to vector<8x16xf32>
    %112 = arith.addf %110, %111 : vector<8x16xf32>
    %cst_74 = arith.constant 0.000000e+00 : f32
    %113 = vector.broadcast %cst_74 : f32 to vector<8x16xf32>
    %114 = arith.maximumf %112, %113 : vector<8x16xf32>
    %115 = arith.truncf %114 : vector<8x16xf32> to vector<8x16xbf16>
    %c0_75 = arith.constant 0 : index
    %c2_76 = arith.constant 2 : index
    %c0_77 = arith.constant 0 : index
    %c0_78 = arith.constant 0 : index
    %116 = vector.load %arg6[%c0_75, %c2_76, %c0_77, %c0_78] : memref<1x8x8x16xbf16, #tpu.memory_space<vmem>>, vector<1x1x8x16xbf16>
    %117 = vector.shape_cast %116 : vector<1x1x8x16xbf16> to vector<8x16xbf16>
    %118 = vector.shape_cast %115 : vector<8x16xbf16> to vector<1x1x8x16xbf16>
    tpu.vector_store %arg6[%c0_75, %c2_76, %c0_77, %c0_78], %118 {strides = array<i32>} : memref<1x8x8x16xbf16, #tpu.memory_space<vmem>>, vector<1x1x8x16xbf16>,
    %119 = vector.extract_strided_slice %83 {offsets = [48, 0], sizes = [8, 16], strides = [1, 1]} : vector<128x16xf32> to vector<8x16xf32>
    %120 = vector.broadcast %84 : vector<1x16xf32> to vector<8x16xf32>
    %121 = arith.mulf %119, %120 : vector<8x16xf32>
    %122 = vector.broadcast %85 : vector<1x16xf32> to vector<8x16xf32>
    %123 = arith.addf %121, %122 : vector<8x16xf32>
    %cst_79 = arith.constant 0.000000e+00 : f32
    %124 = vector.broadcast %cst_79 : f32 to vector<8x16xf32>
    %125 = arith.maximumf %123, %124 : vector<8x16xf32>
    %126 = arith.truncf %125 : vector<8x16xf32> to vector<8x16xbf16>
    %c0_80 = arith.constant 0 : index
    %c3_81 = arith.constant 3 : index
    %c0_82 = arith.constant 0 : index
    %c0_83 = arith.constant 0 : index
    %127 = vector.load %arg6[%c0_80, %c3_81, %c0_82, %c0_83] : memref<1x8x8x16xbf16, #tpu.memory_space<vmem>>, vector<1x1x8x16xbf16>
    %128 = vector.shape_cast %127 : vector<1x1x8x16xbf16> to vector<8x16xbf16>
    %129 = vector.shape_cast %126 : vector<8x16xbf16> to vector<1x1x8x16xbf16>
    tpu.vector_store %arg6[%c0_80, %c3_81, %c0_82, %c0_83], %129 {strides = array<i32>} : memref<1x8x8x16xbf16, #tpu.memory_space<vmem>>, vector<1x1x8x16xbf16>,
    %130 = vector.extract_strided_slice %83 {offsets = [64, 0], sizes = [8, 16], strides = [1, 1]} : vector<128x16xf32> to vector<8x16xf32>
    %131 = vector.broadcast %84 : vector<1x16xf32> to vector<8x16xf32>
    %132 = arith.mulf %130, %131 : vector<8x16xf32>
    %133 = vector.broadcast %85 : vector<1x16xf32> to vector<8x16xf32>
    %134 = arith.addf %132, %133 : vector<8x16xf32>
    %cst_84 = arith.constant 0.000000e+00 : f32
    %135 = vector.broadcast %cst_84 : f32 to vector<8x16xf32>
    %136 = arith.maximumf %134, %135 : vector<8x16xf32>
    %137 = arith.truncf %136 : vector<8x16xf32> to vector<8x16xbf16>
    %c0_85 = arith.constant 0 : index
    %c4_86 = arith.constant 4 : index
    %c0_87 = arith.constant 0 : index
    %c0_88 = arith.constant 0 : index
    %138 = vector.load %arg6[%c0_85, %c4_86, %c0_87, %c0_88] : memref<1x8x8x16xbf16, #tpu.memory_space<vmem>>, vector<1x1x8x16xbf16>
    %139 = vector.shape_cast %138 : vector<1x1x8x16xbf16> to vector<8x16xbf16>
    %140 = vector.shape_cast %137 : vector<8x16xbf16> to vector<1x1x8x16xbf16>
    tpu.vector_store %arg6[%c0_85, %c4_86, %c0_87, %c0_88], %140 {strides = array<i32>} : memref<1x8x8x16xbf16, #tpu.memory_space<vmem>>, vector<1x1x8x16xbf16>,
    %141 = vector.extract_strided_slice %83 {offsets = [80, 0], sizes = [8, 16], strides = [1, 1]} : vector<128x16xf32> to vector<8x16xf32>
    %142 = vector.broadcast %84 : vector<1x16xf32> to vector<8x16xf32>
    %143 = arith.mulf %141, %142 : vector<8x16xf32>
    %144 = vector.broadcast %85 : vector<1x16xf32> to vector<8x16xf32>
    %145 = arith.addf %143, %144 : vector<8x16xf32>
    %cst_89 = arith.constant 0.000000e+00 : f32
    %146 = vector.broadcast %cst_89 : f32 to vector<8x16xf32>
    %147 = arith.maximumf %145, %146 : vector<8x16xf32>
    %148 = arith.truncf %147 : vector<8x16xf32> to vector<8x16xbf16>
    %c0_90 = arith.constant 0 : index
    %c5_91 = arith.constant 5 : index
    %c0_92 = arith.constant 0 : index
    %c0_93 = arith.constant 0 : index
    %149 = vector.load %arg6[%c0_90, %c5_91, %c0_92, %c0_93] : memref<1x8x8x16xbf16, #tpu.memory_space<vmem>>, vector<1x1x8x16xbf16>
    %150 = vector.shape_cast %149 : vector<1x1x8x16xbf16> to vector<8x16xbf16>
    %151 = vector.shape_cast %148 : vector<8x16xbf16> to vector<1x1x8x16xbf16>
    tpu.vector_store %arg6[%c0_90, %c5_91, %c0_92, %c0_93], %151 {strides = array<i32>} : memref<1x8x8x16xbf16, #tpu.memory_space<vmem>>, vector<1x1x8x16xbf16>,
    %152 = vector.extract_strided_slice %83 {offsets = [96, 0], sizes = [8, 16], strides = [1, 1]} : vector<128x16xf32> to vector<8x16xf32>
    %153 = vector.broadcast %84 : vector<1x16xf32> to vector<8x16xf32>
    %154 = arith.mulf %152, %153 : vector<8x16xf32>
    %155 = vector.broadcast %85 : vector<1x16xf32> to vector<8x16xf32>
    %156 = arith.addf %154, %155 : vector<8x16xf32>
    %cst_94 = arith.constant 0.000000e+00 : f32
    %157 = vector.broadcast %cst_94 : f32 to vector<8x16xf32>
    %158 = arith.maximumf %156, %157 : vector<8x16xf32>
    %159 = arith.truncf %158 : vector<8x16xf32> to vector<8x16xbf16>
    %c0_95 = arith.constant 0 : index
    %c6_96 = arith.constant 6 : index
    %c0_97 = arith.constant 0 : index
    %c0_98 = arith.constant 0 : index
    %160 = vector.load %arg6[%c0_95, %c6_96, %c0_97, %c0_98] : memref<1x8x8x16xbf16, #tpu.memory_space<vmem>>, vector<1x1x8x16xbf16>
    %161 = vector.shape_cast %160 : vector<1x1x8x16xbf16> to vector<8x16xbf16>
    %162 = vector.shape_cast %159 : vector<8x16xbf16> to vector<1x1x8x16xbf16>
    tpu.vector_store %arg6[%c0_95, %c6_96, %c0_97, %c0_98], %162 {strides = array<i32>} : memref<1x8x8x16xbf16, #tpu.memory_space<vmem>>, vector<1x1x8x16xbf16>,
    %163 = vector.extract_strided_slice %83 {offsets = [112, 0], sizes = [8, 16], strides = [1, 1]} : vector<128x16xf32> to vector<8x16xf32>
    %164 = vector.broadcast %84 : vector<1x16xf32> to vector<8x16xf32>
    %165 = arith.mulf %163, %164 : vector<8x16xf32>
    %166 = vector.broadcast %85 : vector<1x16xf32> to vector<8x16xf32>
    %167 = arith.addf %165, %166 : vector<8x16xf32>
    %cst_99 = arith.constant 0.000000e+00 : f32
    %168 = vector.broadcast %cst_99 : f32 to vector<8x16xf32>
    %169 = arith.maximumf %167, %168 : vector<8x16xf32>
    %170 = arith.truncf %169 : vector<8x16xf32> to vector<8x16xbf16>
    %c0_100 = arith.constant 0 : index
    %c7_101 = arith.constant 7 : index
    %c0_102 = arith.constant 0 : index
    %c0_103 = arith.constant 0 : index
    %171 = vector.load %arg6[%c0_100, %c7_101, %c0_102, %c0_103] : memref<1x8x8x16xbf16, #tpu.memory_space<vmem>>, vector<1x1x8x16xbf16>
    %172 = vector.shape_cast %171 : vector<1x1x8x16xbf16> to vector<8x16xbf16>
    %173 = vector.shape_cast %170 : vector<8x16xbf16> to vector<1x1x8x16xbf16>
    tpu.vector_store %arg6[%c0_100, %c7_101, %c0_102, %c0_103], %173 {strides = array<i32>} : memref<1x8x8x16xbf16, #tpu.memory_space<vmem>>, vector<1x1x8x16xbf16>,
    return
  }
  func.func @transform_0(%arg0: i32, %arg1: i32) -> (i32, i32, i32, i32) {
    %c0_i32 = arith.constant 0 : i32
    %c0_i32_0 = arith.constant 0 : i32
    %c0_i32_1 = arith.constant 0 : i32
    %c0_i32_2 = arith.constant 0 : i32
    return %arg0, %c0_i32, %c0_i32_0, %c0_i32_1 : i32, i32, i32, i32
  }
  func.func @transform_1(%arg0: i32, %arg1: i32) -> (i32, i32, i32) {
    %c0_i32 = arith.constant 0 : i32
    %c0_i32_0 = arith.constant 0 : i32
    %c0_i32_1 = arith.constant 0 : i32
    %c0_i32_2 = arith.constant 0 : i32
    return %c0_i32, %c0_i32_0, %c0_i32_1 : i32, i32, i32
  }
  func.func @transform_2(%arg0: i32, %arg1: i32) -> (i32, i32) {
    %c0_i32 = arith.constant 0 : i32
    %c0_i32_0 = arith.constant 0 : i32
    %c0_i32_1 = arith.constant 0 : i32
    return %c0_i32, %c0_i32_0 : i32, i32
  }
  func.func @transform_3(%arg0: i32, %arg1: i32) -> (i32, i32) {
    %c0_i32 = arith.constant 0 : i32
    %c0_i32_0 = arith.constant 0 : i32
    %c0_i32_1 = arith.constant 0 : i32
    return %c0_i32, %c0_i32_0 : i32, i32
  }
  func.func @transform_4(%arg0: i32, %arg1: i32) -> (i32, i32, i32, i32) {
    %c0_i32 = arith.constant 0 : i32
    %c0_i32_0 = arith.constant 0 : i32
    %c0_i32_1 = arith.constant 0 : i32
    return %arg0, %arg1, %c0_i32, %c0_i32_0 : i32, i32, i32, i32
  }
}

module attributes {stable_mosaic.version = 11 : i64} {
  func.func @_gemm_bn_kernel(%arg0: i32, %arg1: memref<128x8xbf16, #tpu.memory_space<vmem>>, %arg2: memref<8x16xbf16, #tpu.memory_space<vmem>>, %arg3: memref<1x16xf32, #tpu.memory_space<vmem>>, %arg4: memref<1x16xf32, #tpu.memory_space<vmem>>, %arg5: memref<128x16xbf16, #tpu.memory_space<vmem>>) attributes {dimension_semantics = [#tpu.dimension_semantics<parallel>], iteration_bounds = array<i64: 1>, scalar_prefetch = 0 : i64, scratch_operands = 0 : i64, tpu.core_type = #tpu.core_type<tc>, window_params = [{transform_indices = @transform_0, window_bounds = array<i64: 128, 8>}, {pipeline_mode = #tpu.pipeline_mode<synchronous>, transform_indices = @transform_1, window_bounds = array<i64: 8, 16>}, {pipeline_mode = #tpu.pipeline_mode<synchronous>, transform_indices = @transform_2, window_bounds = array<i64: 1, 16>}, {pipeline_mode = #tpu.pipeline_mode<synchronous>, transform_indices = @transform_3, window_bounds = array<i64: 1, 16>}, {transform_indices = @transform_4, window_bounds = array<i64: 128, 16>}]} {
    %c0 = arith.constant 0 : index
    %c0_0 = arith.constant 0 : index
    %0 = vector.load %arg1[%c0, %c0_0] : memref<128x8xbf16, #tpu.memory_space<vmem>>, vector<128x8xbf16>
    %c0_1 = arith.constant 0 : index
    %c0_2 = arith.constant 0 : index
    %1 = vector.load %arg2[%c0_1, %c0_2] : memref<8x16xbf16, #tpu.memory_space<vmem>>, vector<8x16xbf16>
    %cst = arith.constant dense<0.000000e+00> : vector<128x16xf32>
    %2 = tpu.matmul %0, %1, %cst {dimension_numbers = #tpu.dot_dimension_numbers<[1], [0], [0], [1], [0, 0, 1, 1], [], []>} : vector<128x8xbf16>, vector<8x16xbf16>, vector<128x16xf32> -> vector<128x16xf32>
    %c0_3 = arith.constant 0 : index
    %c0_4 = arith.constant 0 : index
    %3 = vector.load %arg3[%c0_3, %c0_4] : memref<1x16xf32, #tpu.memory_space<vmem>>, vector<1x16xf32>
    %4 = vector.broadcast %3 : vector<1x16xf32> to vector<128x16xf32>
    %5 = arith.mulf %2, %4 : vector<128x16xf32>
    %c0_5 = arith.constant 0 : index
    %c0_6 = arith.constant 0 : index
    %6 = vector.load %arg4[%c0_5, %c0_6] : memref<1x16xf32, #tpu.memory_space<vmem>>, vector<1x16xf32>
    %7 = vector.broadcast %6 : vector<1x16xf32> to vector<128x16xf32>
    %8 = arith.addf %5, %7 : vector<128x16xf32>
    %9 = arith.truncf %8 : vector<128x16xf32> to vector<128x16xbf16>
    %c0_7 = arith.constant 0 : index
    %c0_8 = arith.constant 0 : index
    %10 = vector.load %arg5[%c0_7, %c0_8] : memref<128x16xbf16, #tpu.memory_space<vmem>>, vector<128x16xbf16>
    tpu.vector_store %arg5[%c0_7, %c0_8], %9 {strides = array<i32>} : memref<128x16xbf16, #tpu.memory_space<vmem>>, vector<128x16xbf16>,
    return
  }
  func.func @transform_0(%arg0: i32) -> (i32, i32) {
    %c0_i32 = arith.constant 0 : i32
    %c0_i32_0 = arith.constant 0 : i32
    return %arg0, %c0_i32 : i32, i32
  }
  func.func @transform_1(%arg0: i32) -> (i32, i32) {
    %c0_i32 = arith.constant 0 : i32
    %c0_i32_0 = arith.constant 0 : i32
    %c0_i32_1 = arith.constant 0 : i32
    return %c0_i32, %c0_i32_0 : i32, i32
  }
  func.func @transform_2(%arg0: i32) -> (i32, i32) {
    %c0_i32 = arith.constant 0 : i32
    %c0_i32_0 = arith.constant 0 : i32
    %c0_i32_1 = arith.constant 0 : i32
    return %c0_i32, %c0_i32_0 : i32, i32
  }
  func.func @transform_3(%arg0: i32) -> (i32, i32) {
    %c0_i32 = arith.constant 0 : i32
    %c0_i32_0 = arith.constant 0 : i32
    %c0_i32_1 = arith.constant 0 : i32
    return %c0_i32, %c0_i32_0 : i32, i32
  }
  func.func @transform_4(%arg0: i32) -> (i32, i32) {
    %c0_i32 = arith.constant 0 : i32
    %c0_i32_0 = arith.constant 0 : i32
    return %arg0, %c0_i32 : i32, i32
  }
}

module attributes {stable_mosaic.version = 11 : i64} {
  func.func @_conv3x3_bn_kernel(%arg0: i32, %arg1: i32, %arg2: memref<1x1x168x16xbf16, #tpu.memory_space<vmem>>, %arg3: memref<9x16x16xbf16, #tpu.memory_space<vmem>>, %arg4: memref<1x16xf32, #tpu.memory_space<vmem>>, %arg5: memref<1x16xf32, #tpu.memory_space<vmem>>, %arg6: memref<1x8x8x16xbf16, #tpu.memory_space<vmem>>, %arg7: memref<1x8x8x16xf32, #tpu.memory_space<vmem>>) attributes {dimension_semantics = [#tpu.dimension_semantics<parallel>, #tpu.dimension_semantics<arbitrary>], iteration_bounds = array<i64: 2, 1>, scalar_prefetch = 0 : i64, scratch_operands = 0 : i64, tpu.core_type = #tpu.core_type<tc>, window_params = [{transform_indices = @transform_0, window_bounds = array<i64: 1, 1, 168, 16>}, {pipeline_mode = #tpu.pipeline_mode<synchronous>, transform_indices = @transform_1, window_bounds = array<i64: 9, 16, 16>}, {pipeline_mode = #tpu.pipeline_mode<synchronous>, transform_indices = @transform_2, window_bounds = array<i64: 1, 16>}, {pipeline_mode = #tpu.pipeline_mode<synchronous>, transform_indices = @transform_3, window_bounds = array<i64: 1, 16>}, {transform_indices = @transform_4, window_bounds = array<i64: 1, 8, 8, 16>}, {transform_indices = @transform_5, window_bounds = array<i64: 1, 8, 8, 16>}]} {
    %c128_i32 = arith.constant 128 : i32
    %0 = arith.muli %arg1, %c128_i32 : i32
    %1 = tpu.assume_multiple %0, 16 : i32
    %c0_i32 = arith.constant 0 : i32
    %2 = arith.addi %1, %c0_i32 : i32
    %3 = tpu.assume_multiple %2, 16 : i32
    %c0 = arith.constant 0 : index
    %c0_0 = arith.constant 0 : index
    %4 = arith.index_cast %3 : i32 to index
    %c0_1 = arith.constant 0 : index
    %5 = vector.load %arg2[%c0, %c0_0, %4, %c0_1] : memref<1x1x168x16xbf16, #tpu.memory_space<vmem>>, vector<1x1x136x16xbf16>
    %6 = vector.shape_cast %5 : vector<1x1x136x16xbf16> to vector<136x16xbf16>
    %c0_2 = arith.constant 0 : index
    %c0_3 = arith.constant 0 : index
    %c0_4 = arith.constant 0 : index
    %7 = vector.load %arg3[%c0_2, %c0_3, %c0_4] : memref<9x16x16xbf16, #tpu.memory_space<vmem>>, vector<1x16x16xbf16>
    %8 = vector.shape_cast %7 : vector<1x16x16xbf16> to vector<16x16xbf16>
    %cst = arith.constant dense<0.000000e+00> : vector<136x16xf32>
    %9 = tpu.matmul %6, %8, %cst {dimension_numbers = #tpu.dot_dimension_numbers<[1], [0], [0], [1], [0, 0, 1, 1], [], []>} : vector<136x16xbf16>, vector<16x16xbf16>, vector<136x16xf32> -> vector<136x16xf32>
    %c16_i32 = arith.constant 16 : i32
    %10 = arith.addi %1, %c16_i32 : i32
    %11 = tpu.assume_multiple %10, 16 : i32
    %c0_5 = arith.constant 0 : index
    %c0_6 = arith.constant 0 : index
    %12 = arith.index_cast %11 : i32 to index
    %c0_7 = arith.constant 0 : index
    %13 = vector.load %arg2[%c0_5, %c0_6, %12, %c0_7] : memref<1x1x168x16xbf16, #tpu.memory_space<vmem>>, vector<1x1x136x16xbf16>
    %14 = vector.shape_cast %13 : vector<1x1x136x16xbf16> to vector<136x16xbf16>
    %c3 = arith.constant 3 : index
    %c0_8 = arith.constant 0 : index
    %c0_9 = arith.constant 0 : index
    %15 = vector.load %arg3[%c3, %c0_8, %c0_9] : memref<9x16x16xbf16, #tpu.memory_space<vmem>>, vector<1x16x16xbf16>
    %16 = vector.shape_cast %15 : vector<1x16x16xbf16> to vector<16x16xbf16>
    %cst_10 = arith.constant dense<0.000000e+00> : vector<136x16xf32>
    %17 = tpu.matmul %14, %16, %cst_10 {dimension_numbers = #tpu.dot_dimension_numbers<[1], [0], [0], [1], [0, 0, 1, 1], [], []>} : vector<136x16xbf16>, vector<16x16xbf16>, vector<136x16xf32> -> vector<136x16xf32>
    %18 = arith.addf %9, %17 : vector<136x16xf32>
    %c32_i32 = arith.constant 32 : i32
    %19 = arith.addi %1, %c32_i32 : i32
    %20 = tpu.assume_multiple %19, 16 : i32
    %c0_11 = arith.constant 0 : index
    %c0_12 = arith.constant 0 : index
    %21 = arith.index_cast %20 : i32 to index
    %c0_13 = arith.constant 0 : index
    %22 = vector.load %arg2[%c0_11, %c0_12, %21, %c0_13] : memref<1x1x168x16xbf16, #tpu.memory_space<vmem>>, vector<1x1x136x16xbf16>
    %23 = vector.shape_cast %22 : vector<1x1x136x16xbf16> to vector<136x16xbf16>
    %c6 = arith.constant 6 : index
    %c0_14 = arith.constant 0 : index
    %c0_15 = arith.constant 0 : index
    %24 = vector.load %arg3[%c6, %c0_14, %c0_15] : memref<9x16x16xbf16, #tpu.memory_space<vmem>>, vector<1x16x16xbf16>
    %25 = vector.shape_cast %24 : vector<1x16x16xbf16> to vector<16x16xbf16>
    %cst_16 = arith.constant dense<0.000000e+00> : vector<136x16xf32>
    %26 = tpu.matmul %23, %25, %cst_16 {dimension_numbers = #tpu.dot_dimension_numbers<[1], [0], [0], [1], [0, 0, 1, 1], [], []>} : vector<136x16xbf16>, vector<16x16xbf16>, vector<136x16xf32> -> vector<136x16xf32>
    %27 = arith.addf %18, %26 : vector<136x16xf32>
    %28 = vector.extract_strided_slice %27 {offsets = [0, 0], sizes = [128, 16], strides = [1, 1]} : vector<136x16xf32> to vector<128x16xf32>
    %c0_i32_17 = arith.constant 0 : i32
    %29 = arith.addi %1, %c0_i32_17 : i32
    %30 = tpu.assume_multiple %29, 16 : i32
    %c0_18 = arith.constant 0 : index
    %c0_19 = arith.constant 0 : index
    %31 = arith.index_cast %30 : i32 to index
    %c0_20 = arith.constant 0 : index
    %32 = vector.load %arg2[%c0_18, %c0_19, %31, %c0_20] : memref<1x1x168x16xbf16, #tpu.memory_space<vmem>>, vector<1x1x136x16xbf16>
    %33 = vector.shape_cast %32 : vector<1x1x136x16xbf16> to vector<136x16xbf16>
    %c1 = arith.constant 1 : index
    %c0_21 = arith.constant 0 : index
    %c0_22 = arith.constant 0 : index
    %34 = vector.load %arg3[%c1, %c0_21, %c0_22] : memref<9x16x16xbf16, #tpu.memory_space<vmem>>, vector<1x16x16xbf16>
    %35 = vector.shape_cast %34 : vector<1x16x16xbf16> to vector<16x16xbf16>
    %cst_23 = arith.constant dense<0.000000e+00> : vector<136x16xf32>
    %36 = tpu.matmul %33, %35, %cst_23 {dimension_numbers = #tpu.dot_dimension_numbers<[1], [0], [0], [1], [0, 0, 1, 1], [], []>} : vector<136x16xbf16>, vector<16x16xbf16>, vector<136x16xf32> -> vector<136x16xf32>
    %c16_i32_24 = arith.constant 16 : i32
    %37 = arith.addi %1, %c16_i32_24 : i32
    %38 = tpu.assume_multiple %37, 16 : i32
    %c0_25 = arith.constant 0 : index
    %c0_26 = arith.constant 0 : index
    %39 = arith.index_cast %38 : i32 to index
    %c0_27 = arith.constant 0 : index
    %40 = vector.load %arg2[%c0_25, %c0_26, %39, %c0_27] : memref<1x1x168x16xbf16, #tpu.memory_space<vmem>>, vector<1x1x136x16xbf16>
    %41 = vector.shape_cast %40 : vector<1x1x136x16xbf16> to vector<136x16xbf16>
    %c4 = arith.constant 4 : index
    %c0_28 = arith.constant 0 : index
    %c0_29 = arith.constant 0 : index
    %42 = vector.load %arg3[%c4, %c0_28, %c0_29] : memref<9x16x16xbf16, #tpu.memory_space<vmem>>, vector<1x16x16xbf16>
    %43 = vector.shape_cast %42 : vector<1x16x16xbf16> to vector<16x16xbf16>
    %cst_30 = arith.constant dense<0.000000e+00> : vector<136x16xf32>
    %44 = tpu.matmul %41, %43, %cst_30 {dimension_numbers = #tpu.dot_dimension_numbers<[1], [0], [0], [1], [0, 0, 1, 1], [], []>} : vector<136x16xbf16>, vector<16x16xbf16>, vector<136x16xf32> -> vector<136x16xf32>
    %45 = arith.addf %36, %44 : vector<136x16xf32>
    %c32_i32_31 = arith.constant 32 : i32
    %46 = arith.addi %1, %c32_i32_31 : i32
    %47 = tpu.assume_multiple %46, 16 : i32
    %c0_32 = arith.constant 0 : index
    %c0_33 = arith.constant 0 : index
    %48 = arith.index_cast %47 : i32 to index
    %c0_34 = arith.constant 0 : index
    %49 = vector.load %arg2[%c0_32, %c0_33, %48, %c0_34] : memref<1x1x168x16xbf16, #tpu.memory_space<vmem>>, vector<1x1x136x16xbf16>
    %50 = vector.shape_cast %49 : vector<1x1x136x16xbf16> to vector<136x16xbf16>
    %c7 = arith.constant 7 : index
    %c0_35 = arith.constant 0 : index
    %c0_36 = arith.constant 0 : index
    %51 = vector.load %arg3[%c7, %c0_35, %c0_36] : memref<9x16x16xbf16, #tpu.memory_space<vmem>>, vector<1x16x16xbf16>
    %52 = vector.shape_cast %51 : vector<1x16x16xbf16> to vector<16x16xbf16>
    %cst_37 = arith.constant dense<0.000000e+00> : vector<136x16xf32>
    %53 = tpu.matmul %50, %52, %cst_37 {dimension_numbers = #tpu.dot_dimension_numbers<[1], [0], [0], [1], [0, 0, 1, 1], [], []>} : vector<136x16xbf16>, vector<16x16xbf16>, vector<136x16xf32> -> vector<136x16xf32>
    %54 = arith.addf %45, %53 : vector<136x16xf32>
    %55 = vector.extract_strided_slice %54 {offsets = [1, 0], sizes = [128, 16], strides = [1, 1]} : vector<136x16xf32> to vector<128x16xf32>
    %56 = arith.addf %28, %55 : vector<128x16xf32>
    %c0_i32_38 = arith.constant 0 : i32
    %57 = arith.addi %1, %c0_i32_38 : i32
    %58 = tpu.assume_multiple %57, 16 : i32
    %c0_39 = arith.constant 0 : index
    %c0_40 = arith.constant 0 : index
    %59 = arith.index_cast %58 : i32 to index
    %c0_41 = arith.constant 0 : index
    %60 = vector.load %arg2[%c0_39, %c0_40, %59, %c0_41] : memref<1x1x168x16xbf16, #tpu.memory_space<vmem>>, vector<1x1x136x16xbf16>
    %61 = vector.shape_cast %60 : vector<1x1x136x16xbf16> to vector<136x16xbf16>
    %c2 = arith.constant 2 : index
    %c0_42 = arith.constant 0 : index
    %c0_43 = arith.constant 0 : index
    %62 = vector.load %arg3[%c2, %c0_42, %c0_43] : memref<9x16x16xbf16, #tpu.memory_space<vmem>>, vector<1x16x16xbf16>
    %63 = vector.shape_cast %62 : vector<1x16x16xbf16> to vector<16x16xbf16>
    %cst_44 = arith.constant dense<0.000000e+00> : vector<136x16xf32>
    %64 = tpu.matmul %61, %63, %cst_44 {dimension_numbers = #tpu.dot_dimension_numbers<[1], [0], [0], [1], [0, 0, 1, 1], [], []>} : vector<136x16xbf16>, vector<16x16xbf16>, vector<136x16xf32> -> vector<136x16xf32>
    %c16_i32_45 = arith.constant 16 : i32
    %65 = arith.addi %1, %c16_i32_45 : i32
    %66 = tpu.assume_multiple %65, 16 : i32
    %c0_46 = arith.constant 0 : index
    %c0_47 = arith.constant 0 : index
    %67 = arith.index_cast %66 : i32 to index
    %c0_48 = arith.constant 0 : index
    %68 = vector.load %arg2[%c0_46, %c0_47, %67, %c0_48] : memref<1x1x168x16xbf16, #tpu.memory_space<vmem>>, vector<1x1x136x16xbf16>
    %69 = vector.shape_cast %68 : vector<1x1x136x16xbf16> to vector<136x16xbf16>
    %c5 = arith.constant 5 : index
    %c0_49 = arith.constant 0 : index
    %c0_50 = arith.constant 0 : index
    %70 = vector.load %arg3[%c5, %c0_49, %c0_50] : memref<9x16x16xbf16, #tpu.memory_space<vmem>>, vector<1x16x16xbf16>
    %71 = vector.shape_cast %70 : vector<1x16x16xbf16> to vector<16x16xbf16>
    %cst_51 = arith.constant dense<0.000000e+00> : vector<136x16xf32>
    %72 = tpu.matmul %69, %71, %cst_51 {dimension_numbers = #tpu.dot_dimension_numbers<[1], [0], [0], [1], [0, 0, 1, 1], [], []>} : vector<136x16xbf16>, vector<16x16xbf16>, vector<136x16xf32> -> vector<136x16xf32>
    %73 = arith.addf %64, %72 : vector<136x16xf32>
    %c32_i32_52 = arith.constant 32 : i32
    %74 = arith.addi %1, %c32_i32_52 : i32
    %75 = tpu.assume_multiple %74, 16 : i32
    %c0_53 = arith.constant 0 : index
    %c0_54 = arith.constant 0 : index
    %76 = arith.index_cast %75 : i32 to index
    %c0_55 = arith.constant 0 : index
    %77 = vector.load %arg2[%c0_53, %c0_54, %76, %c0_55] : memref<1x1x168x16xbf16, #tpu.memory_space<vmem>>, vector<1x1x136x16xbf16>
    %78 = vector.shape_cast %77 : vector<1x1x136x16xbf16> to vector<136x16xbf16>
    %c8 = arith.constant 8 : index
    %c0_56 = arith.constant 0 : index
    %c0_57 = arith.constant 0 : index
    %79 = vector.load %arg3[%c8, %c0_56, %c0_57] : memref<9x16x16xbf16, #tpu.memory_space<vmem>>, vector<1x16x16xbf16>
    %80 = vector.shape_cast %79 : vector<1x16x16xbf16> to vector<16x16xbf16>
    %cst_58 = arith.constant dense<0.000000e+00> : vector<136x16xf32>
    %81 = tpu.matmul %78, %80, %cst_58 {dimension_numbers = #tpu.dot_dimension_numbers<[1], [0], [0], [1], [0, 0, 1, 1], [], []>} : vector<136x16xbf16>, vector<16x16xbf16>, vector<136x16xf32> -> vector<136x16xf32>
    %82 = arith.addf %73, %81 : vector<136x16xf32>
    %83 = vector.extract_strided_slice %82 {offsets = [2, 0], sizes = [128, 16], strides = [1, 1]} : vector<136x16xf32> to vector<128x16xf32>
    %84 = arith.addf %56, %83 : vector<128x16xf32>
    %c0_59 = arith.constant 0 : index
    %c0_60 = arith.constant 0 : index
    %85 = vector.load %arg4[%c0_59, %c0_60] : memref<1x16xf32, #tpu.memory_space<vmem>>, vector<1x16xf32>
    %c0_61 = arith.constant 0 : index
    %c0_62 = arith.constant 0 : index
    %86 = vector.load %arg5[%c0_61, %c0_62] : memref<1x16xf32, #tpu.memory_space<vmem>>, vector<1x16xf32>
    %87 = vector.extract_strided_slice %84 {offsets = [0, 0], sizes = [8, 16], strides = [1, 1]} : vector<128x16xf32> to vector<8x16xf32>
    %88 = vector.broadcast %85 : vector<1x16xf32> to vector<8x16xf32>
    %89 = arith.mulf %87, %88 : vector<8x16xf32>
    %90 = vector.broadcast %86 : vector<1x16xf32> to vector<8x16xf32>
    %91 = arith.addf %89, %90 : vector<8x16xf32>
    %c0_63 = arith.constant 0 : index
    %c0_64 = arith.constant 0 : index
    %c0_65 = arith.constant 0 : index
    %c0_66 = arith.constant 0 : index
    %92 = vector.load %arg6[%c0_63, %c0_64, %c0_65, %c0_66] : memref<1x8x8x16xbf16, #tpu.memory_space<vmem>>, vector<1x1x8x16xbf16>
    %93 = vector.shape_cast %92 : vector<1x1x8x16xbf16> to vector<8x16xbf16>
    %94 = arith.extf %93 : vector<8x16xbf16> to vector<8x16xf32>
    %95 = arith.addf %91, %94 : vector<8x16xf32>
    %cst_67 = arith.constant 0.000000e+00 : f32
    %96 = vector.broadcast %cst_67 : f32 to vector<8x16xf32>
    %97 = arith.maximumf %95, %96 : vector<8x16xf32>
    %c0_68 = arith.constant 0 : index
    %c0_69 = arith.constant 0 : index
    %c0_70 = arith.constant 0 : index
    %c0_71 = arith.constant 0 : index
    %98 = vector.load %arg7[%c0_68, %c0_69, %c0_70, %c0_71] : memref<1x8x8x16xf32, #tpu.memory_space<vmem>>, vector<1x1x8x16xf32>
    %99 = vector.shape_cast %98 : vector<1x1x8x16xf32> to vector<8x16xf32>
    %100 = vector.shape_cast %97 : vector<8x16xf32> to vector<1x1x8x16xf32>
    tpu.vector_store %arg7[%c0_68, %c0_69, %c0_70, %c0_71], %100 {strides = array<i32>} : memref<1x8x8x16xf32, #tpu.memory_space<vmem>>, vector<1x1x8x16xf32>,
    %101 = vector.extract_strided_slice %84 {offsets = [16, 0], sizes = [8, 16], strides = [1, 1]} : vector<128x16xf32> to vector<8x16xf32>
    %102 = vector.broadcast %85 : vector<1x16xf32> to vector<8x16xf32>
    %103 = arith.mulf %101, %102 : vector<8x16xf32>
    %104 = vector.broadcast %86 : vector<1x16xf32> to vector<8x16xf32>
    %105 = arith.addf %103, %104 : vector<8x16xf32>
    %c0_72 = arith.constant 0 : index
    %c1_73 = arith.constant 1 : index
    %c0_74 = arith.constant 0 : index
    %c0_75 = arith.constant 0 : index
    %106 = vector.load %arg6[%c0_72, %c1_73, %c0_74, %c0_75] : memref<1x8x8x16xbf16, #tpu.memory_space<vmem>>, vector<1x1x8x16xbf16>
    %107 = vector.shape_cast %106 : vector<1x1x8x16xbf16> to vector<8x16xbf16>
    %108 = arith.extf %107 : vector<8x16xbf16> to vector<8x16xf32>
    %109 = arith.addf %105, %108 : vector<8x16xf32>
    %cst_76 = arith.constant 0.000000e+00 : f32
    %110 = vector.broadcast %cst_76 : f32 to vector<8x16xf32>
    %111 = arith.maximumf %109, %110 : vector<8x16xf32>
    %c0_77 = arith.constant 0 : index
    %c1_78 = arith.constant 1 : index
    %c0_79 = arith.constant 0 : index
    %c0_80 = arith.constant 0 : index
    %112 = vector.load %arg7[%c0_77, %c1_78, %c0_79, %c0_80] : memref<1x8x8x16xf32, #tpu.memory_space<vmem>>, vector<1x1x8x16xf32>
    %113 = vector.shape_cast %112 : vector<1x1x8x16xf32> to vector<8x16xf32>
    %114 = vector.shape_cast %111 : vector<8x16xf32> to vector<1x1x8x16xf32>
    tpu.vector_store %arg7[%c0_77, %c1_78, %c0_79, %c0_80], %114 {strides = array<i32>} : memref<1x8x8x16xf32, #tpu.memory_space<vmem>>, vector<1x1x8x16xf32>,
    %115 = vector.extract_strided_slice %84 {offsets = [32, 0], sizes = [8, 16], strides = [1, 1]} : vector<128x16xf32> to vector<8x16xf32>
    %116 = vector.broadcast %85 : vector<1x16xf32> to vector<8x16xf32>
    %117 = arith.mulf %115, %116 : vector<8x16xf32>
    %118 = vector.broadcast %86 : vector<1x16xf32> to vector<8x16xf32>
    %119 = arith.addf %117, %118 : vector<8x16xf32>
    %c0_81 = arith.constant 0 : index
    %c2_82 = arith.constant 2 : index
    %c0_83 = arith.constant 0 : index
    %c0_84 = arith.constant 0 : index
    %120 = vector.load %arg6[%c0_81, %c2_82, %c0_83, %c0_84] : memref<1x8x8x16xbf16, #tpu.memory_space<vmem>>, vector<1x1x8x16xbf16>
    %121 = vector.shape_cast %120 : vector<1x1x8x16xbf16> to vector<8x16xbf16>
    %122 = arith.extf %121 : vector<8x16xbf16> to vector<8x16xf32>
    %123 = arith.addf %119, %122 : vector<8x16xf32>
    %cst_85 = arith.constant 0.000000e+00 : f32
    %124 = vector.broadcast %cst_85 : f32 to vector<8x16xf32>
    %125 = arith.maximumf %123, %124 : vector<8x16xf32>
    %c0_86 = arith.constant 0 : index
    %c2_87 = arith.constant 2 : index
    %c0_88 = arith.constant 0 : index
    %c0_89 = arith.constant 0 : index
    %126 = vector.load %arg7[%c0_86, %c2_87, %c0_88, %c0_89] : memref<1x8x8x16xf32, #tpu.memory_space<vmem>>, vector<1x1x8x16xf32>
    %127 = vector.shape_cast %126 : vector<1x1x8x16xf32> to vector<8x16xf32>
    %128 = vector.shape_cast %125 : vector<8x16xf32> to vector<1x1x8x16xf32>
    tpu.vector_store %arg7[%c0_86, %c2_87, %c0_88, %c0_89], %128 {strides = array<i32>} : memref<1x8x8x16xf32, #tpu.memory_space<vmem>>, vector<1x1x8x16xf32>,
    %129 = vector.extract_strided_slice %84 {offsets = [48, 0], sizes = [8, 16], strides = [1, 1]} : vector<128x16xf32> to vector<8x16xf32>
    %130 = vector.broadcast %85 : vector<1x16xf32> to vector<8x16xf32>
    %131 = arith.mulf %129, %130 : vector<8x16xf32>
    %132 = vector.broadcast %86 : vector<1x16xf32> to vector<8x16xf32>
    %133 = arith.addf %131, %132 : vector<8x16xf32>
    %c0_90 = arith.constant 0 : index
    %c3_91 = arith.constant 3 : index
    %c0_92 = arith.constant 0 : index
    %c0_93 = arith.constant 0 : index
    %134 = vector.load %arg6[%c0_90, %c3_91, %c0_92, %c0_93] : memref<1x8x8x16xbf16, #tpu.memory_space<vmem>>, vector<1x1x8x16xbf16>
    %135 = vector.shape_cast %134 : vector<1x1x8x16xbf16> to vector<8x16xbf16>
    %136 = arith.extf %135 : vector<8x16xbf16> to vector<8x16xf32>
    %137 = arith.addf %133, %136 : vector<8x16xf32>
    %cst_94 = arith.constant 0.000000e+00 : f32
    %138 = vector.broadcast %cst_94 : f32 to vector<8x16xf32>
    %139 = arith.maximumf %137, %138 : vector<8x16xf32>
    %c0_95 = arith.constant 0 : index
    %c3_96 = arith.constant 3 : index
    %c0_97 = arith.constant 0 : index
    %c0_98 = arith.constant 0 : index
    %140 = vector.load %arg7[%c0_95, %c3_96, %c0_97, %c0_98] : memref<1x8x8x16xf32, #tpu.memory_space<vmem>>, vector<1x1x8x16xf32>
    %141 = vector.shape_cast %140 : vector<1x1x8x16xf32> to vector<8x16xf32>
    %142 = vector.shape_cast %139 : vector<8x16xf32> to vector<1x1x8x16xf32>
    tpu.vector_store %arg7[%c0_95, %c3_96, %c0_97, %c0_98], %142 {strides = array<i32>} : memref<1x8x8x16xf32, #tpu.memory_space<vmem>>, vector<1x1x8x16xf32>,
    %143 = vector.extract_strided_slice %84 {offsets = [64, 0], sizes = [8, 16], strides = [1, 1]} : vector<128x16xf32> to vector<8x16xf32>
    %144 = vector.broadcast %85 : vector<1x16xf32> to vector<8x16xf32>
    %145 = arith.mulf %143, %144 : vector<8x16xf32>
    %146 = vector.broadcast %86 : vector<1x16xf32> to vector<8x16xf32>
    %147 = arith.addf %145, %146 : vector<8x16xf32>
    %c0_99 = arith.constant 0 : index
    %c4_100 = arith.constant 4 : index
    %c0_101 = arith.constant 0 : index
    %c0_102 = arith.constant 0 : index
    %148 = vector.load %arg6[%c0_99, %c4_100, %c0_101, %c0_102] : memref<1x8x8x16xbf16, #tpu.memory_space<vmem>>, vector<1x1x8x16xbf16>
    %149 = vector.shape_cast %148 : vector<1x1x8x16xbf16> to vector<8x16xbf16>
    %150 = arith.extf %149 : vector<8x16xbf16> to vector<8x16xf32>
    %151 = arith.addf %147, %150 : vector<8x16xf32>
    %cst_103 = arith.constant 0.000000e+00 : f32
    %152 = vector.broadcast %cst_103 : f32 to vector<8x16xf32>
    %153 = arith.maximumf %151, %152 : vector<8x16xf32>
    %c0_104 = arith.constant 0 : index
    %c4_105 = arith.constant 4 : index
    %c0_106 = arith.constant 0 : index
    %c0_107 = arith.constant 0 : index
    %154 = vector.load %arg7[%c0_104, %c4_105, %c0_106, %c0_107] : memref<1x8x8x16xf32, #tpu.memory_space<vmem>>, vector<1x1x8x16xf32>
    %155 = vector.shape_cast %154 : vector<1x1x8x16xf32> to vector<8x16xf32>
    %156 = vector.shape_cast %153 : vector<8x16xf32> to vector<1x1x8x16xf32>
    tpu.vector_store %arg7[%c0_104, %c4_105, %c0_106, %c0_107], %156 {strides = array<i32>} : memref<1x8x8x16xf32, #tpu.memory_space<vmem>>, vector<1x1x8x16xf32>,
    %157 = vector.extract_strided_slice %84 {offsets = [80, 0], sizes = [8, 16], strides = [1, 1]} : vector<128x16xf32> to vector<8x16xf32>
    %158 = vector.broadcast %85 : vector<1x16xf32> to vector<8x16xf32>
    %159 = arith.mulf %157, %158 : vector<8x16xf32>
    %160 = vector.broadcast %86 : vector<1x16xf32> to vector<8x16xf32>
    %161 = arith.addf %159, %160 : vector<8x16xf32>
    %c0_108 = arith.constant 0 : index
    %c5_109 = arith.constant 5 : index
    %c0_110 = arith.constant 0 : index
    %c0_111 = arith.constant 0 : index
    %162 = vector.load %arg6[%c0_108, %c5_109, %c0_110, %c0_111] : memref<1x8x8x16xbf16, #tpu.memory_space<vmem>>, vector<1x1x8x16xbf16>
    %163 = vector.shape_cast %162 : vector<1x1x8x16xbf16> to vector<8x16xbf16>
    %164 = arith.extf %163 : vector<8x16xbf16> to vector<8x16xf32>
    %165 = arith.addf %161, %164 : vector<8x16xf32>
    %cst_112 = arith.constant 0.000000e+00 : f32
    %166 = vector.broadcast %cst_112 : f32 to vector<8x16xf32>
    %167 = arith.maximumf %165, %166 : vector<8x16xf32>
    %c0_113 = arith.constant 0 : index
    %c5_114 = arith.constant 5 : index
    %c0_115 = arith.constant 0 : index
    %c0_116 = arith.constant 0 : index
    %168 = vector.load %arg7[%c0_113, %c5_114, %c0_115, %c0_116] : memref<1x8x8x16xf32, #tpu.memory_space<vmem>>, vector<1x1x8x16xf32>
    %169 = vector.shape_cast %168 : vector<1x1x8x16xf32> to vector<8x16xf32>
    %170 = vector.shape_cast %167 : vector<8x16xf32> to vector<1x1x8x16xf32>
    tpu.vector_store %arg7[%c0_113, %c5_114, %c0_115, %c0_116], %170 {strides = array<i32>} : memref<1x8x8x16xf32, #tpu.memory_space<vmem>>, vector<1x1x8x16xf32>,
    %171 = vector.extract_strided_slice %84 {offsets = [96, 0], sizes = [8, 16], strides = [1, 1]} : vector<128x16xf32> to vector<8x16xf32>
    %172 = vector.broadcast %85 : vector<1x16xf32> to vector<8x16xf32>
    %173 = arith.mulf %171, %172 : vector<8x16xf32>
    %174 = vector.broadcast %86 : vector<1x16xf32> to vector<8x16xf32>
    %175 = arith.addf %173, %174 : vector<8x16xf32>
    %c0_117 = arith.constant 0 : index
    %c6_118 = arith.constant 6 : index
    %c0_119 = arith.constant 0 : index
    %c0_120 = arith.constant 0 : index
    %176 = vector.load %arg6[%c0_117, %c6_118, %c0_119, %c0_120] : memref<1x8x8x16xbf16, #tpu.memory_space<vmem>>, vector<1x1x8x16xbf16>
    %177 = vector.shape_cast %176 : vector<1x1x8x16xbf16> to vector<8x16xbf16>
    %178 = arith.extf %177 : vector<8x16xbf16> to vector<8x16xf32>
    %179 = arith.addf %175, %178 : vector<8x16xf32>
    %cst_121 = arith.constant 0.000000e+00 : f32
    %180 = vector.broadcast %cst_121 : f32 to vector<8x16xf32>
    %181 = arith.maximumf %179, %180 : vector<8x16xf32>
    %c0_122 = arith.constant 0 : index
    %c6_123 = arith.constant 6 : index
    %c0_124 = arith.constant 0 : index
    %c0_125 = arith.constant 0 : index
    %182 = vector.load %arg7[%c0_122, %c6_123, %c0_124, %c0_125] : memref<1x8x8x16xf32, #tpu.memory_space<vmem>>, vector<1x1x8x16xf32>
    %183 = vector.shape_cast %182 : vector<1x1x8x16xf32> to vector<8x16xf32>
    %184 = vector.shape_cast %181 : vector<8x16xf32> to vector<1x1x8x16xf32>
    tpu.vector_store %arg7[%c0_122, %c6_123, %c0_124, %c0_125], %184 {strides = array<i32>} : memref<1x8x8x16xf32, #tpu.memory_space<vmem>>, vector<1x1x8x16xf32>,
    %185 = vector.extract_strided_slice %84 {offsets = [112, 0], sizes = [8, 16], strides = [1, 1]} : vector<128x16xf32> to vector<8x16xf32>
    %186 = vector.broadcast %85 : vector<1x16xf32> to vector<8x16xf32>
    %187 = arith.mulf %185, %186 : vector<8x16xf32>
    %188 = vector.broadcast %86 : vector<1x16xf32> to vector<8x16xf32>
    %189 = arith.addf %187, %188 : vector<8x16xf32>
    %c0_126 = arith.constant 0 : index
    %c7_127 = arith.constant 7 : index
    %c0_128 = arith.constant 0 : index
    %c0_129 = arith.constant 0 : index
    %190 = vector.load %arg6[%c0_126, %c7_127, %c0_128, %c0_129] : memref<1x8x8x16xbf16, #tpu.memory_space<vmem>>, vector<1x1x8x16xbf16>
    %191 = vector.shape_cast %190 : vector<1x1x8x16xbf16> to vector<8x16xbf16>
    %192 = arith.extf %191 : vector<8x16xbf16> to vector<8x16xf32>
    %193 = arith.addf %189, %192 : vector<8x16xf32>
    %cst_130 = arith.constant 0.000000e+00 : f32
    %194 = vector.broadcast %cst_130 : f32 to vector<8x16xf32>
    %195 = arith.maximumf %193, %194 : vector<8x16xf32>
    %c0_131 = arith.constant 0 : index
    %c7_132 = arith.constant 7 : index
    %c0_133 = arith.constant 0 : index
    %c0_134 = arith.constant 0 : index
    %196 = vector.load %arg7[%c0_131, %c7_132, %c0_133, %c0_134] : memref<1x8x8x16xf32, #tpu.memory_space<vmem>>, vector<1x1x8x16xf32>
    %197 = vector.shape_cast %196 : vector<1x1x8x16xf32> to vector<8x16xf32>
    %198 = vector.shape_cast %195 : vector<8x16xf32> to vector<1x1x8x16xf32>
    tpu.vector_store %arg7[%c0_131, %c7_132, %c0_133, %c0_134], %198 {strides = array<i32>} : memref<1x8x8x16xf32, #tpu.memory_space<vmem>>, vector<1x1x8x16xf32>,
    return
  }
  func.func @transform_0(%arg0: i32, %arg1: i32) -> (i32, i32, i32, i32) {
    %c0_i32 = arith.constant 0 : i32
    %c0_i32_0 = arith.constant 0 : i32
    %c0_i32_1 = arith.constant 0 : i32
    %c0_i32_2 = arith.constant 0 : i32
    return %arg0, %c0_i32, %c0_i32_0, %c0_i32_1 : i32, i32, i32, i32
  }
  func.func @transform_1(%arg0: i32, %arg1: i32) -> (i32, i32, i32) {
    %c0_i32 = arith.constant 0 : i32
    %c0_i32_0 = arith.constant 0 : i32
    %c0_i32_1 = arith.constant 0 : i32
    %c0_i32_2 = arith.constant 0 : i32
    return %c0_i32, %c0_i32_0, %c0_i32_1 : i32, i32, i32
  }
  func.func @transform_2(%arg0: i32, %arg1: i32) -> (i32, i32) {
    %c0_i32 = arith.constant 0 : i32
    %c0_i32_0 = arith.constant 0 : i32
    %c0_i32_1 = arith.constant 0 : i32
    return %c0_i32, %c0_i32_0 : i32, i32
  }
  func.func @transform_3(%arg0: i32, %arg1: i32) -> (i32, i32) {
    %c0_i32 = arith.constant 0 : i32
    %c0_i32_0 = arith.constant 0 : i32
    %c0_i32_1 = arith.constant 0 : i32
    return %c0_i32, %c0_i32_0 : i32, i32
  }
  func.func @transform_4(%arg0: i32, %arg1: i32) -> (i32, i32, i32, i32) {
    %c0_i32 = arith.constant 0 : i32
    %c0_i32_0 = arith.constant 0 : i32
    %c0_i32_1 = arith.constant 0 : i32
    return %arg0, %arg1, %c0_i32, %c0_i32_0 : i32, i32, i32, i32
  }
  func.func @transform_5(%arg0: i32, %arg1: i32) -> (i32, i32, i32, i32) {
    %c0_i32 = arith.constant 0 : i32
    %c0_i32_0 = arith.constant 0 : i32
    %c0_i32_1 = arith.constant 0 : i32
    return %arg0, %arg1, %c0_i32, %c0_i32_0 : i32, i32, i32, i32
  }
}

</mosaic_0001>

<bundles_post_ra>
// kernel: basic_block_forward.3
= control target key start
LH: loop header
LB: loop body
LE: loop exit
PB: predicated region body
PF: predicated region fallthrough
CT: control target
= control target key end

     0   :  { %vm100_vm0 = vcmask 1043456   ;;  %vm75_vm1 = vcmask 64512   ;;  %vm209_vm2 = vcmask 125952   ;;  %s449_s1 = inlined_call_operand.vmem [shape: bf16[8,16], index: 1, kind: input, shape index: {}]   ;;  %s450_s0 = inlined_call_operand.vmem [shape: bf16[128,8], index: 0, kind: input, shape index: {}]   ;;  %s451_s2 = inlined_call_operand.vmem [shape: f32[1,16], index: 2, kind: input, shape index: {}]   ;;  %s452_s3 = inlined_call_operand.vmem [shape: f32[1,16], index: 3, kind: input, shape index: {}]   ;;  %s453_s4 = inlined_call_operand.vmem [shape: bf16[128,16], index: 4, kind: output, shape index: {}]  }
   0x1   :  { %v34_v0 = vld [vmem:[%s449_s1] sm:$0xf]  ;;  %v272_v3 = vld [vmem:[%s450_s0 + $0x10] sm:$0xff]  ;;  %v271_v6 = vld [vmem:[%s450_s0 + $0x8] sm:$0xff] }
   0x2   :  { %v102_v1 = vsel %vm100_vm0, %v34_v0, 0  ;;  %v270_v2 = vld [vmem:[%s450_s0] sm:$0xff]  ;;  %v276_v5 = vld [vmem:[%s450_s0 + $0x30] sm:$0xff]  ;;  %v273_v7 = vld [vmem:[%s450_s0 + $0x18] sm:$0xff] }
   0x3   :  { %111 = vmatpush.bf16.msra.mxu0 %v102_v1  ;;  %278 = vmatpush.bf16.msra.mxu1 %v102_v1  ;;  %v274_v4 = vld [vmem:[%s450_s0 + $0x20] sm:$0xff]  ;;  %v275_v8 = vld [vmem:[%s450_s0 + $0x28] sm:$0xff]  ;;  %v277_v9 = vld [vmem:[%s450_s0 + $0x38] sm:$0xff] }
   0x4   :  { %279 = vmatpush.bf16.msra.mxu2 %v102_v1  ;;  %280 = vmatpush.bf16.msra.mxu3 %v102_v1  ;;  %v346_v10 = vld [vmem:[%s451_s2] ss:$0 sm:$0xff] }
   0x5   :  { %v351_v11 = vld [vmem:[%s452_s3] ss:$0 sm:$0xff] }
   0x6   :  { %262 = vmatmul.msk.bf16.vlgmr.msra.gmra.mxu0 %vm75_vm1, %v270_v2  ;;  %264 = vmatmul.msk.bf16.vlgmr.msra.gmra.mxu1 %vm75_vm1, %v272_v3 }
   0x7   :  { %266 = vmatmul.msk.bf16.vlgmr.msra.gmra.mxu2 %vm75_vm1, %v274_v4  ;;  %268 = vmatmul.msk.bf16.vlgmr.msra.gmra.mxu3 %vm75_vm1, %v276_v5 }
  0x16   :  { %263 = vmatmul.msk.bf16.gmra.mxu0 %vm75_vm1, %v271_v6  ;;  %265 = vmatmul.msk.bf16.gmra.mxu1 %vm75_vm1, %v273_v7 }
  0x17   :  { %267 = vmatmul.msk.bf16.gmra.mxu2 %vm75_vm1, %v275_v8  ;;  %269 = vmatmul.msk.bf16.gmra.mxu3 %vm75_vm1, %v277_v9 }
  0x83   :  { %v113_v12 = vpop.f32.mrf.mxu0  ;;  %v123_v13 = vpop.f32.mrf.mxu1 }
  0x84   :  { %v157_v14 = vmul.f32 %v346_v10, %v113_v12  ;;  %v161_v15 = vmul.f32 %v346_v10, %v123_v13 }
  0x86   :  { %v177_v16 = vadd.f32 %v351_v11, %v157_v14  ;;  %v181_v17 = vadd.f32 %v351_v11, %v161_v15 }
  0x88   :  { %v193_v18 = vpack.c.bf16 %v177_v16, %v177_v16  ;;  %v197_v19 = vpack.c.bf16 %v181_v17, %v181_v17 }
  0x8a   :  { %210 = vst.msk [vmem:[%s453_s4] sm:$0xf] %vm209_vm2, %v193_v18  ;;  %v133_v20 = vpop.f32.mrf.mxu2  ;;  %v143_v21 = vpop.f32.mrf.mxu3 }
  0x8b   :  { %214 = vst.msk [vmem:[%s453_s4 + $0x10] sm:$0xf] %vm209_vm2, %v197_v19  ;;  %v165_v22 = vmul.f32 %v346_v10, %v133_v20  ;;  %v169_v23 = vmul.f32 %v346_v10, %v143_v21  ;;  %v115_v24 = vpop.f32.mrf.mxu0  ;;  %v125_v25 = vpop.f32.mrf.mxu1 }
  0x8c   :  { %v158_v26 = vmul.f32 %v346_v10, %v115_v24  ;;  %v162_v27 = vmul.f32 %v346_v10, %v125_v25 }
  0x8d   :  { %v185_v28 = vadd.f32 %v351_v11, %v165_v22  ;;  %v189_v29 = vadd.f32 %v351_v11, %v169_v23 }
  0x8e   :  { %v178_v30 = vadd.f32 %v351_v11, %v158_v26  ;;  %v182_v31 = vadd.f32 %v351_v11, %v162_v27 }
  0x8f   :  { %v201_v32 = vpack.c.bf16 %v185_v28, %v185_v28  ;;  %v205_v33 = vpack.c.bf16 %v189_v29, %v189_v29 }
  0x90   :  { %v194_v34 = vpack.c.bf16 %v178_v30, %v178_v30  ;;  %v198_v35 = vpack.c.bf16 %v182_v31, %v182_v31 }
  0x91   :  { %218 = vst.msk [vmem:[%s453_s4 + $0x20] sm:$0xf] %vm209_vm2, %v201_v32 }
  0x92   :  { %222 = vst.msk [vmem:[%s453_s4 + $0x30] sm:$0xf] %vm209_vm2, %v205_v33  ;;  %v135_v36 = vpop.f32.mrf.mxu2  ;;  %v145_v37 = vpop.f32.mrf.mxu3 }
  0x93   :  { %211 = vst.msk [vmem:[%s453_s4 + $0x4] sm:$0xf] %vm209_vm2, %v194_v34  ;;  %v166_v38 = vmul.f32 %v346_v10, %v135_v36  ;;  %v170_v39 = vmul.f32 %v346_v10, %v145_v37  ;;  %v118_v40 = vpop.f32.mrf.mxu0  ;;  %v128_v41 = vpop.f32.mrf.mxu1 }
  0x94   :  { %215 = vst.msk [vmem:[%s453_s4 + $0x14] sm:$0xf] %vm209_vm2, %v198_v35  ;;  %v159_v42 = vmul.f32 %v346_v10, %v118_v40  ;;  %v163_v43 = vmul.f32 %v346_v10, %v128_v41 }
  0x95   :  { %v186_v44 = vadd.f32 %v351_v11, %v166_v38  ;;  %v190_v45 = vadd.f32 %v351_v11, %v170_v39 }
  0x96   :  { %v179_v46 = vadd.f32 %v351_v11, %v159_v42  ;;  %v183_v47 = vadd.f32 %v351_v11, %v163_v43 }
  0x97   :  { %v202_v48 = vpack.c.bf16 %v186_v44, %v186_v44  ;;  %v206_v49 = vpack.c.bf16 %v190_v45, %v190_v45 }
  0x98   :  { %v195_v50 = vpack.c.bf16 %v179_v46, %v179_v46  ;;  %v199_v51 = vpack.c.bf16 %v183_v47, %v183_v47 }
  0x99   :  { %219 = vst.msk [vmem:[%s453_s4 + $0x24] sm:$0xf] %vm209_vm2, %v202_v48 }
  0x9a   :  { %223 = vst.msk [vmem:[%s453_s4 + $0x34] sm:$0xf] %vm209_vm2, %v206_v49  ;;  %v138_v52 = vpop.f32.mrf.mxu2  ;;  %v148_v53 = vpop.f32.mrf.mxu3 }
  0x9b   :  { %212 = vst.msk [vmem:[%s453_s4 + $0x8] sm:$0xf] %vm209_vm2, %v195_v50  ;;  %v167_v54 = vmul.f32 %v346_v10, %v138_v52  ;;  %v171_v55 = vmul.f32 %v346_v10, %v148_v53  ;;  %v120_v56 = vpop.f32.mrf.mxu0  ;;  %v130_v57 = vpop.f32.mrf.mxu1 }
  0x9c   :  { %216 = vst.msk [vmem:[%s453_s4 + $0x18] sm:$0xf] %vm209_vm2, %v199_v51  ;;  %v160_v58 = vmul.f32 %v346_v10, %v120_v56  ;;  %v164_v59 = vmul.f32 %v346_v10, %v130_v57 }
  0x9d   :  { %v187_v60 = vadd.f32 %v351_v11, %v167_v54  ;;  %v191_v61 = vadd.f32 %v351_v11, %v171_v55 }
  0x9e   :  { %v180_v62 = vadd.f32 %v351_v11, %v160_v58  ;;  %v184_v63 = vadd.f32 %v351_v11, %v164_v59 }
  0x9f   :  { %v203_v0 = vpack.c.bf16 %v187_v60, %v187_v60  ;;  %v207_v1 = vpack.c.bf16 %v191_v61, %v191_v61 }
  0xa0   :  { %v196_v2 = vpack.c.bf16 %v180_v62, %v180_v62  ;;  %v200_v3 = vpack.c.bf16 %v184_v63, %v184_v63 }
  0xa1   :  { %220 = vst.msk [vmem:[%s453_s4 + $0x28] sm:$0xf] %vm209_vm2, %v203_v0 }
  0xa2   :  { %224 = vst.msk [vmem:[%s453_s4 + $0x38] sm:$0xf] %vm209_vm2, %v207_v1  ;;  %v140_v4 = vpop.f32.mrf.mxu2  ;;  %v150_v5 = vpop.f32.mrf.mxu3 }
  0xa3   :  { %213 = vst.msk [vmem:[%s453_s4 + $0xc] sm:$0xf] %vm209_vm2, %v196_v2  ;;  %v168_v6 = vmul.f32 %v346_v10, %v140_v4  ;;  %v172_v7 = vmul.f32 %v346_v10, %v150_v5 }
  0xa4   :  { %217 = vst.msk [vmem:[%s453_s4 + $0x1c] sm:$0xf] %vm209_vm2, %v200_v3 }
  0xa5   :  { %v188_v8 = vadd.f32 %v351_v11, %v168_v6  ;;  %v192_v9 = vadd.f32 %v351_v11, %v172_v7 }
  0xa7   :  { %v204_v12 = vpack.c.bf16 %v188_v8, %v188_v8  ;;  %v208_v13 = vpack.c.bf16 %v192_v9, %v192_v9 }
  0xa9   :  { %221 = vst.msk [vmem:[%s453_s4 + $0x2c] sm:$0xf] %vm209_vm2, %v204_v12 }
  0xaa   :  { %225 = vst.msk [vmem:[%s453_s4 + $0x3c] sm:$0xf] %vm209_vm2, %v208_v13 }

// kernel: basic_block_forward.5
= control target key start
LH: loop header
LB: loop body
LE: loop exit
PB: predicated region body
PF: predicated region fallthrough
CT: control target
= control target key end

     0   :  { %10 = vsyncpa [#allocation3], 0  ;;  %s2500_s0 = inlined_call_operand.vmem [shape: bf16[2,1,168,16], index: 0, kind: input, shape index: {}]   ;;  %s2501_s1 = inlined_call_operand.vmem [shape: bf16[9,16,16], index: 1, kind: input, shape index: {}]   ;;  %s2502_s2 = inlined_call_operand.vmem [shape: f32[1,16], index: 2, kind: input, shape index: {}]   ;;  %s2503_s3 = inlined_call_operand.vmem [shape: f32[1,16], index: 3, kind: input, shape index: {}]   ;;  %s2504_s4 = inlined_call_operand.vmem [shape: bf16[2,8,8,16], index: 4, kind: input, shape index: {}]   ;;  %s2505_s5 = inlined_call_operand.hbm [shape: f32[2,8,8,16], index: 5, kind: output, shape index: {}]  }
   0x1   :  { %12 = vsyncpa [#allocation3 + $0x1], 0  ;;  %s1924_s18 = smov 0   ;;  %s1926_s19 = smov 0  }
   0x2   :  { %s1928_s20 = smov 0   ;;  %s1930_s21 = smov 0  }
   0x3   :  { %s1932_s22 = smov 0   ;;  %s1934_s23 = smov 0  }
   0x4 LB: > { %s1423_s24 = sadd.s32 4294967295, %s1890_s23   ;;  %s1424_s25 = sadd.s32 4294967294, %s1890_s23   ;;  %s1890_s23 = sphi %s1934_s23, %s18_s23   ;;  %s1886_s22 = sphi %s1932_s22, %s2512_s22   ;;  %s1882_s21 = sphi %s1930_s21, %s2511_s21   ;;  %s1878_s20 = sphi %s1928_s20, %s2510_s20   ;;  %s1874_s19 = sphi %s1926_s19, %s2509_s19   ;;  %s1870_s18 = sphi %s1924_s18, %s2508_s18  }
   0x5   : > { %s30_s26 = sadd.s32 1, %s1886_s22  ;;  %s156_s27 = sadd.s32 1, %s1878_s20 }
   0x6   : > { %p32_p0 = scmp.ge.s32.totalorder %s30_s26, 2  ;;  %p166_p1 = scmp.ne.s32.totalorder %s1878_s20, %s1874_s19 }
   0x7   : > { %p167_p2 = scmp.eq.s32.totalorder %s1423_s24, 1  ;;  %p172_p3 = scmp.ne.s32.totalorder %s1874_s19, %s1870_s18 }
   0x8   : > { %s2514_s26 = smov (%p32_p0, %s30_s26), 0  ;;  %p173_p5 = scmp.eq.s32.totalorder %s1424_s25, 1 }
   0x9   : > { %p1964_p4 = por %p167_p2, %p166_p1  ;;  %s151_s29 = ssub.s32 %s1886_s22, %s2514_s26 }
   0xa   : > { %p1427_p6 = scmp.ge.s32.totalorder %s1890_s23, 1  ;;  %p154_p7 = scmp.eq.s32.totalorder %s151_s29, 0 }
   0xb   : > { %p1971_p8 = por %p173_p5, %p172_p3  ;;  %p221_p9 = scmp.lt.s32.totalorder %s1890_s23, 3 }
   0xc   : > { %s1977_s6 = scalar_select %p154_p7, %s1878_s20, %s156_s27  }
   0xd   : > { %p222_p10 = pnand %p1427_p6, %p221_p9 }
   0xe   : > { %p258_p11 = scmp.lt.s32.totalorder (!%p222_p10), %s1882_s21, 1  ;;  %s255_s8 = sand.u32 (!%p222_p10), 1, %s1874_s19  }
   0xf   : > { %225 = sbr.rel (%p222_p10) target bundleno = 492 (0x1ec), region = 40  ;;  %s1428_s9 = sshll.u32 (!%p222_p10), %s255_s8, 6 }
  0x10   : > { %s2367_s10 = scalar_lea.vmem (!%p222_p10), [#allocation2], %s1428_s9  ;;  %s1748_s11 = sshll.u32 (!%p222_p10), %s1882_s21, 6 }
  0x11   : > { %s1322_s14 = scalar_lea.hbm (!%p222_p10), %s2505_s5, %s1748_s11 }
  0x12   : > { %s1325_s17 = sshll.u32 (!%p222_p10), %s1322_s14, 4  ;;  %s1326_s17 = int_to_ptr.hbm [resolvable:$true] %s1325_s17 }
  0x13   : > { %s1826_s24 = sshra.s32 (!%p222_p10), %s1326_s17, 4  ;;  %s1827_s24 = int_to_ptr.hbm [resolvable:$true] %s1826_s24 }
  0x14   : > { %v1732_v0 = vld [vmem:[%s2501_s1 + $0x18] sm:$0xff]  ;;  %v1741_v1 = vld [vmem:[%s2501_s1 + $0x30] sm:$0xff]  ;;  %v1723_v2 = vld [vmem:[%s2501_s1] sm:$0xff]  ;;  %s1993_s15 = scalar_select %p258_p11, %s1882_s21, 1  ;;  %vm373_vm0 = vcmask 130048   ;;  %vm933_vm1 = vcmask 1046528  }
  0x15   : > { %v1743_v3 = vld [vmem:[%s2501_s1 + $0x20] sm:$0xff]  ;;  %1749 = vmatpush.bf16.msra.mxu1 %v1732_v0  ;;  %1750 = vmatpush.bf16.msra.mxu2 %v1732_v0  ;;  %v1742_v8 = vld [vmem:[%s2501_s1 + $0x8] sm:$0xff]  ;;  %v1745_v16 = vld [vmem:[%s2501_s1 + $0x10] sm:$0xff]  ;;  %vm1189_vm2 = vcmask 1045504   ;;  %s1309_s21 = scalar_lea.sflag [#allocation3], %s255_s8  ;;  %p1833_p1 = scmp.lt.s32.totalorder %s1827_s24, %s2505_s5 }
  0x16   : > { %1751 = vmatpush.bf16.msra.mxu3 %v1732_v0  ;;  %s1752_s16 = smul.u32 84, %s1993_s15  ;;  %408 = vmatpush.bf16.msra.mxu0 %v1732_v0  ;;  %v1746_v15 = vld [vmem:[%s2501_s1 + $0x28] sm:$0xff]  ;;  %v1744_v17 = vld [vmem:[%s2501_s1 + $0x38] sm:$0xff]  ;;  %v1747_v18 = vld [vmem:[%s2501_s1 + $0x40] sm:$0xff] }
  0x18   : > { %s1999_s25 = scalar_lea.vmem %s2500_s0, %s1752_s16  ;;  %s1714_s16 = sshll.u32 %s1993_s15, 5 }
  0x19   : > { %673 = vmatpush.bf16.msrb.mxu2 %v1741_v1  ;;  %528 = vmatpush.bf16.msrb.mxu1 %v1723_v2  ;;  %v2002_v4 = vld [vmem:[%s1999_s25 + $0x10] sm:$0xff]  ;;  %v2005_v5 = vld [vmem:[%s1999_s25 + $0x28] sm:$0xff]  ;;  %v2008_v6 = vld [vmem:[%s1999_s25 + $0x40] sm:$0xff]  ;;  %s1832_s15 = scalar_lea.hbm %s2505_s5, 128 }
  0x1a   : > { %737 = vmatpush.bf16.msrb.mxu3 %v1743_v3  ;;  %1488 = vmatmul.msk.bf16.vlgmr.msra.gmra.mxu1 %vm373_vm0, %v2002_v4  ;;  %v2015_v7 = vld [vmem:[%s1999_s25 + $0x8] sm:$0xff]  ;;  %v2026_v11 = vld [vmem:[%s1999_s25 + $0x18] sm:$0xff]  ;;  %v2029_v12 = vld [vmem:[%s1999_s25 + $0x30] sm:$0xff] }
  0x1b   : > { %1491 = vmatmul.msk.bf16.vlgmr.msra.gmra.mxu2 %vm373_vm0, %v2005_v5  ;;  %1494 = vmatmul.msk.bf16.vlgmr.msra.gmra.mxu3 %vm373_vm0, %v2008_v6  ;;  %v1448_v9 = vld [vmem:[%s1999_s25 + $0x48] sm:$0xf]  ;;  %v2034_v14 = vld [vmem:[%s1999_s25] sm:$0xff]  ;;  %v2060_v20 = vld [vmem:[%s1999_s25 + $0x38] sm:$0xff] }
  0x1c   : > { %1487 = vmatmul.msk.bf16.vlgmr.msra.gmra.mxu0 %vm373_vm0, %v2015_v7  ;;  %v357_v10 = vunpack.c.l.b16 %v1448_v9  ;;  %v2057_v19 = vld [vmem:[%s1999_s25 + $0x20] sm:$0xff]  ;;  %v2063_v21 = vld [vmem:[%s1999_s25 + $0x8] sm:$0xff]  ;;  %v2074_v22 = vld [vmem:[%s1999_s25 + $0x10] sm:$0xff] }
  0x1d   : > { %795 = vmatpush.bf16.msrb.mxu0 %v1742_v8  ;;  %993 = vmatpush.bf16.msra.mxu2 %v1746_v15  ;;  %v2077_v23 = vld [vmem:[%s1999_s25 + $0x10] sm:$0xff]  ;;  %v2088_v24 = vld [vmem:[%s1999_s25 + $0x18] sm:$0xff]  ;;  %v2102_v26 = vld [vmem:[%s1999_s25 + $0x20] sm:$0xff] }
  0x1e   : > { %v2031_v13 = vpack.c.b16 %v357_v10, %v357_v10  ;;  %1051 = vmatpush.bf16.msra.mxu3 %v1745_v16  ;;  %856 = vmatpush.bf16.msra.mxu1 %v1744_v17  ;;  %v2091_v25 = vld [vmem:[%s1999_s25 + $0x18] sm:$0xff]  ;;  %v2105_v27 = vld [vmem:[%s1999_s25 + $0x20] sm:$0xff]  ;;  %v2116_v28 = vld [vmem:[%s1999_s25 + $0x28] sm:$0xff] }
  0x1f   : > { %v2119_v29 = vld [vmem:[%s1999_s25 + $0x28] sm:$0xff]  ;;  %v2130_v30 = vld [vmem:[%s1999_s25 + $0x30] sm:$0xff]  ;;  %v2144_v32 = vld [vmem:[%s1999_s25 + $0x38] sm:$0xff] }
  0x20   : > { %v2133_v31 = vld [vmem:[%s1999_s25 + $0x30] sm:$0xff]  ;;  %v2149_v34 = vld [vmem:[%s1999_s25 + $0x38] sm:$0xff]  ;;  %v296_v41 = vld [vmem:[%s1999_s25 + $0x40] sm:$0xf] }
  0x21   : > { %1112 = vmatpush.bf16.msra.mxu0 %v1747_v18  ;;  %v2165_v42 = vld [vmem:[%s1999_s25 + $0x40] sm:$0xff]  ;;  %v478_v44 = vunpack.c.l.b16 %v296_v41  ;;  %v2182_v53 = vld [vmem:[%s1999_s25 + $0x48] sm:$0xff]  ;;  %v1557_v61 = vld [vmem:[%s1999_s25 + $0x50] sm:$0xf]  ;;  %s2340_s25 = scalar_lea.vmem %s2504_s4, %s1714_s16  ;;  %s1323_s16 = sshll.u32 %s2367_s10, 4  ;;  %s1324_s16 = int_to_ptr.vmem [resolvable:$true] %s1323_s16 }
  0x22   : > { %v623_v63 = vunpack.c.l.b16 %v1557_v61 }
  0x23   : > { %v2169_v46 = vpack.c.b16 %v478_v44, %v478_v44 }
  0x24   : > { %v2199_v1 = vpack.c.b16 %v623_v63, %v623_v63 }
  0x2a   : > { %1489 = vmatmul.msk.bf16.gmra.mxu1 %vm373_vm0, %v2026_v11 }
  0x2b   : > { %1492 = vmatmul.msk.bf16.gmra.mxu2 %vm373_vm0, %v2029_v12  ;;  %1495 = vmatmul.msk.bf16.gmra.mxu3 %vm373_vm0, %v2031_v13 }
  0x2c   : > { %1626 = vmatmul.msk.bf16.vlgmr.msrb.gmra.mxu0 %vm373_vm0, %v2034_v14 }
  0x3a   : > { %1490 = vmatmul.msk.bf16.gmra.mxu1 %vm373_vm0, %v2057_v19 }
  0x3b   : > { %1493 = vmatmul.msk.bf16.gmra.mxu2 %vm373_vm0, %v2060_v20  ;;  %1613 = vmatmul.msk.bf16.vlgmr.msrb.gmra.mxu3 %vm373_vm0, %v2015_v7 }
  0x3c   : > { %1627 = vmatmul.msk.bf16.gmra.mxu0 %vm373_vm0, %v2063_v21 }
  0x4a   : > { %1532 = vmatmul.msk.bf16.vlgmr.msrb.gmra.mxu1 %vm373_vm0, %v2034_v14 }
  0x4b   : > { %1596 = vmatmul.msk.bf16.vlgmr.msrb.gmra.mxu2 %vm373_vm0, %v2074_v22  ;;  %1614 = vmatmul.msk.bf16.gmra.mxu3 %vm373_vm0, %v2002_v4 }
  0x4c   : > { %1628 = vmatmul.msk.bf16.gmra.mxu0 %vm373_vm0, %v2077_v23 }
  0x5a   : > { %1533 = vmatmul.msk.bf16.gmra.mxu1 %vm373_vm0, %v2063_v21 }
  0x5b   : > { %1597 = vmatmul.msk.bf16.gmra.mxu2 %vm373_vm0, %v2088_v24  ;;  %1615 = vmatmul.msk.bf16.gmra.mxu3 %vm373_vm0, %v2026_v11 }
  0x5c   : > { %1629 = vmatmul.msk.bf16.gmra.mxu0 %vm373_vm0, %v2091_v25 }
  0x6a   : > { %1534 = vmatmul.msk.bf16.gmra.mxu1 %vm373_vm0, %v2077_v23 }
  0x6b   : > { %1598 = vmatmul.msk.bf16.gmra.mxu2 %vm373_vm0, %v2102_v26  ;;  %1616 = vmatmul.msk.bf16.gmra.mxu3 %vm373_vm0, %v2057_v19 }
  0x6c   : > { %1630 = vmatmul.msk.bf16.gmra.mxu0 %vm373_vm0, %v2105_v27 }
  0x7a   : > { %1535 = vmatmul.msk.bf16.gmra.mxu1 %vm373_vm0, %v2091_v25 }
  0x7b   : > { %1599 = vmatmul.msk.bf16.gmra.mxu2 %vm373_vm0, %v2116_v28  ;;  %1617 = vmatmul.msk.bf16.gmra.mxu3 %vm373_vm0, %v2005_v5 }
  0x7c   : > { %1631 = vmatmul.msk.bf16.gmra.mxu0 %vm373_vm0, %v2119_v29 }
  0x8a   : > { %1536 = vmatmul.msk.bf16.gmra.mxu1 %vm373_vm0, %v2105_v27 }
  0x8b   : > { %1600 = vmatmul.msk.bf16.gmra.mxu2 %vm373_vm0, %v2130_v30  ;;  %1618 = vmatmul.msk.bf16.gmra.mxu3 %vm373_vm0, %v2029_v12 }
  0x8c   : > { %1632 = vmatmul.msk.bf16.gmra.mxu0 %vm373_vm0, %v2133_v31 }
  0x97   : > { %v2146_v33 = vpop.f32.mrf.mxu1 }
  0x99   : > { %v410_v35 = vpop.f32.mrf.mxu0 }
  0x9a   : > { %1537 = vmatmul.msk.bf16.gmra.mxu1 %vm373_vm0, %v2119_v29 }
  0x9b   : > { %1601 = vmatmul.msk.bf16.gmra.mxu2 %vm373_vm0, %v2144_v32  ;;  %1619 = vmatmul.msk.bf16.gmra.mxu3 %vm373_vm0, %v2060_v20 }
  0x9c   : > { %1633 = vmatmul.msk.bf16.gmra.mxu0 %vm373_vm0, %v2149_v34 }
  0x9e   : > { %v2159_v36 = vpop.f32.mrf.mxu2  ;;  %v2161_v37 = vpop.f32.mrf.mxu3 }
  0x9f   : > { %v416_v38 = vpop.f32.mrf.mxu1 }
  0xa1   : > { %v412_v39 = vpop.f32.mrf.mxu0 }
  0xa6   : > { %v428_v40 = vpop.f32.mrf.mxu2  ;;  %v440_v43 = vpop.f32.mrf.mxu3 }
  0xa7   : > { %v2167_v45 = vpop.f32.mrf.mxu1 }
  0xa9   : > { %v797_v47 = vpop.f32.mrf.mxu0 }
  0xaa   : > { %1538 = vmatmul.msk.bf16.gmra.mxu1 %vm373_vm0, %v2133_v31 }
  0xab   : > { %1602 = vmatmul.msk.bf16.gmra.mxu2 %vm373_vm0, %v2165_v42  ;;  %1620 = vmatmul.msk.bf16.gmra.mxu3 %vm373_vm0, %v2008_v6 }
  0xac   : > { %1634 = vmatmul.msk.bf16.gmra.mxu0 %vm373_vm0, %v2169_v46 }
  0xae   : > { %v2179_v48 = vpop.f32.mrf.mxu2  ;;  %v442_v49 = vpop.f32.mrf.mxu3 }
  0xaf   : > { %v420_v50 = vpop.f32.mrf.mxu1 }
  0xb1   : > { %v799_v51 = vpop.f32.mrf.mxu0 }
  0xb6   : > { %v432_v52 = vpop.f32.mrf.mxu2  ;;  %v443_v54 = vpop.f32.mrf.mxu3 }
  0xb7   : > { %v2184_v55 = vpop.f32.mrf.mxu1 }
  0xb9   : > { %v802_v56 = vpop.f32.mrf.mxu0 }
  0xba   : > { %1539 = vmatmul.msk.bf16.gmra.mxu1 %vm373_vm0, %v2149_v34 }
  0xbb   : > { %1603 = vmatmul.msk.bf16.gmra.mxu2 %vm373_vm0, %v2182_v53  ;;  %1621 = vmatmul.msk.bf16.gmra.mxu3 %vm373_vm0, %v2031_v13 }
  0xbc   : > { %1686 = vmatmul.msk.bf16.vlgmr.msra.gmra.mxu0 %vm373_vm0, %v2074_v22 }
  0xbe   : > { %v2194_v57 = vpop.f32.mrf.mxu2  ;;  %v739_v58 = vpop.f32.mrf.mxu3 }
  0xbf   : > { %v424_v59 = vpop.f32.mrf.mxu1  ;;  %v2196_v60 = vadd.f32 %v797_v47, %v739_v58 }
  0xc1   : > { %v804_v62 = vpop.f32.mrf.mxu0 }
  0xc6   : > { %v436_v0 = vpop.f32.mrf.mxu2  ;;  %v741_v2 = vpop.f32.mrf.mxu3 }
  0xc7   : > { %v530_v3 = vpop.f32.mrf.mxu1  ;;  %v2201_v8 = vadd.f32 %v799_v51, %v741_v2 }
  0xc8   : > { %v531_v9 = vadd.f32 %v530_v3, %v410_v35 }
  0xc9   : > { %v807_v10 = vpop.f32.mrf.mxu0 }
  0xca   : > { %1540 = vmatmul.msk.bf16.gmra.mxu1 %vm373_vm0, %v2169_v46 }
  0xcb   : > { %1604 = vmatmul.msk.bf16.gmra.mxu2 %vm373_vm0, %v2199_v1  ;;  %1671 = vmatmul.msk.bf16.vlgmr.msra.gmra.mxu3 %vm373_vm0, %v2034_v14 }
  0xcc   : > { %1687 = vmatmul.msk.bf16.gmra.mxu0 %vm373_vm0, %v2088_v24 }
  0xce   : > { %v675_v15 = vpop.f32.mrf.mxu2  ;;  %v744_v17 = vpop.f32.mrf.mxu3 }
  0xcf   : > { %v2211_v16 = vadd.f32 %v675_v15, %v531_v9  ;;  %v532_v18 = vpop.f32.mrf.mxu1  ;;  %v2213_v38 = vadd.f32 %v802_v56, %v744_v17 }
  0xd1   : > { %v809_v35 = vpop.f32.mrf.mxu0 }
  0xd6   : > { %v677_v39 = vpop.f32.mrf.mxu2  ;;  %v746_v40 = vpop.f32.mrf.mxu3 }
  0xd7   : > { %v534_v41 = vpop.f32.mrf.mxu1  ;;  %v2215_v43 = vadd.f32 %v804_v62, %v746_v40 }
  0xd8   : > { %v535_v44 = vadd.f32 %v534_v41, %v2146_v33 }
  0xd9   : > { %v812_v47 = vpop.f32.mrf.mxu0 }
  0xda   : > { %1641 = vmatmul.msk.bf16.vlgmr.msra.gmra.mxu1 %vm373_vm0, %v2074_v22 }
  0xdb   : > { %1658 = vmatmul.msk.bf16.vlgmr.msra.gmra.mxu2 %vm373_vm0, %v2015_v7  ;;  %1672 = vmatmul.msk.bf16.gmra.mxu3 %vm373_vm0, %v2063_v21 }
  0xdc   : > { %1688 = vmatmul.msk.bf16.gmra.mxu0 %vm373_vm0, %v2102_v26 }
  0xde   : > { %v679_v14 = vpop.f32.mrf.mxu2  ;;  %v749_v50 = vpop.f32.mrf.mxu3 }
  0xdf   : > { %v2226_v49 = vadd.f32 %v679_v14, %v535_v44  ;;  %v536_v51 = vpop.f32.mrf.mxu1  ;;  %v2228_v52 = vadd.f32 %v807_v10, %v749_v50 }
  0xe1   : > { %v814_v33 = vpop.f32.mrf.mxu0 }
  0xe6   : > { %v681_v54 = vpop.f32.mrf.mxu2  ;;  %v751_v56 = vpop.f32.mrf.mxu3 }
  0xe7   : > { %v538_v22 = vpop.f32.mrf.mxu1  ;;  %v2230_v58 = vadd.f32 %v809_v35, %v751_v56 }
  0xe8   : > { %v539_v7 = vadd.f32 %v538_v22, %v2167_v45 }
  0xe9   : > { %v817_v59 = vpop.f32.mrf.mxu0 }
  0xea   : > { %1642 = vmatmul.msk.bf16.gmra.mxu1 %vm373_vm0, %v2088_v24 }
  0xeb   : > { %1659 = vmatmul.msk.bf16.gmra.mxu2 %vm373_vm0, %v2002_v4  ;;  %1673 = vmatmul.msk.bf16.gmra.mxu3 %vm373_vm0, %v2077_v23 }
  0xec   : > { %1689 = vmatmul.msk.bf16.gmra.mxu0 %vm373_vm0, %v2116_v28 }
  0xee   : > { %v683_v21 = vpop.f32.mrf.mxu2  ;;  %v754_v62 = vpop.f32.mrf.mxu3 }
  0xef   : > { %v2241_v61 = vadd.f32 %v683_v21, %v539_v7  ;;  %v540_v63 = vpop.f32.mrf.mxu1  ;;  %v2243_v0 = vadd.f32 %v812_v47, %v754_v62 }
  0xf1   : > { %v819_v45 = vpop.f32.mrf.mxu0 }
  0xf6   : > { %v685_v2 = vpop.f32.mrf.mxu2  ;;  %v756_v3 = vpop.f32.mrf.mxu3 }
  0xf7   : > { %v542_v24 = vpop.f32.mrf.mxu1  ;;  %v2245_v9 = vadd.f32 %v814_v33, %v756_v3 }
  0xf8   : > { %v543_v4 = vadd.f32 %v542_v24, %v2184_v55 }
  0xf9   : > { %v822_v10 = vpop.f32.mrf.mxu0 }
  0xfa   : > { %1643 = vmatmul.msk.bf16.gmra.mxu1 %vm373_vm0, %v2102_v26 }
  0xfb   : > { %1660 = vmatmul.msk.bf16.gmra.mxu2 %vm373_vm0, %v2026_v11  ;;  %1674 = vmatmul.msk.bf16.gmra.mxu3 %vm373_vm0, %v2091_v25 }
  0xfc   : > { %1690 = vmatmul.msk.bf16.gmra.mxu0 %vm373_vm0, %v2130_v30 }
  0xfe   : > { %v687_v23 = vpop.f32.mrf.mxu2  ;;  %v759_v17 = vpop.f32.mrf.mxu3 }
  0xff   : > { %v2256_v15 = vadd.f32 %v687_v23, %v543_v4  ;;  %v544_v18 = vpop.f32.mrf.mxu1  ;;  %v2258_v35 = vadd.f32 %v817_v59, %v759_v17 }
 0x101   : > { %v824_v55 = vpop.f32.mrf.mxu0 }
 0x106   : > { %v689_v39 = vpop.f32.mrf.mxu2  ;;  %v761_v40 = vpop.f32.mrf.mxu3 }
 0x107   : > { %v546_v26 = vpop.f32.mrf.mxu1  ;;  %v2260_v41 = vadd.f32 %v819_v45, %v761_v40 }
 0x108   : > { %v547_v25 = vadd.f32 %v546_v26, %v2159_v36 }
 0x109   : > { %v827_v11 = vpop.f32.mrf.mxu0 }
 0x10a   : > { %1644 = vmatmul.msk.bf16.gmra.mxu1 %vm373_vm0, %v2116_v28 }
 0x10b   : > { %1661 = vmatmul.msk.bf16.gmra.mxu2 %vm373_vm0, %v2057_v19  ;;  %1675 = vmatmul.msk.bf16.gmra.mxu3 %vm373_vm0, %v2105_v27 }
 0x10c   : > { %1691 = vmatmul.msk.bf16.gmra.mxu0 %vm373_vm0, %v2144_v32 }
 0x10e   : > { %v691_v44 = vpop.f32.mrf.mxu2  ;;  %v764_v14 = vpop.f32.mrf.mxu3 }
 0x10f   : > { %v2271_v47 = vadd.f32 %v691_v44, %v547_v25  ;;  %v548_v50 = vpop.f32.mrf.mxu1  ;;  %v2273_v51 = vadd.f32 %v822_v10, %v764_v14 }
 0x111   : > { %v829_v33 = vpop.f32.mrf.mxu0 }
 0x116   : > { %v693_v28 = vpop.f32.mrf.mxu2  ;;  %v766_v54 = vpop.f32.mrf.mxu3 }
 0x117   : > { %v550_v56 = vpop.f32.mrf.mxu1  ;;  %v2275_v19 = vadd.f32 %v824_v55, %v766_v54 }
 0x118   : > { %v551_v27 = vadd.f32 %v550_v56, %v2179_v48 }
 0x119   : > { %v832_v22 = vpop.f32.mrf.mxu0 }
 0x11a   : > { %1645 = vmatmul.msk.bf16.gmra.mxu1 %vm373_vm0, %v2130_v30 }
 0x11b   : > { %1662 = vmatmul.msk.bf16.gmra.mxu2 %vm373_vm0, %v2005_v5  ;;  %1676 = vmatmul.msk.bf16.gmra.mxu3 %vm373_vm0, %v2119_v29 }
 0x11c   : > { %1692 = vmatmul.msk.bf16.gmra.mxu0 %vm373_vm0, %v2165_v42 }
 0x11e   : > { %v695_v36 = vpop.f32.mrf.mxu2  ;;  %v769_v59 = vpop.f32.mrf.mxu3 }
 0x11f   : > { %v2286_v7 = vadd.f32 %v695_v36, %v551_v27  ;;  %v552_v21 = vpop.f32.mrf.mxu1  ;;  %v2288_v62 = vadd.f32 %v827_v11, %v769_v59 }
 0x121   : > { %v834_v63 = vpop.f32.mrf.mxu0 }
 0x126   : > { %v697_v30 = vpop.f32.mrf.mxu2  ;;  %v771_v45 = vpop.f32.mrf.mxu3 }
 0x127   : > { %v554_v2 = vpop.f32.mrf.mxu1  ;;  %v2290_v5 = vadd.f32 %v829_v33, %v771_v45 }
 0x128   : > { %v555_v29 = vadd.f32 %v554_v2, %v2194_v57 }
 0x129   : > { %v837_v3 = vpop.f32.mrf.mxu0 }
 0x12a   : > { %1646 = vmatmul.msk.bf16.gmra.mxu1 %vm373_vm0, %v2144_v32 }
 0x12b   : > { %1663 = vmatmul.msk.bf16.gmra.mxu2 %vm373_vm0, %v2029_v12  ;;  %1677 = vmatmul.msk.bf16.gmra.mxu3 %vm373_vm0, %v2133_v31 }
 0x12c   : > { %1693 = vmatmul.msk.bf16.gmra.mxu0 %vm373_vm0, %v2182_v53 }
 0x12e   : > { %v699_v48 = vpop.f32.mrf.mxu2  ;;  %v774_v4 = vpop.f32.mrf.mxu3 }
 0x12f   : > { %v2301_v24 = vadd.f32 %v699_v48, %v555_v29  ;;  %v556_v10 = vpop.f32.mrf.mxu1  ;;  %v2303_v23 = vadd.f32 %v832_v22, %v774_v4 }
 0x130   : > { %v2347_v10 = vld [vmem:[%s2502_s2] ss:$0 sm:$0xff] }
 0x131   : > { %v838_v17 = vpop.f32.mrf.mxu0 }
 0x136   : > { %v701_v32 = vpop.f32.mrf.mxu2  ;;  %v776_v18 = vpop.f32.mrf.mxu3 }
 0x137   : > { %v558_v55 = vpop.f32.mrf.mxu1  ;;  %v2305_v12 = vadd.f32 %v834_v63, %v776_v18  ;;  %v1240_v32 = vld [vmem:[%s2340_s25] sm:$0xff]  }
 0x138   : > { %v559_v31 = vadd.f32 %v558_v55, %v2161_v37  ;;  %v2354_v55 = vld [vmem:[%s2503_s3] ss:$0 sm:$0xff] }
 0x139   : > { %v1114_v39 = vpop.f32.mrf.mxu0 }
 0x13a   : > { %1647 = vmatmul.msk.bf16.gmra.mxu1 %vm373_vm0, %v2165_v42 }
 0x13b   : > { %1664 = vmatmul.msk.bf16.gmra.mxu2 %vm373_vm0, %v2060_v20  ;;  %1678 = vmatmul.msk.bf16.gmra.mxu3 %vm373_vm0, %v2149_v34 }
 0x13c   : > { %1694 = vmatmul.msk.bf16.gmra.mxu0 %vm373_vm0, %v2199_v1 }
 0x13e   : > { %v703_v57 = vpop.f32.mrf.mxu2  ;;  %v779_v26 = vpop.f32.mrf.mxu3 }
 0x13f   : > { %v2316_v40 = vadd.f32 %v703_v57, %v559_v31  ;;  %v560_v11 = vpop.f32.mrf.mxu1 }
 0x140   : > { %v1241_v11 = vunpack.c.l.bf16 %v1240_v32 }
 0x141   : > { %v1116_v25 = vpop.f32.mrf.mxu0 }
 0x146   : > { %v705_v44 = vpop.f32.mrf.mxu2  ;;  %v780_v14 = vpop.f32.mrf.mxu3 }
 0x147   : > { %v562_v42 = vpop.f32.mrf.mxu1 }
 0x149   : > { %v1119_v50 = vpop.f32.mrf.mxu0 }
 0x14a   : > { %1648 = vmatmul.msk.bf16.gmra.mxu1 %vm373_vm0, %v2182_v53 }
 0x14b   : > { %1665 = vmatmul.msk.bf16.gmra.mxu2 %vm373_vm0, %v2008_v6  ;;  %1679 = vmatmul.msk.bf16.gmra.mxu3 %vm373_vm0, %v2169_v46 }
 0x14e   : > { %v707_v20 = vpop.f32.mrf.mxu2  ;;  %v1053_v34 = vpop.f32.mrf.mxu3 }
 0x14f   : > { %v563_v37 = vpop.f32.mrf.mxu1 }
 0x151   : > { %v1121_v33 = vpop.f32.mrf.mxu0 }
 0x156   : > { %v708_v28 = vpop.f32.mrf.mxu2  ;;  %v1055_v54 = vpop.f32.mrf.mxu3 }
 0x157   : > { %v858_v56 = vpop.f32.mrf.mxu1 }
 0x158   : > { %v901_v53 = vadd.f32 %v858_v56, %v2196_v60 }
 0x159   : > { %v2324_v22 = vpop.f32.mrf.mxu0 }
 0x15a   : > { %1649 = vmatmul.msk.bf16.gmra.mxu1 %vm373_vm0, %v2199_v1  ;;  %v934_v21 = vrot.slane %v901_v53, 1 }
 0x15b   : > { %1666 = vmatmul.msk.bf16.gmra.mxu2 %vm373_vm0, %v2031_v13 }
 0x15e   : > { %v995_v6 = vpop.f32.mrf.mxu2  ;;  %v1058_v46 = vpop.f32.mrf.mxu3 }
 0x15f   : > { %v860_v27 = vpop.f32.mrf.mxu1  ;;  %v1054_v63 = vadd.f32 %v1053_v34, %v995_v6 }
 0x160   : > { %v902_v36 = vadd.f32 %v860_v27, %v2201_v8 }
 0x161   : > { %v2332_v59 = vpop.f32.mrf.mxu0  ;;  %v1157_v3 = vadd.f32 %v1114_v39, %v1054_v63 }
 0x162   : > { %v935_v30 = vrot.slane %v902_v36, 1 }
 0x163   : > { %v1190_v4 = vrot.slane %v1157_v3, 2 }
 0x164   : > { %v936_v45 = vsel %vm933_vm1, %v934_v21, %v935_v30 }
 0x165   : > { %v966_v13 = vadd.f32 %v936_v45, %v2211_v16 }
 0x166   : > { %v997_v2 = vpop.f32.mrf.mxu2  ;;  %v1060_v60 = vpop.f32.mrf.mxu3 }
 0x167   : > { %v1056_v1 = vadd.f32 %v1055_v54, %v997_v2  ;;  %v863_v29 = vpop.f32.mrf.mxu1 }
 0x168   : > { %v903_v31 = vadd.f32 %v863_v29, %v2213_v38 }
 0x169   : > { %v1158_v48 = vadd.f32 %v1116_v25, %v1056_v1  ;;  %v2342_v8 = vpop.f32.mrf.mxu0  ;;  %v1249_v1 = vunpack.c.h.bf16 %v1240_v32 }
 0x16a   : > { %v937_v20 = vrot.slane %v903_v31, 1 }
 0x16b   : > { %v1191_v16 = vrot.slane %v1158_v48, 2 }
 0x16d   : > { %v1192_v17 = vsel %vm1189_vm2, %v1190_v4, %v1191_v16 }
 0x16e   : > { %v1222_v18 = vadd.f32 %v1192_v17, %v966_v13  ;;  %v1000_v39 = vpop.f32.mrf.mxu2  ;;  %v1063_v57 = vpop.f32.mrf.mxu3 }
 0x16f   : > { %v865_v25 = vpop.f32.mrf.mxu1  ;;  %v1059_v34 = vadd.f32 %v1058_v46, %v1000_v39 }
 0x170   : > { %v1235_v26 = vmul.f32 %v2347_v10, %v1222_v18  ;;  %v904_v44 = vadd.f32 %v865_v25, %v2215_v43 }
 0x171   : > { %v2363_v42 = vpop.f32.mrf.mxu0  ;;  %v1159_v53 = vadd.f32 %v1119_v50, %v1059_v34 }
 0x172   : > { %v1239_v14 = vadd.f32 %v2354_v55, %v1235_v26  ;;  %v938_v37 = vrot.slane %v904_v44, 1 }
 0x173   : > { %v1193_v46 = vrot.slane %v1159_v53, 2 }
 0x174   : > { %v1242_v28 = vadd.f32 %v1241_v11, %v1239_v14  ;;  %v939_v54 = vsel %vm933_vm1, %v937_v20, %v938_v37  ;;  %v1697_v37 = vld [vmem:[%s2340_s25 + $0x8] sm:$0xff]  }
 0x175   : > { %v967_v56 = vadd.f32 %v939_v54, %v2226_v49 }
 0x176   : > { %v1243_v38 = vmax.f32 %v1242_v28, 0.0  ;;  %v1002_v6 = vpop.f32.mrf.mxu2  ;;  %v1065_v36 = vpop.f32.mrf.mxu3 }
 0x177   : > { %v1061_v27 = vadd.f32 %v1060_v60, %v1002_v6  ;;  %v868_v43 = vpop.f32.mrf.mxu1 }
 0x178   : > { %1244 = vst.msk [vmem:[%s2367_s10] sm:$0xff] %vm373_vm0, %v1243_v38  ;;  %v905_v49 = vadd.f32 %v868_v43, %v2228_v52 }
 0x179   : > { %v1160_v21 = vadd.f32 %v1121_v33, %v1061_v27  ;;  %v2371_v63 = vpop.f32.mrf.mxu0 }
 0x17a   : > { %v940_v4 = vrot.slane %v905_v49, 1 }
 0x17b   : > { %v1194_v30 = vrot.slane %v1160_v21, 2 }
 0x17d   : > { %v1195_v45 = vsel %vm1189_vm2, %v1193_v46, %v1194_v30 }
 0x17e   : > { %v1223_v13 = vadd.f32 %v1195_v45, %v967_v56  ;;  %v1005_v2 = vpop.f32.mrf.mxu2  ;;  %v1068_v50 = vpop.f32.mrf.mxu3  ;;  %v1258_v56 = vunpack.c.l.bf16 %v1697_v37 }
 0x17f   : > { %v870_v60 = vpop.f32.mrf.mxu1  ;;  %v1064_v16 = vadd.f32 %v1063_v57, %v1005_v2 }
 0x180   : > { %v1245_v3 = vmul.f32 %v2347_v10, %v1223_v13  ;;  %v906_v29 = vadd.f32 %v870_v60, %v2230_v58 }
 0x181   : > { %v2378_v48 = vpop.f32.mrf.mxu0  ;;  %v1161_v32 = vadd.f32 %v2324_v22, %v1064_v16 }
 0x182   : > { %v1246_v33 = vadd.f32 %v2354_v55, %v1245_v3  ;;  %v941_v17 = vrot.slane %v906_v29, 1 }
 0x183   : > { %v1196_v57 = vrot.slane %v1161_v32, 2 }
 0x184   : > { %v1250_v18 = vadd.f32 %v1249_v1, %v1246_v33  ;;  %v942_v39 = vsel %vm933_vm1, %v940_v4, %v941_v17 }
 0x185   : > { %v968_v31 = vadd.f32 %v942_v39, %v2241_v61 }
 0x186   : > { %v1251_v52 = vmax.f32 %v1250_v18, 0.0  ;;  %v1007_v26 = vpop.f32.mrf.mxu2  ;;  %v1070_v25 = vpop.f32.mrf.mxu3  ;;  %v1267_v18 = vunpack.c.h.bf16 %v1697_v37 }
 0x187   : > { %v1066_v11 = vadd.f32 %v1065_v36, %v1007_v26  ;;  %v873_v58 = vpop.f32.mrf.mxu1 }
 0x188   : > { %1696 = vst.msk [vmem:[%s2367_s10 + $0x8] sm:$0xff] %vm373_vm0, %v1251_v52  ;;  %v907_v61 = vadd.f32 %v873_v58, %v2243_v0 }
 0x189   : > { %v1162_v44 = vadd.f32 %v2332_v59, %v1066_v11  ;;  %v2386_v14 = vpop.f32.mrf.mxu0 }
 0x18a   : > { %v943_v36 = vrot.slane %v907_v61, 1 }
 0x18b   : > { %v1197_v20 = vrot.slane %v1162_v44, 2 }
 0x18d   : > { %v1198_v34 = vsel %vm1189_vm2, %v1196_v57, %v1197_v20 }
 0x18e   : > { %v1224_v28 = vadd.f32 %v1198_v34, %v968_v31  ;;  %v1010_v54 = vpop.f32.mrf.mxu2  ;;  %v1073_v38 = vpop.f32.mrf.mxu3 }
 0x18f   : > { %v875_v6 = vpop.f32.mrf.mxu1  ;;  %v1069_v43 = vadd.f32 %v1068_v50, %v1010_v54 }
 0x190   : > { %v1254_v22 = vmul.f32 %v2347_v10, %v1224_v28  ;;  %v908_v53 = vadd.f32 %v875_v6, %v2245_v9 }
 0x191   : > { %v2394_v27 = vpop.f32.mrf.mxu0  ;;  %v1163_v2 = vadd.f32 %v2342_v8, %v1069_v43 }
 0x192   : > { %v1255_v59 = vadd.f32 %v2354_v55, %v1254_v22  ;;  %v944_v21 = vrot.slane %v908_v53, 1 }
 0x193   : > { %v1199_v50 = vrot.slane %v1163_v2, 2 }
 0x194   : > { %v1259_v46 = vadd.f32 %v1258_v56, %v1255_v59  ;;  %v945_v30 = vsel %vm933_vm1, %v943_v36, %v944_v21  ;;  %v1701_v56 = vld [vmem:[%s2340_s25 + $0x10] sm:$0xff]  }
 0x195   : > { %v969_v0 = vadd.f32 %v945_v30, %v2256_v15  ;;  %v1276_v36 = vunpack.c.l.bf16 %v1701_v56 }
 0x196   : > { %v1260_v45 = vmax.f32 %v1259_v46, 0.0  ;;  %v1012_v13 = vpop.f32.mrf.mxu2  ;;  %v1075_v3 = vpop.f32.mrf.mxu3 }
 0x197   : > { %v1071_v49 = vadd.f32 %v1070_v25, %v1012_v13  ;;  %v878_v9 = vpop.f32.mrf.mxu1 }
 0x198   : > { %1698 = vst.msk [vmem:[%s2367_s10 + $0x10] sm:$0xff] %vm373_vm0, %v1260_v45  ;;  %v909_v15 = vadd.f32 %v878_v9, %v2258_v35 }
 0x199   : > { %v1164_v1 = vadd.f32 %v2363_v42, %v1071_v49  ;;  %v2402_v60 = vpop.f32.mrf.mxu0 }
 0x19a   : > { %v946_v26 = vrot.slane %v909_v15, 1 }
 0x19b   : > { %v1200_v29 = vrot.slane %v1164_v1, 2 }
 0x19d   : > { %v1201_v33 = vsel %vm1189_vm2, %v1199_v50, %v1200_v29 }
 0x19e   : > { %v1225_v4 = vadd.f32 %v1201_v33, %v969_v0  ;;  %v1015_v16 = vpop.f32.mrf.mxu2  ;;  %v1078_v17 = vpop.f32.mrf.mxu3 }
 0x19f   : > { %v880_v39 = vpop.f32.mrf.mxu1  ;;  %v1074_v32 = vadd.f32 %v1073_v38, %v1015_v16 }
 0x1a0   : > { %v1263_v8 = vmul.f32 %v2347_v10, %v1225_v4  ;;  %v910_v52 = vadd.f32 %v880_v39, %v2260_v41 }
 0x1a1   : > { %v2409_v31 = vpop.f32.mrf.mxu0  ;;  %v1165_v20 = vadd.f32 %v2371_v63, %v1074_v32 }
 0x1a2   : > { %v1264_v42 = vadd.f32 %v2354_v55, %v1263_v8  ;;  %v947_v11 = vrot.slane %v910_v52, 1 }
 0x1a3   : > { %v1202_v61 = vrot.slane %v1165_v20, 2 }
 0x1a4   : > { %v1268_v25 = vadd.f32 %v1267_v18, %v1264_v42  ;;  %v948_v58 = vsel %vm933_vm1, %v946_v26, %v947_v11 }
 0x1a5   : > { %v970_v44 = vadd.f32 %v948_v58, %v2271_v47 }
 0x1a6   : > { %v1269_v35 = vmax.f32 %v1268_v25, 0.0  ;;  %v1017_v57 = vpop.f32.mrf.mxu2  ;;  %v1080_v37 = vpop.f32.mrf.mxu3 }
 0x1a7   : > { %v1076_v34 = vadd.f32 %v1075_v3, %v1017_v57  ;;  %v883_v41 = vpop.f32.mrf.mxu1 }
 0x1a8   : > { %1700 = vst.msk [vmem:[%s2367_s10 + $0x18] sm:$0xff] %vm373_vm0, %v1269_v35  ;;  %v911_v47 = vadd.f32 %v883_v41, %v2273_v51 }
 0x1a9   : > { %v1166_v28 = vadd.f32 %v2378_v48, %v1076_v34  ;;  %v2417_v54 = vpop.f32.mrf.mxu0 }
 0x1aa   : > { %v949_v30 = vrot.slane %v911_v47, 1 }
 0x1ab   : > { %v1203_v38 = vrot.slane %v1166_v28, 2 }
 0x1ad   : > { %v1204_v22 = vsel %vm1189_vm2, %v1202_v61, %v1203_v38 }
 0x1ae   : > { %v1226_v6 = vadd.f32 %v1204_v22, %v970_v44  ;;  %v1020_v53 = vpop.f32.mrf.mxu2  ;;  %v1083_v59 = vpop.f32.mrf.mxu3  ;;  %v1705_v22 = vld [vmem:[%s2340_s25 + $0x18] sm:$0xff]   ;;  %s1828_s25 = scalar_lea.hbm %s1827_s24, 64 }
 0x1af   : > { %v885_v43 = vpop.f32.mrf.mxu1  ;;  %v1079_v45 = vadd.f32 %v1078_v17, %v1020_v53  ;;  %p1829_p12 = scmp.ne.s32.totalorder %s1827_s24, %s1828_s25  ;;  %p1834_p2 = scmp.lt.s32.totalorder %s1832_s15, %s1828_s25 }
 0x1b0   : > { %v1272_v63 = vmul.f32 %v2347_v10, %v1226_v6  ;;  %v912_v21 = vadd.f32 %v885_v43, %v2275_v19 }
 0x1b1   : > { %v2425_v46 = vpop.f32.mrf.mxu0  ;;  %v1167_v9 = vadd.f32 %v2386_v14, %v1079_v45  ;;  %v1285_v14 = vunpack.c.h.bf16 %v1701_v56  ;;  %p1830_p13 = pnand %p1829_p12, %p1964_p4  ;;  %p1835_p3 = por %p1834_p2, %p1833_p1 }
 0x1b2   : > { %v1273_v48 = vadd.f32 %v2354_v55, %v1272_v63  ;;  %v950_v0 = vrot.slane %v912_v21, 1 }
 0x1b3   : > { %v1205_v4 = vrot.slane %v1167_v9, 2  ;;  %p1831_p0 = pneg %p1830_p13 }
 0x1b4   : > { %v1277_v13 = vadd.f32 %v1276_v36, %v1273_v48  ;;  %v951_v2 = vsel %vm933_vm1, %v949_v30, %v950_v0 }
 0x1b5   : > { %v971_v51 = vadd.f32 %v951_v2, %v2286_v7  ;;  %p1836_p5 = pnand %p1835_p3, %p1831_p0 }
 0x1b6   : > { %v1278_v49 = vmax.f32 %v1277_v13, 0.0  ;;  %v1022_v3 = vpop.f32.mrf.mxu2  ;;  %v1085_v50 = vpop.f32.mrf.mxu3 }
 0x1b7   : > { %v1081_v1 = vadd.f32 %v1080_v37, %v1022_v3  ;;  %v888_v19 = vpop.f32.mrf.mxu1 }
 0x1b8   : > { %1702 = vst.msk [vmem:[%s2367_s10 + $0x20] sm:$0xff] %vm373_vm0, %v1278_v49  ;;  %v913_v18 = vadd.f32 %v888_v19, %v2288_v62  ;;  %v1303_v19 = vunpack.c.h.bf16 %v1705_v22 }
 0x1b9   : > { %v1168_v29 = vadd.f32 %v2394_v27, %v1081_v1  ;;  %v1154_v33 = vpop.f32.mrf.mxu0 }
 0x1ba   : > { %v952_v32 = vrot.slane %v913_v18, 1 }
 0x1bb   : > { %v1206_v16 = vrot.slane %v1168_v29, 2 }
 0x1bd   : > { %v1207_v15 = vsel %vm1189_vm2, %v1205_v4, %v1206_v16 }
 0x1be   : > { %v1227_v17 = vadd.f32 %v1207_v15, %v971_v51  ;;  %v1025_v8 = vpop.f32.mrf.mxu2  ;;  %v1088_v7 = vpop.f32.mrf.mxu3 }
 0x1bf   : > { %v890_v52 = vpop.f32.mrf.mxu1  ;;  %v1084_v11 = vadd.f32 %v1083_v59, %v1025_v8 }
 0x1c0   : > { %v1281_v39 = vmul.f32 %v2347_v10, %v1227_v17  ;;  %v914_v42 = vadd.f32 %v890_v52, %v2290_v5 }
 0x1c1   : > { %v1155_v27 = vpop.f32.mrf.mxu0  ;;  %v1169_v20 = vadd.f32 %v2402_v60, %v1084_v11  ;;  %v1294_v60 = vunpack.c.l.bf16 %v1705_v22 }
 0x1c2   : > { %v1282_v26 = vadd.f32 %v2354_v55, %v1281_v39  ;;  %v953_v25 = vrot.slane %v914_v42, 1 }
 0x1c3   : > { %v1208_v28 = vrot.slane %v1169_v20, 2 }
 0x1c4   : > { %v1286_v58 = vadd.f32 %v1285_v14, %v1282_v26  ;;  %v954_v35 = vsel %vm933_vm1, %v952_v32, %v953_v25 }
 0x1c5   : > { %v972_v62 = vadd.f32 %v954_v35, %v2301_v24 }
 0x1c6   : > { %v1287_v44 = vmax.f32 %v1286_v58, 0.0  ;;  %v1027_v57 = vpop.f32.mrf.mxu2  ;;  %v1090_v37 = vpop.f32.mrf.mxu3 }
 0x1c7   : > { %v1086_v34 = vadd.f32 %v1085_v50, %v1027_v57  ;;  %v893_v5 = vpop.f32.mrf.mxu1 }
 0x1c8   : > { %1704 = vst.msk [vmem:[%s2367_s10 + $0x28] sm:$0xff] %vm373_vm0, %v1287_v44  ;;  %v915_v53 = vadd.f32 %v893_v5, %v2303_v23 }
 0x1c9   : > { %v1170_v41 = vadd.f32 %v2409_v31, %v1086_v34 }
 0x1ca   : > { %v955_v31 = vrot.slane %v915_v53, 1 }
 0x1cb   : > { %v1209_v61 = vrot.slane %v1170_v41, 2 }
 0x1cd   : > { %v1210_v38 = vsel %vm1189_vm2, %v1208_v28, %v1209_v61 }
 0x1ce   : > { %v1228_v56 = vadd.f32 %v1210_v38, %v972_v62  ;;  %v1030_v6 = vpop.f32.mrf.mxu2  ;;  %v1093_v24 = vpop.f32.mrf.mxu3 }
 0x1cf   : > { %v895_v59 = vpop.f32.mrf.mxu1  ;;  %v1089_v43 = vadd.f32 %v1088_v7, %v1030_v6 }
 0x1d0   : > { %v1290_v47 = vmul.f32 %v2347_v10, %v1228_v56  ;;  %v916_v63 = vadd.f32 %v895_v59, %v2305_v12 }
 0x1d1   : > { %v1171_v13 = vadd.f32 %v2417_v54, %v1089_v43 }
 0x1d2   : > { %v1291_v36 = vadd.f32 %v2354_v55, %v1290_v47  ;;  %v956_v21 = vrot.slane %v916_v63, 1 }
 0x1d3   : > { %v1211_v3 = vrot.slane %v1171_v13, 2 }
 0x1d4   : > { %v1295_v48 = vadd.f32 %v1294_v60, %v1291_v36  ;;  %v957_v30 = vsel %vm933_vm1, %v955_v31, %v956_v21 }
 0x1d5   : > { %v973_v23 = vadd.f32 %v957_v30, %v2316_v40 }
 0x1d6   : > { %v1296_v45 = vmax.f32 %v1295_v48, 0.0  ;;  %v1032_v0 = vpop.f32.mrf.mxu2  ;;  %v1094_v49 = vpop.f32.mrf.mxu3 }
 0x1d7   : > { %v1091_v2 = vadd.f32 %v1090_v37, %v1032_v0  ;;  %v898_v12 = vpop.f32.mrf.mxu1 }
 0x1d8   : > { %1706 = vst.msk [vmem:[%s2367_s10 + $0x30] sm:$0xff] %vm373_vm0, %v1296_v45 }
 0x1d9   : > { %v1172_v51 = vadd.f32 %v2425_v46, %v1091_v2 }
 0x1db   : > { %v1212_v9 = vrot.slane %v1172_v51, 2 }
 0x1dd   : > { %v1213_v1 = vsel %vm1189_vm2, %v1211_v3, %v1212_v9 }
 0x1de   : > { %v1229_v50 = vadd.f32 %v1213_v1, %v973_v23  ;;  %v1035_v40 = vpop.f32.mrf.mxu2 }
 0x1df   : > { %v899_v29 = vpop.f32.mrf.mxu1 }
 0x1e0   : > { %v1299_v54 = vmul.f32 %v2347_v10, %v1229_v50 }
 0x1e2   : > { %v1300_v46 = vadd.f32 %v2354_v55, %v1299_v54 }
 0x1e4   : > { %v1304_v33 = vadd.f32 %v1303_v19, %v1300_v46 }
 0x1e6   : > { %v1305_v4 = vmax.f32 %v1304_v33, 0.0  ;;  %v1036_v16 = vpop.f32.mrf.mxu2 }
 0x1e8   : > { %1708 = vst.msk [vmem:[%s2367_s10 + $0x38] sm:$0xff] %vm373_vm0, %v1305_v4 }
 0x1e9   : > { %1839 = shalt.err (!%p1836_p5)
}
 0x1ea   : > { %s1892_s8 = smov 128   ;;  %s1893_s10 = smov 8  }
 0x1eb   : > { %1753 = dma.vmem_to_hbm [thread:$0]  (%p1964_p4), %s1324_s16, 1024, %s1326_s17, %s1309_s21, %s1892_s8, %s1892_s8, %s1893_s10  }
 0x1ec PF: > { %p1759_p6 = scmp.ge.s32.totalorder %s1890_s23, 2  ;;  %s1340_s11 = sand.u32 1, %s1870_s18  }
 0x1ed   : > { %s1341_s12 = scalar_lea.sflag [#allocation3], %s1340_s11 }
 0x1ee   : > { %p1756_p7 = pnand %p1759_p6, %p1971_p8 }
 0x1f0   : > { %p1757_p9 = pneg %p1756_p7 }
 0x1f2   : > { %1865 = dma.done.wait (%p1757_p9), %s1341_s12, 1024  }
 0x1f3   : > { %1867 = vsyncadd (%p1757_p9), %s1341_s12, 4294966272  ;;  %s18_s23 = sadd.s32 1, %s1890_s23   ;;  %s2508_s18 = smov %s1874_s19 }
 0x1f4   : > { %p15_p10 = scmp.ge.s32.totalorder %s18_s23, 4   ;;  %s2509_s19 = smov %s1878_s20 }
 0x1f5   : > { %s2510_s20 = smov %s1977_s6  ;;  %s2511_s21 = smov %s1886_s22 }
 0x1f6   : > { %s2512_s22 = smov %s2514_s26  ;;  %17 = sbr.rel (!%p15_p10) target bundleno = 4 (0x4), region = 103 }
 0x1fb   :  { %1347 = vsyncpa [#allocation3], 1 }
 0x1fc   :  { %1349 = vsyncpa [#allocation3 + $0x1], 1 }

// kernel: basic_block_forward.4
= control target key start
LH: loop header
LB: loop body
LE: loop exit
PB: predicated region body
PF: predicated region fallthrough
CT: control target
= control target key end

     0   :  { %s2002_s15 = smov 0   ;;  %s2004_s16 = smov 0   ;;  %s2420_s0 = inlined_call_operand.vmem [shape: bf16[2,4,152,8], index: 0, kind: input, shape index: {}]   ;;  %s2421_s1 = inlined_call_operand.vmem [shape: bf16[9,8,16], index: 1, kind: input, shape index: {}]   ;;  %s2422_s2 = inlined_call_operand.vmem [shape: f32[1,16], index: 2, kind: input, shape index: {}]   ;;  %s2423_s3 = inlined_call_operand.vmem [shape: f32[1,16], index: 3, kind: input, shape index: {}]   ;;  %s2424_s4 = inlined_call_operand.vmem [shape: bf16[2,8,8,16], index: 4, kind: output, shape index: {}]  }
   0x1   :  { %s2006_s17 = smov 0  }
   0x2 LB: > { %s26_s18 = sadd.s32 1, %s1971_s16  ;;  %p1494_p0 = scmp.ge.s32.totalorder %s1975_s17, 1  ;;  %s1975_s17 = sphi %s2006_s17, %s14_s17   ;;  %s1971_s16 = sphi %s2004_s16, %s2426_s16   ;;  %s1967_s15 = sphi %s2002_s15, %s2425_s15  }
   0x3   : > { %p28_p1 = scmp.ge.s32.totalorder %s26_s18, 2  ;;  %p176_p2 = scmp.lt.s32.totalorder %s1975_s17, 3 }
   0x5   : > { %s2428_s18 = smov (%p28_p1, %s26_s18), 0  ;;  %p177_p3 = pnand %p1494_p0, %p176_p2 }
   0x6   : > { %p206_p4 = scmp.lt.s32.totalorder (!%p177_p3), %s1967_s15, 1 }
   0x7   : > { %180 = sbr.rel (%p177_p3) target bundleno = 482 (0x1e2), region = 36 }
   0xc   : > { %v1515_v0 = vld [vmem:[%s2421_s1 + $0x4] sm:$0xf]  ;;  %vm338_vm0 = vcmask 1043456   ;;  %v1615_v2 = vld [vmem:[%s2421_s1 + $0xc] sm:$0xf]  ;;  %s2430_s15 = smov (!%p206_p4, %s1967_s15), 1 }
   0xd   : > { %v340_v1 = vsel %vm338_vm0, %v1515_v0, 0  ;;  %v244_v3 = vld [vmem:[%s2421_s1] sm:$0xf]  ;;  %v596_v4 = vsel %vm338_vm0, %v1615_v2, 0  ;;  %v1674_v6 = vld [vmem:[%s2421_s1 + $0x10] sm:$0xf] }
   0xe   : > { %1923 = vmatpush.bf16.msra.mxu1 %v340_v1  ;;  %1924 = vmatpush.bf16.msra.mxu2 %v340_v1  ;;  %v457_v5 = vsel %vm338_vm0, %v244_v3, 0  ;;  %v743_v7 = vsel %vm338_vm0, %v1674_v6, 0  ;;  %s1926_s27 = smul.u32 304, %s2430_s15  ;;  %vm310_vm1 = vcmask 64512   ;;  %v1733_v12 = vld [vmem:[%s2421_s1 + $0x18] sm:$0xf] }
   0xf   : > { %1925 = vmatpush.bf16.msra.mxu3 %v340_v1  ;;  %349 = vmatpush.bf16.msra.mxu0 %v340_v1  ;;  %v892_v13 = vsel %vm338_vm0, %v1733_v12, 0  ;;  %v1836_v20 = vld [vmem:[%s2421_s1 + $0x14] sm:$0xf]  ;;  %v1835_v21 = vld [vmem:[%s2421_s1 + $0x8] sm:$0xf]  ;;  %vm1296_vm2 = vcmask 1046528  }
  0x10   : > { %s2042_s30 = scalar_lea.vmem %s2420_s0, %s1926_s27  ;;  %v1098_v22 = vsel %vm338_vm0, %v1836_v20, 0  ;;  %v1153_v23 = vsel %vm338_vm0, %v1835_v21, 0  ;;  %v1793_v24 = vld [vmem:[%s2421_s1 + $0x1c] sm:$0xf]  ;;  %v1855_v25 = vld [vmem:[%s2421_s1 + $0x20] sm:$0xf] }
  0x11   : > { %v1884_v8 = vld [vmem:[%s2042_s30 + $0x54] sm:$0xff]  ;;  %v1887_v9 = vld [vmem:[%s2042_s30 + $0x6c] sm:$0xff]  ;;  %v1890_v10 = vld [vmem:[%s2042_s30 + $0x84] sm:$0xff]  ;;  %v1039_v26 = vsel %vm338_vm0, %v1793_v24, 0  ;;  %v1210_v27 = vsel %vm338_vm0, %v1855_v25, 0  ;;  %s1874_s23 = sshll.u32 %s2430_s15, 5 }
  0x12   : > { %605 = vmatpush.bf16.msrb.mxu2 %v596_v4  ;;  %466 = vmatpush.bf16.msrb.mxu1 %v457_v5  ;;  %v1883_v11 = vld [vmem:[%s2042_s30 + $0x4c] sm:$0xff]  ;;  %v1885_v16 = vld [vmem:[%s2042_s30 + $0x5c] sm:$0xff]  ;;  %v1888_v17 = vld [vmem:[%s2042_s30 + $0x74] sm:$0xff]  ;;  %s2364_s26 = scalar_lea.vmem %s2424_s4, %s1874_s23  ;;  %vm1349_vm3 = vcmask 125952  }
  0x13   : > { %752 = vmatpush.bf16.msrb.mxu3 %v743_v7  ;;  %1549 = vmatmul.msk.bf16.vlgmr.msra.gmra.mxu1 %vm310_vm1, %v1884_v8  ;;  %v1514_v14 = vld [vmem:[%s2042_s30 + $0x8c] sm:$0xf]  ;;  %v1886_v28 = vld [vmem:[%s2042_s30 + $0x64] sm:$0xff]  ;;  %v1889_v29 = vld [vmem:[%s2042_s30 + $0x7c] sm:$0xff] }
  0x14   : > { %1552 = vmatmul.msk.bf16.vlgmr.msra.gmra.mxu2 %vm310_vm1, %v1887_v9  ;;  %1555 = vmatmul.msk.bf16.vlgmr.msra.gmra.mxu3 %vm310_vm1, %v1890_v10  ;;  %v300_v15 = vunpack.c.l.b16 %v1514_v14  ;;  %v2060_v19 = vld [vmem:[%s2042_s30 + $0x8] sm:$0xff]  ;;  %v2087_v31 = vld [vmem:[%s2042_s30 + $0x10] sm:$0xff]  ;;  %v2095_v32 = vld [vmem:[%s2042_s30] sm:$0xff] }
  0x15   : > { %1548 = vmatmul.msk.bf16.vlgmr.msra.gmra.mxu0 %vm310_vm1, %v1883_v11  ;;  %v1899_v30 = vld [vmem:[%s2042_s30 + $0xe4] sm:$0xff]  ;;  %v2098_v33 = vld [vmem:[%s2042_s30 + $0x98] sm:$0xff]  ;;  %v1900_v34 = vld [vmem:[%s2042_s30 + $0xec] sm:$0xff] }
  0x16   : > { %901 = vmatpush.bf16.msrb.mxu0 %v892_v13  ;;  %v309_v18 = vpack.c.b16 %v300_v15, %v300_v15  ;;  %1107 = vmatpush.bf16.msra.mxu2 %v1098_v22  ;;  %v2102_v35 = vld [vmem:[%s2042_s30 + $0x18] sm:$0xff]  ;;  %v2112_v36 = vld [vmem:[%s2042_s30 + $0x8] sm:$0xff]  ;;  %v2115_v37 = vld [vmem:[%s2042_s30 + $0xa0] sm:$0xff] }
  0x17   : > { %1162 = vmatpush.bf16.msra.mxu3 %v1153_v23  ;;  %1048 = vmatpush.bf16.msra.mxu1 %v1039_v26  ;;  %v1901_v38 = vld [vmem:[%s2042_s30 + $0xf4] sm:$0xff]  ;;  %v2119_v39 = vld [vmem:[%s2042_s30 + $0x20] sm:$0xff]  ;;  %v2132_v41 = vld [vmem:[%s2042_s30 + $0xa8] sm:$0xff] }
  0x18   : > { %v2129_v40 = vld [vmem:[%s2042_s30 + $0x10] sm:$0xff]  ;;  %v1902_v42 = vld [vmem:[%s2042_s30 + $0xfc] sm:$0xff]  ;;  %v2136_v43 = vld [vmem:[%s2042_s30 + $0x28] sm:$0xff] }
  0x19   : > { %v2146_v44 = vld [vmem:[%s2042_s30 + $0x18] sm:$0xff]  ;;  %v2149_v45 = vld [vmem:[%s2042_s30 + $0xb0] sm:$0xff]  ;;  %v1903_v46 = vld [vmem:[%s2042_s30 + $0x104] sm:$0xff] }
  0x1a   : > { %1219 = vmatpush.bf16.msra.mxu0 %v1210_v27  ;;  %v2153_v47 = vld [vmem:[%s2042_s30 + $0x30] sm:$0xff]  ;;  %v2163_v48 = vld [vmem:[%s2042_s30 + $0x20] sm:$0xff]  ;;  %v2166_v49 = vld [vmem:[%s2042_s30 + $0xb8] sm:$0xff] }
  0x1b   : > { %v1904_v50 = vld [vmem:[%s2042_s30 + $0x10c] sm:$0xff]  ;;  %v2170_v51 = vld [vmem:[%s2042_s30 + $0x38] sm:$0xff]  ;;  %v2183_v53 = vld [vmem:[%s2042_s30 + $0xc0] sm:$0xff] }
  0x1c   : > { %v2180_v52 = vld [vmem:[%s2042_s30 + $0x28] sm:$0xff]  ;;  %v1905_v55 = vld [vmem:[%s2042_s30 + $0x114] sm:$0xff]  ;;  %v2189_v56 = vld [vmem:[%s2042_s30 + $0x40] sm:$0xff] }
  0x1d   : > { %v1732_v63 = vld [vmem:[%s2042_s30 + $0x48] sm:$0xf]  ;;  %v2204_v0 = vld [vmem:[%s2042_s30 + $0x30] sm:$0xff]  ;;  %v1906_v5 = vld [vmem:[%s2042_s30 + $0x11c] sm:$0xff] }
  0x1e   : > { %v2207_v1 = vld [vmem:[%s2042_s30 + $0xc8] sm:$0xff]  ;;  %v854_v3 = vunpack.c.l.b16 %v1732_v63  ;;  %v1673_v11 = vld [vmem:[%s2042_s30 + $0x124] sm:$0xf]  ;;  %v2225_v15 = vld [vmem:[%s2042_s30 + $0x38] sm:$0xff] }
  0x1f   : > { %v705_v13 = vunpack.c.l.b16 %v1673_v11  ;;  %v243_v25 = vld [vmem:[%s2042_s30 + $0x40] sm:$0xf]  ;;  %v1614_v26 = vld [vmem:[%s2042_s30 + $0xd8] sm:$0xf] }
  0x20   : > { %v2212_v6 = vpack.c.b16 %v854_v3, %v854_v3 }
  0x21   : > { %v714_v20 = vpack.c.b16 %v705_v13, %v705_v13 }
  0x23   : > { %1550 = vmatmul.msk.bf16.gmra.mxu1 %vm310_vm1, %v1885_v16  ;;  %v2228_v16 = vld [vmem:[%s2042_s30 + $0xd0] sm:$0xff] }
  0x24   : > { %1553 = vmatmul.msk.bf16.gmra.mxu2 %vm310_vm1, %v1888_v17  ;;  %1556 = vmatmul.msk.bf16.gmra.mxu3 %vm310_vm1, %v309_v18 }
  0x25   : > { %1766 = vmatmul.msk.bf16.vlgmr.msrb.gmra.mxu0 %vm310_vm1, %v2060_v19 }
  0x33   : > { %1551 = vmatmul.msk.bf16.gmra.mxu1 %vm310_vm1, %v1886_v28  ;;  %v419_v28 = vunpack.c.l.b16 %v243_v25 }
  0x34   : > { %1554 = vmatmul.msk.bf16.gmra.mxu2 %vm310_vm1, %v1889_v29  ;;  %1707 = vmatmul.msk.bf16.vlgmr.msrb.gmra.mxu3 %vm310_vm1, %v1899_v30  ;;  %v558_v29 = vunpack.c.l.b16 %v1614_v26 }
  0x35   : > { %1767 = vmatmul.msk.bf16.gmra.mxu0 %vm310_vm1, %v2087_v31 }
  0x43   : > { %1589 = vmatmul.msk.bf16.vlgmr.msrb.gmra.mxu1 %vm310_vm1, %v2095_v32 }
  0x44   : > { %1648 = vmatmul.msk.bf16.vlgmr.msrb.gmra.mxu2 %vm310_vm1, %v2098_v33  ;;  %1708 = vmatmul.msk.bf16.gmra.mxu3 %vm310_vm1, %v1900_v34  ;;  %v2243_v34 = vpack.c.b16 %v419_v28, %v419_v28 }
  0x45   : > { %1768 = vmatmul.msk.bf16.gmra.mxu0 %vm310_vm1, %v2102_v35 }
  0x53   : > { %1590 = vmatmul.msk.bf16.gmra.mxu1 %vm310_vm1, %v2112_v36 }
  0x54   : > { %1649 = vmatmul.msk.bf16.gmra.mxu2 %vm310_vm1, %v2115_v37  ;;  %1709 = vmatmul.msk.bf16.gmra.mxu3 %vm310_vm1, %v1901_v38  ;;  %v2245_v38 = vpack.c.b16 %v558_v29, %v558_v29 }
  0x55   : > { %1769 = vmatmul.msk.bf16.gmra.mxu0 %vm310_vm1, %v2119_v39 }
  0x63   : > { %1591 = vmatmul.msk.bf16.gmra.mxu1 %vm310_vm1, %v2129_v40 }
  0x64   : > { %1650 = vmatmul.msk.bf16.gmra.mxu2 %vm310_vm1, %v2132_v41  ;;  %1710 = vmatmul.msk.bf16.gmra.mxu3 %vm310_vm1, %v1902_v42 }
  0x65   : > { %1770 = vmatmul.msk.bf16.gmra.mxu0 %vm310_vm1, %v2136_v43 }
  0x73   : > { %1592 = vmatmul.msk.bf16.gmra.mxu1 %vm310_vm1, %v2146_v44 }
  0x74   : > { %1651 = vmatmul.msk.bf16.gmra.mxu2 %vm310_vm1, %v2149_v45  ;;  %1711 = vmatmul.msk.bf16.gmra.mxu3 %vm310_vm1, %v1903_v46 }
  0x75   : > { %1771 = vmatmul.msk.bf16.gmra.mxu0 %vm310_vm1, %v2153_v47 }
  0x83   : > { %1593 = vmatmul.msk.bf16.gmra.mxu1 %vm310_vm1, %v2163_v48 }
  0x84   : > { %1652 = vmatmul.msk.bf16.gmra.mxu2 %vm310_vm1, %v2166_v49  ;;  %1712 = vmatmul.msk.bf16.gmra.mxu3 %vm310_vm1, %v1904_v50 }
  0x85   : > { %1772 = vmatmul.msk.bf16.gmra.mxu0 %vm310_vm1, %v2170_v51 }
  0x90   : > { %v2185_v54 = vpop.f32.mrf.mxu1 }
  0x92   : > { %v351_v57 = vpop.f32.mrf.mxu0 }
  0x93   : > { %1594 = vmatmul.msk.bf16.gmra.mxu1 %vm310_vm1, %v2180_v52 }
  0x94   : > { %1653 = vmatmul.msk.bf16.gmra.mxu2 %vm310_vm1, %v2183_v53  ;;  %1713 = vmatmul.msk.bf16.gmra.mxu3 %vm310_vm1, %v1905_v55 }
  0x95   : > { %1773 = vmatmul.msk.bf16.gmra.mxu0 %vm310_vm1, %v2189_v56 }
  0x97   : > { %v2198_v58 = vpop.f32.mrf.mxu2  ;;  %v2200_v59 = vpop.f32.mrf.mxu3 }
  0x98   : > { %v357_v60 = vpop.f32.mrf.mxu1 }
  0x9a   : > { %v353_v61 = vpop.f32.mrf.mxu0 }
  0x9f   : > { %v369_v62 = vpop.f32.mrf.mxu2  ;;  %v381_v2 = vpop.f32.mrf.mxu3 }
  0xa0   : > { %v2209_v4 = vpop.f32.mrf.mxu1 }
  0xa2   : > { %v903_v7 = vpop.f32.mrf.mxu0 }
  0xa3   : > { %1595 = vmatmul.msk.bf16.gmra.mxu1 %vm310_vm1, %v2204_v0 }
  0xa4   : > { %1654 = vmatmul.msk.bf16.gmra.mxu2 %vm310_vm1, %v2207_v1  ;;  %1714 = vmatmul.msk.bf16.gmra.mxu3 %vm310_vm1, %v1906_v5  ;;  %v1915_v5 = vld [vmem:[%s2042_s30 + $0x54] sm:$0xff] }
  0xa5   : > { %1774 = vmatmul.msk.bf16.gmra.mxu0 %vm310_vm1, %v2212_v6 }
  0xa7   : > { %v2221_v8 = vpop.f32.mrf.mxu2  ;;  %v383_v9 = vpop.f32.mrf.mxu3 }
  0xa8   : > { %v361_v10 = vpop.f32.mrf.mxu1 }
  0xaa   : > { %v905_v12 = vpop.f32.mrf.mxu0 }
  0xaf   : > { %v373_v14 = vpop.f32.mrf.mxu2  ;;  %v384_v17 = vpop.f32.mrf.mxu3 }
  0xb0   : > { %v2230_v18 = vpop.f32.mrf.mxu1 }
  0xb2   : > { %v907_v21 = vpop.f32.mrf.mxu0 }
  0xb3   : > { %1596 = vmatmul.msk.bf16.gmra.mxu1 %vm310_vm1, %v2225_v15 }
  0xb4   : > { %1655 = vmatmul.msk.bf16.gmra.mxu2 %vm310_vm1, %v2228_v16  ;;  %1715 = vmatmul.msk.bf16.gmra.mxu3 %vm310_vm1, %v714_v20 }
  0xb5   : > { %1856 = vmatmul.msk.bf16.vlgmr.msra.gmra.mxu0 %vm310_vm1, %v2060_v19 }
  0xb7   : > { %v2239_v22 = vpop.f32.mrf.mxu2  ;;  %v754_v23 = vpop.f32.mrf.mxu3 }
  0xb8   : > { %v365_v24 = vpop.f32.mrf.mxu1 }
  0xba   : > { %v909_v27 = vpop.f32.mrf.mxu0 }
  0xbf   : > { %v377_v30 = vpop.f32.mrf.mxu2  ;;  %v756_v42 = vpop.f32.mrf.mxu3 }
  0xc0   : > { %v468_v46 = vpop.f32.mrf.mxu1  ;;  %v1917_v42 = vld [vmem:[%s2042_s30 + $0x64] sm:$0xff] }
  0xc1   : > { %v469_v50 = vadd.f32 %v468_v46, %v351_v57 }
  0xc2   : > { %v911_v55 = vpop.f32.mrf.mxu0 }
  0xc3   : > { %1597 = vmatmul.msk.bf16.gmra.mxu1 %vm310_vm1, %v2243_v34 }
  0xc4   : > { %1656 = vmatmul.msk.bf16.gmra.mxu2 %vm310_vm1, %v2245_v38  ;;  %1846 = vmatmul.msk.bf16.vlgmr.msra.gmra.mxu3 %vm310_vm1, %v2095_v32 }
  0xc5   : > { %1857 = vmatmul.msk.bf16.gmra.mxu0 %vm310_vm1, %v2087_v31 }
  0xc7   : > { %v607_v19 = vpop.f32.mrf.mxu2  ;;  %v758_v61 = vpop.f32.mrf.mxu3 }
  0xc8   : > { %v642_v60 = vadd.f32 %v607_v19, %v469_v50  ;;  %v470_v62 = vpop.f32.mrf.mxu1 }
  0xca   : > { %v789_v63 = vadd.f32 %v754_v23, %v642_v60  ;;  %v913_v2 = vpop.f32.mrf.mxu0  ;;  %v1916_v23 = vld [vmem:[%s2042_s30 + $0x5c] sm:$0xff] }
  0xcb   : > { %v1918_v2 = vld [vmem:[%s2042_s30 + $0x6c] sm:$0xff] }
  0xcc   : > { %v2255_v57 = vadd.f32 %v903_v7, %v789_v63 }
  0xcf   : > { %v609_v3 = vpop.f32.mrf.mxu2  ;;  %v760_v9 = vpop.f32.mrf.mxu3 }
  0xd0   : > { %v472_v10 = vpop.f32.mrf.mxu1 }
  0xd1   : > { %v473_v11 = vadd.f32 %v472_v10, %v2185_v54 }
  0xd2   : > { %v915_v12 = vpop.f32.mrf.mxu0 }
  0xd3   : > { %1826 = vmatmul.msk.bf16.vlgmr.msra.gmra.mxu1 %vm310_vm1, %v1915_v5 }
  0xd4   : > { %1837 = vmatmul.msk.bf16.vlgmr.msra.gmra.mxu2 %vm310_vm1, %v2098_v33  ;;  %1847 = vmatmul.msk.bf16.gmra.mxu3 %vm310_vm1, %v2112_v36 }
  0xd5   : > { %1858 = vmatmul.msk.bf16.gmra.mxu0 %vm310_vm1, %v2102_v35 }
  0xd7   : > { %v611_v31 = vpop.f32.mrf.mxu2  ;;  %v762_v7 = vpop.f32.mrf.mxu3 }
  0xd8   : > { %v643_v32 = vadd.f32 %v611_v31, %v473_v11  ;;  %v474_v13 = vpop.f32.mrf.mxu1 }
  0xd9   : > { %v1919_v13 = vld [vmem:[%s2042_s30 + $0x74] sm:$0xff] }
  0xda   : > { %v790_v14 = vadd.f32 %v758_v61, %v643_v32  ;;  %v917_v17 = vpop.f32.mrf.mxu0 }
  0xdc   : > { %v2266_v20 = vadd.f32 %v907_v21, %v790_v14 }
  0xdf   : > { %v613_v54 = vpop.f32.mrf.mxu2  ;;  %v764_v24 = vpop.f32.mrf.mxu3 }
  0xe0   : > { %v476_v25 = vpop.f32.mrf.mxu1 }
  0xe1   : > { %v477_v33 = vadd.f32 %v476_v25, %v2209_v4 }
  0xe2   : > { %v919_v26 = vpop.f32.mrf.mxu0 }
  0xe3   : > { %1827 = vmatmul.msk.bf16.gmra.mxu1 %vm310_vm1, %v1916_v23 }
  0xe4   : > { %1838 = vmatmul.msk.bf16.gmra.mxu2 %vm310_vm1, %v2115_v37  ;;  %1848 = vmatmul.msk.bf16.gmra.mxu3 %vm310_vm1, %v2129_v40 }
  0xe5   : > { %1859 = vmatmul.msk.bf16.gmra.mxu0 %vm310_vm1, %v2119_v39 }
  0xe7   : > { %v615_v35 = vpop.f32.mrf.mxu2  ;;  %v766_v21 = vpop.f32.mrf.mxu3 }
  0xe8   : > { %v644_v36 = vadd.f32 %v615_v35, %v477_v33  ;;  %v478_v27 = vpop.f32.mrf.mxu1  ;;  %v1920_v35 = vld [vmem:[%s2042_s30 + $0x7c] sm:$0xff] }
  0xea   : > { %v791_v28 = vadd.f32 %v762_v7, %v644_v36  ;;  %v921_v29 = vpop.f32.mrf.mxu0 }
  0xec   : > { %v2277_v30 = vadd.f32 %v911_v55, %v791_v28 }
  0xef   : > { %v617_v4 = vpop.f32.mrf.mxu2  ;;  %v768_v46 = vpop.f32.mrf.mxu3 }
  0xf0   : > { %v480_v50 = vpop.f32.mrf.mxu1 }
  0xf1   : > { %v481_v37 = vadd.f32 %v480_v50, %v2230_v18  ;;  %v1921_v50 = vld [vmem:[%s2042_s30 + $0x84] sm:$0xff] }
  0xf2   : > { %v923_v19 = vpop.f32.mrf.mxu0 }
  0xf3   : > { %1828 = vmatmul.msk.bf16.gmra.mxu1 %vm310_vm1, %v1917_v42 }
  0xf4   : > { %1839 = vmatmul.msk.bf16.gmra.mxu2 %vm310_vm1, %v2132_v41  ;;  %1849 = vmatmul.msk.bf16.gmra.mxu3 %vm310_vm1, %v2146_v44 }
  0xf5   : > { %1860 = vmatmul.msk.bf16.gmra.mxu0 %vm310_vm1, %v2136_v43 }
  0xf7   : > { %v619_v39 = vpop.f32.mrf.mxu2  ;;  %v770_v55 = vpop.f32.mrf.mxu3 }
  0xf8   : > { %v645_v40 = vadd.f32 %v619_v39, %v481_v37  ;;  %v482_v60 = vpop.f32.mrf.mxu1 }
  0xfa   : > { %v792_v61 = vadd.f32 %v766_v21, %v645_v40  ;;  %v925_v62 = vpop.f32.mrf.mxu0 }
  0xfc   : > { %v2288_v63 = vadd.f32 %v915_v12, %v792_v61 }
  0xff   : > { %v621_v18 = vpop.f32.mrf.mxu2  ;;  %v772_v3 = vpop.f32.mrf.mxu3 }
 0x100   : > { %v484_v5 = vpop.f32.mrf.mxu1  ;;  %v1922_v18 = vld [vmem:[%s2042_s30 + $0x8c] sm:$0xff] }
 0x101   : > { %v485_v43 = vadd.f32 %v484_v5, %v2198_v58  ;;  %v1792_v5 = vld [vmem:[%s2042_s30 + $0x94] sm:$0xf] }
 0x102   : > { %v927_v41 = vpop.f32.mrf.mxu0 }
 0x103   : > { %1829 = vmatmul.msk.bf16.gmra.mxu1 %vm310_vm1, %v1918_v2 }
 0x104   : > { %1840 = vmatmul.msk.bf16.gmra.mxu2 %vm310_vm1, %v2149_v45  ;;  %1850 = vmatmul.msk.bf16.gmra.mxu3 %vm310_vm1, %v2163_v48 }
 0x105   : > { %1861 = vmatmul.msk.bf16.gmra.mxu0 %vm310_vm1, %v2153_v47 }
 0x107   : > { %v623_v44 = vpop.f32.mrf.mxu2  ;;  %v774_v10 = vpop.f32.mrf.mxu3 }
 0x108   : > { %v646_v9 = vadd.f32 %v623_v44, %v485_v43  ;;  %v486_v11 = vpop.f32.mrf.mxu1  ;;  %v1001_v43 = vunpack.c.l.b16 %v1792_v5 }
 0x10a   : > { %v793_v12 = vadd.f32 %v770_v55, %v646_v9  ;;  %v929_v31 = vpop.f32.mrf.mxu0  ;;  %v1010_v9 = vpack.c.b16 %v1001_v43, %v1001_v43 }
 0x10c   : > { %v2299_v32 = vadd.f32 %v919_v26, %v793_v12 }
 0x10f   : > { %v625_v7 = vpop.f32.mrf.mxu2  ;;  %v776_v14 = vpop.f32.mrf.mxu3 }
 0x110   : > { %v488_v45 = vpop.f32.mrf.mxu1 }
 0x111   : > { %v489_v47 = vadd.f32 %v488_v45, %v2221_v8 }
 0x112   : > { %v931_v17 = vpop.f32.mrf.mxu0 }
 0x113   : > { %1830 = vmatmul.msk.bf16.gmra.mxu1 %vm310_vm1, %v1919_v13 }
 0x114   : > { %1841 = vmatmul.msk.bf16.gmra.mxu2 %vm310_vm1, %v2166_v49  ;;  %1851 = vmatmul.msk.bf16.gmra.mxu3 %vm310_vm1, %v2180_v52 }
 0x115   : > { %1862 = vmatmul.msk.bf16.gmra.mxu0 %vm310_vm1, %v2170_v51 }
 0x117   : > { %v627_v48 = vpop.f32.mrf.mxu2  ;;  %v778_v54 = vpop.f32.mrf.mxu3 }
 0x118   : > { %v647_v58 = vadd.f32 %v627_v48, %v489_v47  ;;  %v490_v23 = vpop.f32.mrf.mxu1 }
 0x11a   : > { %v794_v24 = vadd.f32 %v774_v10, %v647_v58  ;;  %v933_v25 = vpop.f32.mrf.mxu0 }
 0x11c   : > { %v2310_v33 = vadd.f32 %v923_v19, %v794_v24 }
 0x11f   : > { %v629_v26 = vpop.f32.mrf.mxu2  ;;  %v780_v36 = vpop.f32.mrf.mxu3 }
 0x120   : > { %v492_v49 = vpop.f32.mrf.mxu1  ;;  %v2356_v36 = vld [vmem:[%s2423_s3] ss:$0 sm:$0xff] }
 0x121   : > { %v493_v51 = vadd.f32 %v492_v49, %v2239_v22 }
 0x122   : > { %v935_v21 = vpop.f32.mrf.mxu0 }
 0x123   : > { %1831 = vmatmul.msk.bf16.gmra.mxu1 %vm310_vm1, %v1920_v35 }
 0x124   : > { %1842 = vmatmul.msk.bf16.gmra.mxu2 %vm310_vm1, %v2183_v53  ;;  %1852 = vmatmul.msk.bf16.gmra.mxu3 %vm310_vm1, %v2204_v0 }
 0x125   : > { %1863 = vmatmul.msk.bf16.gmra.mxu0 %vm310_vm1, %v2189_v56 }
 0x127   : > { %v631_v52 = vpop.f32.mrf.mxu2  ;;  %v782_v27 = vpop.f32.mrf.mxu3 }
 0x128   : > { %v648_v8 = vadd.f32 %v631_v52, %v493_v51  ;;  %v494_v28 = vpop.f32.mrf.mxu1 }
 0x12a   : > { %v795_v29 = vadd.f32 %v778_v54, %v648_v8  ;;  %v936_v4 = vpop.f32.mrf.mxu0 }
 0x12c   : > { %v2321_v42 = vadd.f32 %v927_v41, %v795_v29 }
 0x12f   : > { %v633_v46 = vpop.f32.mrf.mxu2  ;;  %v784_v37 = vpop.f32.mrf.mxu3 }
 0x130   : > { %v496_v53 = vpop.f32.mrf.mxu1 }
 0x131   : > { %v497_v56 = vadd.f32 %v496_v53, %v2200_v59 }
 0x132   : > { %v1221_v19 = vpop.f32.mrf.mxu0 }
 0x133   : > { %1832 = vmatmul.msk.bf16.gmra.mxu1 %vm310_vm1, %v1921_v50 }
 0x134   : > { %1843 = vmatmul.msk.bf16.gmra.mxu2 %vm310_vm1, %v2207_v1  ;;  %1853 = vmatmul.msk.bf16.gmra.mxu3 %vm310_vm1, %v2225_v15 }
 0x135   : > { %1864 = vmatmul.msk.bf16.gmra.mxu0 %vm310_vm1, %v2212_v6 }
 0x137   : > { %v635_v0 = vpop.f32.mrf.mxu2  ;;  %v786_v39 = vpop.f32.mrf.mxu3 }
 0x138   : > { %v649_v22 = vadd.f32 %v635_v0, %v497_v56  ;;  %v498_v40 = vpop.f32.mrf.mxu1 }
 0x13a   : > { %v796_v55 = vadd.f32 %v782_v27, %v649_v22  ;;  %v1223_v60 = vpop.f32.mrf.mxu0 }
 0x13c   : > { %v2332_v61 = vadd.f32 %v931_v17, %v796_v55 }
 0x13f   : > { %v637_v62 = vpop.f32.mrf.mxu2  ;;  %v787_v1 = vpop.f32.mrf.mxu3 }
 0x140   : > { %v500_v2 = vpop.f32.mrf.mxu1 }
 0x142   : > { %v1226_v3 = vpop.f32.mrf.mxu0 }
 0x143   : > { %1833 = vmatmul.msk.bf16.gmra.mxu1 %vm310_vm1, %v1922_v18 }
 0x144   : > { %1844 = vmatmul.msk.bf16.gmra.mxu2 %vm310_vm1, %v2228_v16  ;;  %1854 = vmatmul.msk.bf16.gmra.mxu3 %vm310_vm1, %v2243_v34 }
 0x147   : > { %v639_v59 = vpop.f32.mrf.mxu2  ;;  %v1164_v6 = vpop.f32.mrf.mxu3 }
 0x148   : > { %v501_v15 = vpop.f32.mrf.mxu1 }
 0x14a   : > { %v1228_v41 = vpop.f32.mrf.mxu0 }
 0x14f   : > { %v640_v44 = vpop.f32.mrf.mxu2  ;;  %v1166_v10 = vpop.f32.mrf.mxu3 }
 0x150   : > { %v1050_v11 = vpop.f32.mrf.mxu1 }
 0x151   : > { %v1085_v25 = vadd.f32 %v1050_v11, %v2255_v57 }
 0x152   : > { %v1231_v12 = vpop.f32.mrf.mxu0 }
 0x153   : > { %1834 = vmatmul.msk.bf16.gmra.mxu1 %vm310_vm1, %v1010_v9 }
 0x154   : > { %1845 = vmatmul.msk.bf16.gmra.mxu2 %vm310_vm1, %v2245_v38  ;;  %v2350_v38 = vld [vmem:[%s2422_s2] ss:$0 sm:$0xff] }
 0x157   : > { %v1109_v16 = vpop.f32.mrf.mxu2  ;;  %v1169_v31 = vpop.f32.mrf.mxu3 }
 0x158   : > { %v1052_v7 = vpop.f32.mrf.mxu1  ;;  %v1165_v13 = vadd.f32 %v1164_v6, %v1109_v16 }
 0x15a   : > { %v1233_v34 = vpop.f32.mrf.mxu0  ;;  %v1264_v45 = vadd.f32 %v1221_v19, %v1165_v13 }
 0x15c   : > { %v1297_v23 = vrot.slane %v1264_v45, 1 }
 0x15f   : > { %v1111_v14 = vpop.f32.mrf.mxu2  ;;  %v1171_v47 = vpop.f32.mrf.mxu3 }
 0x160   : > { %v1167_v17 = vadd.f32 %v1166_v10, %v1111_v14  ;;  %v1054_v48 = vpop.f32.mrf.mxu1 }
 0x161   : > { %v1086_v39 = vadd.f32 %v1054_v48, %v2266_v20 }
 0x162   : > { %v1265_v58 = vadd.f32 %v1223_v60, %v1167_v17  ;;  %v2344_v54 = vpop.f32.mrf.mxu0 }
 0x164   : > { %v1298_v24 = vrot.slane %v1265_v58, 1 }
 0x166   : > { %v1299_v26 = vsel %vm1296_vm2, %v1297_v23, %v1298_v24 }
 0x167   : > { %v1329_v35 = vadd.f32 %v1299_v26, %v1085_v25  ;;  %v1114_v49 = vpop.f32.mrf.mxu2  ;;  %v1174_v21 = vpop.f32.mrf.mxu3 }
 0x168   : > { %v1056_v52 = vpop.f32.mrf.mxu1  ;;  %v1170_v27 = vadd.f32 %v1169_v31, %v1114_v49 }
 0x169   : > { %v1342_v51 = vmul.f32 %v2350_v38, %v1329_v35 }
 0x16a   : > { %v1238_v8 = vpop.f32.mrf.mxu0  ;;  %v1266_v46 = vadd.f32 %v1226_v3, %v1170_v27 }
 0x16b   : > { %v1346_v57 = vadd.f32 %v2356_v36, %v1342_v51 }
 0x16c   : > { %v1300_v0 = vrot.slane %v1266_v46, 1 }
 0x16d   : > { %v1347_v28 = vmax.f32 %v1346_v57, 0.0 }
 0x16f   : > { %v1348_v29 = vpack.c.bf16 %v1347_v28, %v1347_v28  ;;  %v1116_v4 = vpop.f32.mrf.mxu2  ;;  %v1176_v37 = vpop.f32.mrf.mxu3 }
 0x170   : > { %v1172_v50 = vadd.f32 %v1171_v47, %v1116_v4  ;;  %v1058_v53 = vpop.f32.mrf.mxu1 }
 0x171   : > { %1350 = vst.msk [vmem:[%s2364_s26] sm:$0xf] %vm1349_vm3, %v1348_v29  ;;  %v1087_v31 = vadd.f32 %v1058_v53, %v2277_v30 }
 0x172   : > { %v1267_v19 = vadd.f32 %v1228_v41, %v1172_v50  ;;  %v1241_v56 = vpop.f32.mrf.mxu0 }
 0x174   : > { %v1301_v22 = vrot.slane %v1267_v19, 1 }
 0x176   : > { %v1302_v40 = vsel %vm1296_vm2, %v1300_v0, %v1301_v22 }
 0x177   : > { %v1330_v55 = vadd.f32 %v1302_v40, %v1086_v39  ;;  %v1119_v60 = vpop.f32.mrf.mxu2  ;;  %v1179_v62 = vpop.f32.mrf.mxu3 }
 0x178   : > { %v1060_v1 = vpop.f32.mrf.mxu1  ;;  %v1175_v59 = vadd.f32 %v1174_v21, %v1119_v60 }
 0x179   : > { %v1351_v18 = vmul.f32 %v2350_v38, %v1330_v55 }
 0x17a   : > { %v1243_v3 = vpop.f32.mrf.mxu0  ;;  %v1268_v41 = vadd.f32 %v1231_v12, %v1175_v59 }
 0x17b   : > { %v1352_v2 = vadd.f32 %v2356_v36, %v1351_v18 }
 0x17c   : > { %v1303_v11 = vrot.slane %v1268_v41, 1 }
 0x17d   : > { %v1353_v6 = vmax.f32 %v1352_v2, 0.0 }
 0x17f   : > { %v1354_v15 = vpack.c.bf16 %v1353_v6, %v1353_v6  ;;  %v1121_v5 = vpop.f32.mrf.mxu2  ;;  %v1181_v44 = vpop.f32.mrf.mxu3 }
 0x180   : > { %v1177_v43 = vadd.f32 %v1176_v37, %v1121_v5  ;;  %v1062_v20 = vpop.f32.mrf.mxu1 }
 0x181   : > { %1865 = vst.msk [vmem:[%s2364_s26 + $0x4] sm:$0xf] %vm1349_vm3, %v1354_v15  ;;  %v1088_v57 = vadd.f32 %v1062_v20, %v2288_v63 }
 0x182   : > { %v1269_v9 = vadd.f32 %v1233_v34, %v1177_v43  ;;  %v1246_v10 = vpop.f32.mrf.mxu0 }
 0x184   : > { %v1304_v16 = vrot.slane %v1269_v9, 1 }
 0x186   : > { %v1305_v7 = vsel %vm1296_vm2, %v1303_v11, %v1304_v16 }
 0x187   : > { %v1331_v13 = vadd.f32 %v1305_v7, %v1087_v31  ;;  %v1124_v14 = vpop.f32.mrf.mxu2  ;;  %v1184_v45 = vpop.f32.mrf.mxu3 }
 0x188   : > { %v1064_v12 = vpop.f32.mrf.mxu1  ;;  %v1180_v58 = vadd.f32 %v1179_v62, %v1124_v14 }
 0x189   : > { %v1357_v17 = vmul.f32 %v2350_v38, %v1331_v13 }
 0x18a   : > { %v1248_v48 = vpop.f32.mrf.mxu0  ;;  %v1270_v25 = vadd.f32 %v2344_v54, %v1180_v58 }
 0x18b   : > { %v1358_v47 = vadd.f32 %v2356_v36, %v1357_v17 }
 0x18c   : > { %v1306_v51 = vrot.slane %v1270_v25, 1 }
 0x18d   : > { %v1359_v23 = vmax.f32 %v1358_v47, 0.0 }
 0x18f   : > { %v1360_v34 = vpack.c.bf16 %v1359_v23, %v1359_v23  ;;  %v1126_v24 = vpop.f32.mrf.mxu2  ;;  %v1186_v30 = vpop.f32.mrf.mxu3 }
 0x190   : > { %v1182_v26 = vadd.f32 %v1181_v44, %v1126_v24  ;;  %v1066_v35 = vpop.f32.mrf.mxu1 }
 0x191   : > { %1866 = vst.msk [vmem:[%s2364_s26 + $0x8] sm:$0xf] %vm1349_vm3, %v1360_v34  ;;  %v1089_v1 = vadd.f32 %v1066_v35, %v2299_v32 }
 0x192   : > { %v1271_v49 = vadd.f32 %v1238_v8, %v1182_v26  ;;  %v1251_v21 = vpop.f32.mrf.mxu0 }
 0x194   : > { %v1307_v52 = vrot.slane %v1271_v49, 1 }
 0x196   : > { %v1308_v27 = vsel %vm1296_vm2, %v1306_v51, %v1307_v52 }
 0x197   : > { %v1332_v28 = vadd.f32 %v1308_v27, %v1088_v57  ;;  %v1129_v29 = vpop.f32.mrf.mxu2  ;;  %v1189_v4 = vpop.f32.mrf.mxu3 }
 0x198   : > { %v1068_v54 = vpop.f32.mrf.mxu1  ;;  %v1185_v53 = vadd.f32 %v1184_v45, %v1129_v29 }
 0x199   : > { %v1363_v46 = vmul.f32 %v2350_v38, %v1332_v28 }
 0x19a   : > { %v1253_v37 = vpop.f32.mrf.mxu0  ;;  %v1272_v22 = vadd.f32 %v1241_v56, %v1185_v53 }
 0x19b   : > { %v1364_v50 = vadd.f32 %v2356_v36, %v1363_v46 }
 0x19c   : > { %v1309_v62 = vrot.slane %v1272_v22, 1 }
 0x19d   : > { %v1365_v19 = vmax.f32 %v1364_v50, 0.0 }
 0x19f   : > { %v1366_v8 = vpack.c.bf16 %v1365_v19, %v1365_v19  ;;  %v1131_v0 = vpop.f32.mrf.mxu2  ;;  %v1191_v40 = vpop.f32.mrf.mxu3 }
 0x1a0   : > { %v1187_v39 = vadd.f32 %v1186_v30, %v1131_v0  ;;  %v1070_v63 = vpop.f32.mrf.mxu1 }
 0x1a1   : > { %1867 = vst.msk [vmem:[%s2364_s26 + $0xc] sm:$0xf] %vm1349_vm3, %v1366_v8  ;;  %v1090_v17 = vadd.f32 %v1070_v63, %v2310_v33 }
 0x1a2   : > { %v1273_v55 = vadd.f32 %v1243_v3, %v1187_v39  ;;  %v1256_v60 = vpop.f32.mrf.mxu0 }
 0x1a4   : > { %v1310_v18 = vrot.slane %v1273_v55, 1 }
 0x1a6   : > { %v1311_v2 = vsel %vm1296_vm2, %v1309_v62, %v1310_v18 }
 0x1a7   : > { %v1333_v59 = vadd.f32 %v1311_v2, %v1089_v1  ;;  %v1134_v6 = vpop.f32.mrf.mxu2  ;;  %v1194_v15 = vpop.f32.mrf.mxu3 }
 0x1a8   : > { %v1072_v56 = vpop.f32.mrf.mxu1  ;;  %v1190_v44 = vadd.f32 %v1189_v4, %v1134_v6 }
 0x1a9   : > { %v1369_v5 = vmul.f32 %v2350_v38, %v1333_v59 }
 0x1aa   : > { %v1258_v43 = vpop.f32.mrf.mxu0  ;;  %v1274_v11 = vadd.f32 %v1246_v10, %v1190_v44 }
 0x1ab   : > { %v1370_v41 = vadd.f32 %v2356_v36, %v1369_v5 }
 0x1ac   : > { %v1312_v14 = vrot.slane %v1274_v11, 1 }
 0x1ad   : > { %v1371_v20 = vmax.f32 %v1370_v41, 0.0 }
 0x1af   : > { %v1372_v3 = vpack.c.bf16 %v1371_v20, %v1371_v20  ;;  %v1136_v9 = vpop.f32.mrf.mxu2  ;;  %v1196_v31 = vpop.f32.mrf.mxu3 }
 0x1b0   : > { %v1192_v16 = vadd.f32 %v1191_v40, %v1136_v9  ;;  %v1074_v32 = vpop.f32.mrf.mxu1 }
 0x1b1   : > { %1868 = vst.msk [vmem:[%s2364_s26 + $0x10] sm:$0xf] %vm1349_vm3, %v1372_v3  ;;  %v1091_v29 = vadd.f32 %v1074_v32, %v2321_v42 }
 0x1b2   : > { %v1275_v7 = vadd.f32 %v1248_v48, %v1192_v16  ;;  %v1261_v13 = vpop.f32.mrf.mxu0 }
 0x1b4   : > { %v1313_v45 = vrot.slane %v1275_v7, 1 }
 0x1b6   : > { %v1314_v12 = vsel %vm1296_vm2, %v1312_v14, %v1313_v45 }
 0x1b7   : > { %v1334_v47 = vadd.f32 %v1314_v12, %v1090_v17  ;;  %v1139_v58 = vpop.f32.mrf.mxu2  ;;  %v1199_v23 = vpop.f32.mrf.mxu3 }
 0x1b8   : > { %v1076_v10 = vpop.f32.mrf.mxu1  ;;  %v1195_v26 = vadd.f32 %v1194_v15, %v1139_v58 }
 0x1b9   : > { %v1375_v34 = vmul.f32 %v2350_v38, %v1334_v47 }
 0x1ba   : > { %v1262_v25 = vpop.f32.mrf.mxu0  ;;  %v1276_v49 = vadd.f32 %v1251_v21, %v1195_v26 }
 0x1bb   : > { %v1376_v24 = vadd.f32 %v2356_v36, %v1375_v34 }
 0x1bc   : > { %v1315_v27 = vrot.slane %v1276_v49, 1 }
 0x1bd   : > { %v1377_v30 = vmax.f32 %v1376_v24, 0.0 }
 0x1bf   : > { %v1378_v48 = vpack.c.bf16 %v1377_v30, %v1377_v30  ;;  %v1141_v35 = vpop.f32.mrf.mxu2  ;;  %v1201_v52 = vpop.f32.mrf.mxu3 }
 0x1c0   : > { %v1197_v51 = vadd.f32 %v1196_v31, %v1141_v35  ;;  %v1078_v33 = vpop.f32.mrf.mxu1 }
 0x1c1   : > { %1869 = vst.msk [vmem:[%s2364_s26 + $0x14] sm:$0xf] %vm1349_vm3, %v1378_v48  ;;  %v1092_v1 = vadd.f32 %v1078_v33, %v2332_v61 }
 0x1c2   : > { %v1277_v57 = vadd.f32 %v1253_v37, %v1197_v51 }
 0x1c4   : > { %v1316_v28 = vrot.slane %v1277_v57, 1 }
 0x1c6   : > { %v1317_v4 = vsel %vm1296_vm2, %v1315_v27, %v1316_v28 }
 0x1c7   : > { %v1335_v46 = vadd.f32 %v1317_v4, %v1091_v29  ;;  %v1144_v54 = vpop.f32.mrf.mxu2  ;;  %v1204_v50 = vpop.f32.mrf.mxu3 }
 0x1c8   : > { %v1080_v19 = vpop.f32.mrf.mxu1  ;;  %v1200_v8 = vadd.f32 %v1199_v23, %v1144_v54 }
 0x1c9   : > { %v1381_v53 = vmul.f32 %v2350_v38, %v1335_v46 }
 0x1ca   : > { %v1278_v37 = vadd.f32 %v1256_v60, %v1200_v8 }
 0x1cb   : > { %v1382_v21 = vadd.f32 %v2356_v36, %v1381_v53 }
 0x1cc   : > { %v1318_v62 = vrot.slane %v1278_v37, 1 }
 0x1cd   : > { %v1383_v0 = vmax.f32 %v1382_v21, 0.0 }
 0x1cf   : > { %v1384_v22 = vpack.c.bf16 %v1383_v0, %v1383_v0  ;;  %v1146_v39 = vpop.f32.mrf.mxu2  ;;  %v1205_v63 = vpop.f32.mrf.mxu3 }
 0x1d0   : > { %v1202_v40 = vadd.f32 %v1201_v52, %v1146_v39  ;;  %v1082_v42 = vpop.f32.mrf.mxu1 }
 0x1d1   : > { %1870 = vst.msk [vmem:[%s2364_s26 + $0x18] sm:$0xf] %vm1349_vm3, %v1384_v22 }
 0x1d2   : > { %v1279_v55 = vadd.f32 %v1258_v43, %v1202_v40 }
 0x1d4   : > { %v1319_v18 = vrot.slane %v1279_v55, 1 }
 0x1d6   : > { %v1320_v2 = vsel %vm1296_vm2, %v1318_v62, %v1319_v18 }
 0x1d7   : > { %v1336_v59 = vadd.f32 %v1320_v2, %v1092_v1  ;;  %v1149_v6 = vpop.f32.mrf.mxu2 }
 0x1d8   : > { %v1083_v5 = vpop.f32.mrf.mxu1 }
 0x1d9   : > { %v1387_v15 = vmul.f32 %v2350_v38, %v1336_v59 }
 0x1db   : > { %v1388_v60 = vadd.f32 %v2356_v36, %v1387_v15 }
 0x1dd   : > { %v1389_v56 = vmax.f32 %v1388_v60, 0.0 }
 0x1df   : > { %v1390_v41 = vpack.c.bf16 %v1389_v56, %v1389_v56  ;;  %v1150_v44 = vpop.f32.mrf.mxu2 }
 0x1e1   : > { %1871 = vst.msk [vmem:[%s2364_s26 + $0x1c] sm:$0xf] %vm1349_vm3, %v1390_v41 }
 0x1e2 PF: > { %s14_s17 = sadd.s32 1, %s1975_s17   ;;  %s2425_s15 = smov %s1971_s16 }
 0x1e3   : > { %p11_p5 = scmp.ge.s32.totalorder %s14_s17, 4   ;;  %s2426_s16 = smov %s2428_s18 }
 0x1e5   :  { %13 = sbr.rel (!%p11_p5) target bundleno = 2 (0x2), region = 87 }

</bundles_post_ra>
